<compile_context>
chip_gen: v7x
topology: tpu7x:2x2x1
jax: 0.10.0
libtpu: 0.0.40
codegen_flags: <defaults>
</compile_context>

<pallas_src>
import jax
import jax.numpy as jnp
from jax.experimental import pallas as pl
from jax.experimental.pallas import tpu as pltpu

# ---- small, deterministic model dims (consistent with the module __init__) ----
VOCAB = 50        # args['vocabularySize']
EMB = 32          # args['embeddingSize']
HID = 32          # args['hiddenSize']
CHARGENUM = 5     # args['chargenum']
TEMPERATURE = 1.0 # args['temperature'] (forward hard-sample is temperature invariant)
EPS = 1e-6


# --------------------------- fused forward kernel ----------------------------
def _make_fused_kernel(S, B, B_pad, E, H, C, eps=EPS):
    inv_B = 1.0 / float(B)
    inv_BS = 1.0 / float(B * S)
    S_f = float(S)

    def kernel(x_ref, gum_ref, mask_ref, rowm_ref, lab_ref,
               w1i_ref, w1h_ref, b1_ref, w2i_ref, w2h_ref, b2_ref,
               wzd_ref, bzd_ref, wf_ref, bf_ref, wc_ref, bc_ref,
               out_ref, h2s_ref):
        bf16 = jnp.bfloat16

        # ---- hoisted loop-invariant loads (bf16 LSTM weights, f32 biases) ----
        w1i = w1i_ref[...]
        w1h = w1h_ref[...]
        b1 = b1_ref[...]
        w2i = w2i_ref[...]
        w2h = w2h_ref[...]
        b2 = b2_ref[...]

        # Gate order i, f, g, o along the 4H lane axis; only 'g' uses tanh.
        col = jax.lax.broadcasted_iota(jnp.int32, (B_pad, 4 * H), 1)
        is_tanh = jnp.logical_and(col >= 2 * H, col < 3 * H)

        def activate(pre):
            # One full-vreg tanh + one full-vreg sigmoid + select (EUP-friendly),
            # instead of four lane-sliced activations.
            act = jnp.where(is_tanh, jnp.tanh(pre), jax.nn.sigmoid(pre))
            return (act[:, 0:H], act[:, H:2 * H],
                    act[:, 2 * H:3 * H], act[:, 3 * H:4 * H])

        # ------------------- serial LSTM recurrence only -------------------
        def step(t, carry):
            h1, c1, h2, c2 = carry
            x_t = x_ref[t]                                          # [B_pad, E] bf16

            g1 = (jnp.dot(x_t, w1i, preferred_element_type=jnp.float32)
                  + jnp.dot(h1.astype(bf16), w1h, preferred_element_type=jnp.float32)
                  + b1)
            i1, f1, u1, o1 = activate(g1)
            c1 = f1 * c1 + i1 * u1
            h1 = o1 * jnp.tanh(c1)

            g2 = (jnp.dot(h1.astype(bf16), w2i, preferred_element_type=jnp.float32)
                  + jnp.dot(h2.astype(bf16), w2h, preferred_element_type=jnp.float32)
                  + b2)
            i2, f2, u2, o2 = activate(g2)
            c2 = f2 * c2 + i2 * u2
            h2 = o2 * jnp.tanh(c2)

            h2s_ref[t] = h2                                         # stash for the head
            return (h1, c1, h2, c2)

        z0 = jnp.zeros((B_pad, H), jnp.float32)
        # S=8 here, so full unroll is fine.
        # TODO(synk): cap unroll / chunk the time axis for production sequence lengths.
        jax.lax.fori_loop(0, S, step, (z0, z0, z0, z0), unroll=True)

        # -------------- batched IB head (hoisted out of the loop) --------------
        h2_all = h2s_ref[...]                                       # [S, B_pad, H] f32

        # 2-class softmax closed form: p0 = sigmoid(zl0 - zl1); only the logit
        # difference (h2 . (wz[:,0]-wz[:,1]) + bz0-bz1) is needed.
        d = jnp.sum(h2_all * wzd_ref[...], axis=-1, keepdims=True) + bzd_ref[...]
        p0 = jax.nn.sigmoid(d)                                      # z_prob[..., 0]
        p1 = 1.0 - p0                                               # z_prob[..., 1]

        gum = gum_ref[...]                                          # [S, B_pad, 2]
        # argmax(softmax((z_prob + g)/T)) == argmax(z_prob + g); ties -> class 0.
        hard1 = (p1 + gum[:, :, 1:2] > p0 + gum[:, :, 0:1]).astype(jnp.float32)
        m = mask_ref[...]                                           # token & row mask
        s1 = hard1 * m                                              # sampled_seq[:,:,1]
        s0 = (1.0 - hard1) * m                                      # sampled_seq[:,:,0]

        a1 = jnp.sum(s1 * h2_all, axis=0)                           # [B_pad, H]
        a0 = jnp.sum(s0 * h2_all, axis=0)
        n1 = jnp.sum(s1, axis=0)                                    # [B_pad, 1]
        n0 = jnp.sum(s0, axis=0)

        rowm = rowm_ref[...]                                        # [B_pad, 1]
        lab = lab_ref[...]                                          # [B_pad, C]
        wf = wf_ref[...]
        bfv = bf_ref[...]
        wc = wc_ref[...]
        bc = bc_ref[...]

        def branch(a, n):
            n = n + (n == 0.0).astype(jnp.float32)
            # z_to_fea applied once to the pooled sum; bias bf contributes at every
            # position (selected or not) before the sum, exactly as in the module.
            feat = (jnp.dot(a, wf, preferred_element_type=jnp.float32) + S_f * bfv) / n
            logits = jnp.dot(feat, wc, preferred_element_type=jnp.float32) + bc
            return jax.nn.log_softmax(logits, axis=-1)              # [B_pad, C]

        out1 = branch(a1, n1)    # sampled words
        out0 = branch(a0, n0)    # unsampled words

        recon = jnp.sum(rowm * (-jnp.sum(out1 * lab, axis=1, keepdims=True))) * inv_B
        i_x_z = jnp.sum(rowm * (-jnp.log(p0 + eps))) * inv_BS
        noinfo = jnp.sum(rowm * jnp.sum(out0 * jnp.exp(out0), axis=1, keepdims=True)) * inv_B

        out_ref[...] = jnp.reshape(recon + i_x_z + noinfo, (1, 1))

    return kernel


# ------------------------------ full forward ---------------------------------
@jax.jit
def model_forward(params, enc_input, labels, gumbel_tm):
    B, S = enc_input.shape
    B_pad = max(8, ((B + 7) // 8) * 8)          # pad batch to sublane multiple
    E, H, C = EMB, HID, CHARGENUM

    mask = jnp.sign(enc_input).astype(jnp.float32)                       # [B, S]
    ids_p = jnp.zeros((B_pad, S), jnp.int32).at[:B].set(enc_input)
    # Embedding gather stays in XLA (tiny table); emitted time-major, pre-cast to bf16.
    x_emb_tm = params['embedding'][ids_p.T].astype(jnp.bfloat16)         # [S, B_pad, E]

    rowm = (jnp.arange(B_pad) < B).astype(jnp.float32).reshape(B_pad, 1)
    mask_tm = jnp.zeros((S, B_pad, 1), jnp.float32).at[:, :B, 0].set(mask.T)
    gum_tm3 = jnp.zeros((S, B_pad, 2), jnp.float32).at[:, :B, :].set(gumbel_tm)
    lab_p = jnp.zeros((B_pad,), jnp.int32).at[:B].set(labels)
    lab1h = jax.nn.one_hot(lab_p, C, dtype=jnp.float32)                  # [B_pad, C]

    # Split the stacked LSTM weights into input/recurrent parts and cast to bf16
    # (single-pass MXU on all generations); biases stay f32.
    w1i = params['w1'][:E].astype(jnp.bfloat16)
    w1h = params['w1'][E:].astype(jnp.bfloat16)
    w2i = params['w2'][:H].astype(jnp.bfloat16)
    w2h = params['w2'][H:].astype(jnp.bfloat16)

    # x_2_prob_z closed form only needs the 2-class logit difference.
    wzd = (params['wz'][:, 0] - params['wz'][:, 1]).reshape(1, 1, H)
    bzd = (params['bz'][:, 0] - params['bz'][:, 1]).reshape(1, 1)

    kernel = _make_fused_kernel(S=S, B=B, B_pad=B_pad, E=E, H=H, C=C)
    vmem = lambda: pl.BlockSpec(memory_space=pltpu.MemorySpace.VMEM)

    out = pl.pallas_call(
        kernel,
        out_shape=jax.ShapeDtypeStruct((1, 1), jnp.float32),
        in_specs=[vmem() for _ in range(17)],
        out_specs=vmem(),
        scratch_shapes=[
            pltpu.VMEM((S, B_pad, H), jnp.float32),   # h2 stack for the batched head
        ],
        # Right-sized: actual VMEM usage here is a few hundred KiB.
        compiler_params=pltpu.CompilerParams(vmem_limit_bytes=4 * 1024 * 1024),
    )(x_emb_tm, gum_tm3, mask_tm, rowm, lab1h,
      w1i, w1h, params['b1'], w2i, w2h, params['b2'],
      wzd, bzd, params['wf'], params['bf'], params['wc'], params['bc'])
    return out[0, 0]


# --------------------------- plain-JAX reference ------------------------------
@jax.jit
def reference_forward(params, enc_input, labels, gumbel_tm):
    B, S = enc_input.shape
    H = HID
    mask = jnp.sign(enc_input).astype(jnp.float32)
    x = params['embedding'][enc_input]                                   # [B, S, E]
    bf16 = jnp.bfloat16

    def cell(x_t, h, c, w, b):
        # Mirror the kernel's bf16 MXU operands (f32 accumulation).
        xc = jnp.concatenate([x_t, h], axis=1)
        g = jnp.dot(xc.astype(bf16), w.astype(bf16),
                    preferred_element_type=jnp.float32) + b
        i = jax.nn.sigmoid(g[:, :H]); f = jax.nn.sigmoid(g[:, H:2 * H])
        u = jnp.tanh(g[:, 2 * H:3 * H]); o = jax.nn.sigmoid(g[:, 3 * H:])
        c = f * c + i * u
        return o * jnp.tanh(c), c

    def step(carry, x_t):
        h1, c1, h2, c2 = carry
        h1, c1 = cell(x_t, h1, c1, params['w1'], params['b1'])
        h2, c2 = cell(h1, h2, c2, params['w2'], params['b2'])
        return (h1, c1, h2, c2), h2

    z = jnp.zeros((B, H), jnp.float32)
    _, outs = jax.lax.scan(step, (z, z, z, z), jnp.transpose(x, (1, 0, 2)))
    enc = jnp.transpose(outs, (1, 0, 2))                                 # [B, S, H]

    z_prob = jax.nn.softmax(enc @ params['wz'] + params['bz'], axis=-1)  # [B, S, 2]
    gum_bm = jnp.transpose(gumbel_tm, (1, 0, 2)).reshape(B * S, 2)
    y = jax.nn.softmax((z_prob.reshape(B * S, 2) + gum_bm) / TEMPERATURE, axis=-1)
    hard = jax.nn.one_hot(jnp.argmax(y, axis=-1), 2, dtype=jnp.float32).reshape(B, S, 2)
    sampled = hard * mask[:, :, None]

    def branch(sel):
        num = jnp.sum(sel, axis=1)
        num = num + (num == 0).astype(jnp.float32)
        word = enc * sel[:, :, None]
        feat = word @ params['wf'] + params['bf']
        feat = jnp.sum(feat, axis=1) / num[:, None]
        return jax.nn.log_softmax(feat @ params['wc'] + params['bc'], axis=-1)

    out1 = branch(sampled[:, :, 1])
    out0 = branch(sampled[:, :, 0])
    recon = jnp.mean(-jnp.take_along_axis(out1, labels[:, None], axis=1))
    i_x_z = jnp.mean(-jnp.log(z_prob[:, :, 0] + EPS))
    noinfo = jnp.mean(jnp.sum(out0 * jnp.exp(out0), axis=1))
    return recon + i_x_z + noinfo


if __name__ == "__main__":
    key = jax.random.PRNGKey(0)
    B, S = 2, 8
    keys = jax.random.split(key, 16)

    def init(k, shape, scale=0.1):
        return (scale * jax.random.normal(k, shape)).astype(jnp.float32)

    # Stacked-gate LSTM weights: w = [(in+H), 4H], gate order i, f, g, o.
    params = {
        'embedding': init(keys[0], (VOCAB, EMB)),
        'w1': init(keys[1], (EMB + HID, 4 * HID)),
        'b1': init(keys[2], (1, 4 * HID)),
        'w2': init(keys[3], (2 * HID, 4 * HID)),
        'b2': init(keys[4], (1, 4 * HID)),
        'wz': init(keys[5], (HID, 2)),
        'bz': init(keys[6], (1, 2)),
        'wf': init(keys[7], (HID, HID)),
        'bf': init(keys[8], (1, HID)),
        'wc': init(keys[9], (HID, CHARGENUM)),
        'bc': init(keys[10], (1, CHARGENUM)),
    }

    enc_input = jax.random.randint(keys[11], (B, S), 1, VOCAB, dtype=jnp.int32)
    enc_input = enc_input.at[:, S - 2:].set(0)      # padding -> exercises mask
    labels = jax.random.randint(keys[12], (B,), 0, CHARGENUM, dtype=jnp.int32)
    # Gumbel noise (torch.rand -> -log(-log(U+eps)+eps)), time-major, fixed for determinism.
    u = jax.random.uniform(keys[13], (S, B, 2), dtype=jnp.float32)
    gumbel_tm = -jnp.log(-jnp.log(u + 1e-20) + 1e-20)

    loss = jax.block_until_ready(model_forward(params, enc_input, labels, gumbel_tm))
    ref = jax.block_until_ready(reference_forward(params, enc_input, labels, gumbel_tm))
    assert jnp.allclose(loss, ref, atol=2e-3), (float(loss), float(ref))

    print("KERNEL_OK")
</pallas_src>

<mosaic_0001>
module attributes {stable_mosaic.version = 11 : i64} {
  func.func @kernel(%arg0: memref<8x8x32xbf16, #tpu.memory_space<vmem>>, %arg1: memref<8x8x2xf32, #tpu.memory_space<vmem>>, %arg2: memref<8x8x1xf32, #tpu.memory_space<vmem>>, %arg3: memref<8x1xf32, #tpu.memory_space<vmem>>, %arg4: memref<8x5xf32, #tpu.memory_space<vmem>>, %arg5: memref<32x128xbf16, #tpu.memory_space<vmem>>, %arg6: memref<32x128xbf16, #tpu.memory_space<vmem>>, %arg7: memref<1x128xf32, #tpu.memory_space<vmem>>, %arg8: memref<32x128xbf16, #tpu.memory_space<vmem>>, %arg9: memref<32x128xbf16, #tpu.memory_space<vmem>>, %arg10: memref<1x128xf32, #tpu.memory_space<vmem>>, %arg11: memref<1x1x32xf32, #tpu.memory_space<vmem>>, %arg12: memref<1x1xf32, #tpu.memory_space<vmem>>, %arg13: memref<32x32xf32, #tpu.memory_space<vmem>>, %arg14: memref<1x32xf32, #tpu.memory_space<vmem>>, %arg15: memref<32x5xf32, #tpu.memory_space<vmem>>, %arg16: memref<1x5xf32, #tpu.memory_space<vmem>>, %arg17: memref<1x1xf32, #tpu.memory_space<vmem>>, %arg18: memref<8x8x32xf32, #tpu.memory_space<vmem>>) attributes {dimension_semantics = [], scalar_prefetch = 0 : i64, scratch_operands = 1 : i64, tpu.core_type = #tpu.core_type<tc>} {
    %c0 = arith.constant 0 : index
    %c0_0 = arith.constant 0 : index
    %0 = vector.load %arg5[%c0, %c0_0] : memref<32x128xbf16, #tpu.memory_space<vmem>>, vector<32x128xbf16>
    %c0_1 = arith.constant 0 : index
    %c0_2 = arith.constant 0 : index
    %1 = vector.load %arg6[%c0_1, %c0_2] : memref<32x128xbf16, #tpu.memory_space<vmem>>, vector<32x128xbf16>
    %c0_3 = arith.constant 0 : index
    %c0_4 = arith.constant 0 : index
    %2 = vector.load %arg7[%c0_3, %c0_4] : memref<1x128xf32, #tpu.memory_space<vmem>>, vector<1x128xf32>
    %c0_5 = arith.constant 0 : index
    %c0_6 = arith.constant 0 : index
    %3 = vector.load %arg8[%c0_5, %c0_6] : memref<32x128xbf16, #tpu.memory_space<vmem>>, vector<32x128xbf16>
    %c0_7 = arith.constant 0 : index
    %c0_8 = arith.constant 0 : index
    %4 = vector.load %arg9[%c0_7, %c0_8] : memref<32x128xbf16, #tpu.memory_space<vmem>>, vector<32x128xbf16>
    %c0_9 = arith.constant 0 : index
    %c0_10 = arith.constant 0 : index
    %5 = vector.load %arg10[%c0_9, %c0_10] : memref<1x128xf32, #tpu.memory_space<vmem>>, vector<1x128xf32>
    %6 = tpu.iota {dimensions = array<i32: 1>} : vector<8x128xi32>
    %c64_i32 = arith.constant 64 : i32
    %7 = vector.broadcast %c64_i32 : i32 to vector<8x128xi32>
    %8 = arith.cmpi sge, %6, %7 : vector<8x128xi32>
    %c96_i32 = arith.constant 96 : i32
    %9 = vector.broadcast %c96_i32 : i32 to vector<8x128xi32>
    %10 = arith.cmpi slt, %6, %9 : vector<8x128xi32>
    %11 = arith.andi %8, %10 : vector<8x128xi1>
    %cst = arith.constant 0.000000e+00 : f32
    %12 = vector.broadcast %cst : f32 to vector<8x32xf32>
    %c0_i32 = arith.constant 0 : i32
    %13 = arith.index_cast %c0_i32 : i32 to index
    %c0_11 = arith.constant 0 : index
    %c0_12 = arith.constant 0 : index
    %14 = vector.load %arg0[%13, %c0_11, %c0_12] : memref<8x8x32xbf16, #tpu.memory_space<vmem>>, vector<1x8x32xbf16>
    %15 = vector.shape_cast %14 : vector<1x8x32xbf16> to vector<8x32xbf16>
    %cst_13 = arith.constant dense<0.000000e+00> : vector<8x128xf32>
    %16 = tpu.matmul %15, %0, %cst_13 {dimension_numbers = #tpu.dot_dimension_numbers<[1], [0], [0], [1], [0, 0, 1, 1], [], []>} : vector<8x32xbf16>, vector<32x128xbf16>, vector<8x128xf32> -> vector<8x128xf32>
    %17 = arith.truncf %12 : vector<8x32xf32> to vector<8x32xbf16>
    %cst_14 = arith.constant dense<0.000000e+00> : vector<8x128xf32>
    %18 = tpu.matmul %17, %1, %cst_14 {dimension_numbers = #tpu.dot_dimension_numbers<[1], [0], [0], [1], [0, 0, 1, 1], [], []>} : vector<8x32xbf16>, vector<32x128xbf16>, vector<8x128xf32> -> vector<8x128xf32>
    %19 = arith.addf %16, %18 : vector<8x128xf32>
    %20 = vector.broadcast %2 : vector<1x128xf32> to vector<8x128xf32>
    %21 = arith.addf %19, %20 : vector<8x128xf32>
    %22 = math.tanh %21 : vector<8x128xf32>
    %23 = arith.negf %21 : vector<8x128xf32>
    %24 = math.exp %23 : vector<8x128xf32>
    %cst_15 = arith.constant 1.000000e+00 : f32
    %25 = vector.broadcast %cst_15 : f32 to vector<8x128xf32>
    %26 = arith.addf %25, %24 : vector<8x128xf32>
    %27 = arith.divf %25, %26 : vector<8x128xf32>
    %28 = arith.select %11, %22, %27 : vector<8x128xi1>, vector<8x128xf32>
    %29 = vector.extract_strided_slice %28 {offsets = [0, 0], sizes = [8, 32], strides = [1, 1]} : vector<8x128xf32> to vector<8x32xf32>
    %30 = vector.extract_strided_slice %28 {offsets = [0, 32], sizes = [8, 32], strides = [1, 1]} : vector<8x128xf32> to vector<8x32xf32>
    %31 = vector.extract_strided_slice %28 {offsets = [0, 64], sizes = [8, 32], strides = [1, 1]} : vector<8x128xf32> to vector<8x32xf32>
    %32 = vector.extract_strided_slice %28 {offsets = [0, 96], sizes = [8, 32], strides = [1, 1]} : vector<8x128xf32> to vector<8x32xf32>
    %33 = arith.mulf %30, %12 : vector<8x32xf32>
    %34 = arith.mulf %29, %31 : vector<8x32xf32>
    %35 = arith.addf %33, %34 : vector<8x32xf32>
    %36 = math.tanh %35 : vector<8x32xf32>
    %37 = arith.mulf %32, %36 : vector<8x32xf32>
    %38 = arith.truncf %37 : vector<8x32xf32> to vector<8x32xbf16>
    %cst_16 = arith.constant dense<0.000000e+00> : vector<8x128xf32>
    %39 = tpu.matmul %38, %3, %cst_16 {dimension_numbers = #tpu.dot_dimension_numbers<[1], [0], [0], [1], [0, 0, 1, 1], [], []>} : vector<8x32xbf16>, vector<32x128xbf16>, vector<8x128xf32> -> vector<8x128xf32>
    %40 = arith.truncf %12 : vector<8x32xf32> to vector<8x32xbf16>
    %cst_17 = arith.constant dense<0.000000e+00> : vector<8x128xf32>
    %41 = tpu.matmul %40, %4, %cst_17 {dimension_numbers = #tpu.dot_dimension_numbers<[1], [0], [0], [1], [0, 0, 1, 1], [], []>} : vector<8x32xbf16>, vector<32x128xbf16>, vector<8x128xf32> -> vector<8x128xf32>
    %42 = arith.addf %39, %41 : vector<8x128xf32>
    %43 = vector.broadcast %5 : vector<1x128xf32> to vector<8x128xf32>
    %44 = arith.addf %42, %43 : vector<8x128xf32>
    %45 = math.tanh %44 : vector<8x128xf32>
    %46 = arith.negf %44 : vector<8x128xf32>
    %47 = math.exp %46 : vector<8x128xf32>
    %cst_18 = arith.constant 1.000000e+00 : f32
    %48 = vector.broadcast %cst_18 : f32 to vector<8x128xf32>
    %49 = arith.addf %48, %47 : vector<8x128xf32>
    %50 = arith.divf %48, %49 : vector<8x128xf32>
    %51 = arith.select %11, %45, %50 : vector<8x128xi1>, vector<8x128xf32>
    %52 = vector.extract_strided_slice %51 {offsets = [0, 0], sizes = [8, 32], strides = [1, 1]} : vector<8x128xf32> to vector<8x32xf32>
    %53 = vector.extract_strided_slice %51 {offsets = [0, 32], sizes = [8, 32], strides = [1, 1]} : vector<8x128xf32> to vector<8x32xf32>
    %54 = vector.extract_strided_slice %51 {offsets = [0, 64], sizes = [8, 32], strides = [1, 1]} : vector<8x128xf32> to vector<8x32xf32>
    %55 = vector.extract_strided_slice %51 {offsets = [0, 96], sizes = [8, 32], strides = [1, 1]} : vector<8x128xf32> to vector<8x32xf32>
    %56 = arith.mulf %53, %12 : vector<8x32xf32>
    %57 = arith.mulf %52, %54 : vector<8x32xf32>
    %58 = arith.addf %56, %57 : vector<8x32xf32>
    %59 = math.tanh %58 : vector<8x32xf32>
    %60 = arith.mulf %55, %59 : vector<8x32xf32>
    %61 = arith.index_cast %c0_i32 : i32 to index
    %c0_19 = arith.constant 0 : index
    %c0_20 = arith.constant 0 : index
    %62 = vector.load %arg18[%61, %c0_19, %c0_20] : memref<8x8x32xf32, #tpu.memory_space<vmem>>, vector<1x8x32xf32>
    %63 = vector.shape_cast %62 : vector<1x8x32xf32> to vector<8x32xf32>
    %64 = vector.shape_cast %60 : vector<8x32xf32> to vector<1x8x32xf32>
    tpu.vector_store %arg18[%61, %c0_19, %c0_20], %64 {strides = array<i32>} : memref<8x8x32xf32, #tpu.memory_space<vmem>>, vector<1x8x32xf32>,
    %c1_i32 = arith.constant 1 : i32
    %65 = arith.index_cast %c1_i32 : i32 to index
    %c0_21 = arith.constant 0 : index
    %c0_22 = arith.constant 0 : index
    %66 = vector.load %arg0[%65, %c0_21, %c0_22] : memref<8x8x32xbf16, #tpu.memory_space<vmem>>, vector<1x8x32xbf16>
    %67 = vector.shape_cast %66 : vector<1x8x32xbf16> to vector<8x32xbf16>
    %cst_23 = arith.constant dense<0.000000e+00> : vector<8x128xf32>
    %68 = tpu.matmul %67, %0, %cst_23 {dimension_numbers = #tpu.dot_dimension_numbers<[1], [0], [0], [1], [0, 0, 1, 1], [], []>} : vector<8x32xbf16>, vector<32x128xbf16>, vector<8x128xf32> -> vector<8x128xf32>
    %69 = arith.truncf %37 : vector<8x32xf32> to vector<8x32xbf16>
    %cst_24 = arith.constant dense<0.000000e+00> : vector<8x128xf32>
    %70 = tpu.matmul %69, %1, %cst_24 {dimension_numbers = #tpu.dot_dimension_numbers<[1], [0], [0], [1], [0, 0, 1, 1], [], []>} : vector<8x32xbf16>, vector<32x128xbf16>, vector<8x128xf32> -> vector<8x128xf32>
    %71 = arith.addf %68, %70 : vector<8x128xf32>
    %72 = vector.broadcast %2 : vector<1x128xf32> to vector<8x128xf32>
    %73 = arith.addf %71, %72 : vector<8x128xf32>
    %74 = math.tanh %73 : vector<8x128xf32>
    %75 = arith.negf %73 : vector<8x128xf32>
    %76 = math.exp %75 : vector<8x128xf32>
    %cst_25 = arith.constant 1.000000e+00 : f32
    %77 = vector.broadcast %cst_25 : f32 to vector<8x128xf32>
    %78 = arith.addf %77, %76 : vector<8x128xf32>
    %79 = arith.divf %77, %78 : vector<8x128xf32>
    %80 = arith.select %11, %74, %79 : vector<8x128xi1>, vector<8x128xf32>
    %81 = vector.extract_strided_slice %80 {offsets = [0, 0], sizes = [8, 32], strides = [1, 1]} : vector<8x128xf32> to vector<8x32xf32>
    %82 = vector.extract_strided_slice %80 {offsets = [0, 32], sizes = [8, 32], strides = [1, 1]} : vector<8x128xf32> to vector<8x32xf32>
    %83 = vector.extract_strided_slice %80 {offsets = [0, 64], sizes = [8, 32], strides = [1, 1]} : vector<8x128xf32> to vector<8x32xf32>
    %84 = vector.extract_strided_slice %80 {offsets = [0, 96], sizes = [8, 32], strides = [1, 1]} : vector<8x128xf32> to vector<8x32xf32>
    %85 = arith.mulf %82, %35 : vector<8x32xf32>
    %86 = arith.mulf %81, %83 : vector<8x32xf32>
    %87 = arith.addf %85, %86 : vector<8x32xf32>
    %88 = math.tanh %87 : vector<8x32xf32>
    %89 = arith.mulf %84, %88 : vector<8x32xf32>
    %90 = arith.truncf %89 : vector<8x32xf32> to vector<8x32xbf16>
    %cst_26 = arith.constant dense<0.000000e+00> : vector<8x128xf32>
    %91 = tpu.matmul %90, %3, %cst_26 {dimension_numbers = #tpu.dot_dimension_numbers<[1], [0], [0], [1], [0, 0, 1, 1], [], []>} : vector<8x32xbf16>, vector<32x128xbf16>, vector<8x128xf32> -> vector<8x128xf32>
    %92 = arith.truncf %60 : vector<8x32xf32> to vector<8x32xbf16>
    %cst_27 = arith.constant dense<0.000000e+00> : vector<8x128xf32>
    %93 = tpu.matmul %92, %4, %cst_27 {dimension_numbers = #tpu.dot_dimension_numbers<[1], [0], [0], [1], [0, 0, 1, 1], [], []>} : vector<8x32xbf16>, vector<32x128xbf16>, vector<8x128xf32> -> vector<8x128xf32>
    %94 = arith.addf %91, %93 : vector<8x128xf32>
    %95 = vector.broadcast %5 : vector<1x128xf32> to vector<8x128xf32>
    %96 = arith.addf %94, %95 : vector<8x128xf32>
    %97 = math.tanh %96 : vector<8x128xf32>
    %98 = arith.negf %96 : vector<8x128xf32>
    %99 = math.exp %98 : vector<8x128xf32>
    %cst_28 = arith.constant 1.000000e+00 : f32
    %100 = vector.broadcast %cst_28 : f32 to vector<8x128xf32>
    %101 = arith.addf %100, %99 : vector<8x128xf32>
    %102 = arith.divf %100, %101 : vector<8x128xf32>
    %103 = arith.select %11, %97, %102 : vector<8x128xi1>, vector<8x128xf32>
    %104 = vector.extract_strided_slice %103 {offsets = [0, 0], sizes = [8, 32], strides = [1, 1]} : vector<8x128xf32> to vector<8x32xf32>
    %105 = vector.extract_strided_slice %103 {offsets = [0, 32], sizes = [8, 32], strides = [1, 1]} : vector<8x128xf32> to vector<8x32xf32>
    %106 = vector.extract_strided_slice %103 {offsets = [0, 64], sizes = [8, 32], strides = [1, 1]} : vector<8x128xf32> to vector<8x32xf32>
    %107 = vector.extract_strided_slice %103 {offsets = [0, 96], sizes = [8, 32], strides = [1, 1]} : vector<8x128xf32> to vector<8x32xf32>
    %108 = arith.mulf %105, %58 : vector<8x32xf32>
    %109 = arith.mulf %104, %106 : vector<8x32xf32>
    %110 = arith.addf %108, %109 : vector<8x32xf32>
    %111 = math.tanh %110 : vector<8x32xf32>
    %112 = arith.mulf %107, %111 : vector<8x32xf32>
    %113 = arith.index_cast %c1_i32 : i32 to index
    %c0_29 = arith.constant 0 : index
    %c0_30 = arith.constant 0 : index
    %114 = vector.load %arg18[%113, %c0_29, %c0_30] : memref<8x8x32xf32, #tpu.memory_space<vmem>>, vector<1x8x32xf32>
    %115 = vector.shape_cast %114 : vector<1x8x32xf32> to vector<8x32xf32>
    %116 = vector.shape_cast %112 : vector<8x32xf32> to vector<1x8x32xf32>
    tpu.vector_store %arg18[%113, %c0_29, %c0_30], %116 {strides = array<i32>} : memref<8x8x32xf32, #tpu.memory_space<vmem>>, vector<1x8x32xf32>,
    %c2_i32 = arith.constant 2 : i32
    %117 = arith.index_cast %c2_i32 : i32 to index
    %c0_31 = arith.constant 0 : index
    %c0_32 = arith.constant 0 : index
    %118 = vector.load %arg0[%117, %c0_31, %c0_32] : memref<8x8x32xbf16, #tpu.memory_space<vmem>>, vector<1x8x32xbf16>
    %119 = vector.shape_cast %118 : vector<1x8x32xbf16> to vector<8x32xbf16>
    %cst_33 = arith.constant dense<0.000000e+00> : vector<8x128xf32>
    %120 = tpu.matmul %119, %0, %cst_33 {dimension_numbers = #tpu.dot_dimension_numbers<[1], [0], [0], [1], [0, 0, 1, 1], [], []>} : vector<8x32xbf16>, vector<32x128xbf16>, vector<8x128xf32> -> vector<8x128xf32>
    %121 = arith.truncf %89 : vector<8x32xf32> to vector<8x32xbf16>
    %cst_34 = arith.constant dense<0.000000e+00> : vector<8x128xf32>
    %122 = tpu.matmul %121, %1, %cst_34 {dimension_numbers = #tpu.dot_dimension_numbers<[1], [0], [0], [1], [0, 0, 1, 1], [], []>} : vector<8x32xbf16>, vector<32x128xbf16>, vector<8x128xf32> -> vector<8x128xf32>
    %123 = arith.addf %120, %122 : vector<8x128xf32>
    %124 = vector.broadcast %2 : vector<1x128xf32> to vector<8x128xf32>
    %125 = arith.addf %123, %124 : vector<8x128xf32>
    %126 = math.tanh %125 : vector<8x128xf32>
    %127 = arith.negf %125 : vector<8x128xf32>
    %128 = math.exp %127 : vector<8x128xf32>
    %cst_35 = arith.constant 1.000000e+00 : f32
    %129 = vector.broadcast %cst_35 : f32 to vector<8x128xf32>
    %130 = arith.addf %129, %128 : vector<8x128xf32>
    %131 = arith.divf %129, %130 : vector<8x128xf32>
    %132 = arith.select %11, %126, %131 : vector<8x128xi1>, vector<8x128xf32>
    %133 = vector.extract_strided_slice %132 {offsets = [0, 0], sizes = [8, 32], strides = [1, 1]} : vector<8x128xf32> to vector<8x32xf32>
    %134 = vector.extract_strided_slice %132 {offsets = [0, 32], sizes = [8, 32], strides = [1, 1]} : vector<8x128xf32> to vector<8x32xf32>
    %135 = vector.extract_strided_slice %132 {offsets = [0, 64], sizes = [8, 32], strides = [1, 1]} : vector<8x128xf32> to vector<8x32xf32>
    %136 = vector.extract_strided_slice %132 {offsets = [0, 96], sizes = [8, 32], strides = [1, 1]} : vector<8x128xf32> to vector<8x32xf32>
    %137 = arith.mulf %134, %87 : vector<8x32xf32>
    %138 = arith.mulf %133, %135 : vector<8x32xf32>
    %139 = arith.addf %137, %138 : vector<8x32xf32>
    %140 = math.tanh %139 : vector<8x32xf32>
    %141 = arith.mulf %136, %140 : vector<8x32xf32>
    %142 = arith.truncf %141 : vector<8x32xf32> to vector<8x32xbf16>
    %cst_36 = arith.constant dense<0.000000e+00> : vector<8x128xf32>
    %143 = tpu.matmul %142, %3, %cst_36 {dimension_numbers = #tpu.dot_dimension_numbers<[1], [0], [0], [1], [0, 0, 1, 1], [], []>} : vector<8x32xbf16>, vector<32x128xbf16>, vector<8x128xf32> -> vector<8x128xf32>
    %144 = arith.truncf %112 : vector<8x32xf32> to vector<8x32xbf16>
    %cst_37 = arith.constant dense<0.000000e+00> : vector<8x128xf32>
    %145 = tpu.matmul %144, %4, %cst_37 {dimension_numbers = #tpu.dot_dimension_numbers<[1], [0], [0], [1], [0, 0, 1, 1], [], []>} : vector<8x32xbf16>, vector<32x128xbf16>, vector<8x128xf32> -> vector<8x128xf32>
    %146 = arith.addf %143, %145 : vector<8x128xf32>
    %147 = vector.broadcast %5 : vector<1x128xf32> to vector<8x128xf32>
    %148 = arith.addf %146, %147 : vector<8x128xf32>
    %149 = math.tanh %148 : vector<8x128xf32>
    %150 = arith.negf %148 : vector<8x128xf32>
    %151 = math.exp %150 : vector<8x128xf32>
    %cst_38 = arith.constant 1.000000e+00 : f32
    %152 = vector.broadcast %cst_38 : f32 to vector<8x128xf32>
    %153 = arith.addf %152, %151 : vector<8x128xf32>
    %154 = arith.divf %152, %153 : vector<8x128xf32>
    %155 = arith.select %11, %149, %154 : vector<8x128xi1>, vector<8x128xf32>
    %156 = vector.extract_strided_slice %155 {offsets = [0, 0], sizes = [8, 32], strides = [1, 1]} : vector<8x128xf32> to vector<8x32xf32>
    %157 = vector.extract_strided_slice %155 {offsets = [0, 32], sizes = [8, 32], strides = [1, 1]} : vector<8x128xf32> to vector<8x32xf32>
    %158 = vector.extract_strided_slice %155 {offsets = [0, 64], sizes = [8, 32], strides = [1, 1]} : vector<8x128xf32> to vector<8x32xf32>
    %159 = vector.extract_strided_slice %155 {offsets = [0, 96], sizes = [8, 32], strides = [1, 1]} : vector<8x128xf32> to vector<8x32xf32>
    %160 = arith.mulf %157, %110 : vector<8x32xf32>
    %161 = arith.mulf %156, %158 : vector<8x32xf32>
    %162 = arith.addf %160, %161 : vector<8x32xf32>
    %163 = math.tanh %162 : vector<8x32xf32>
    %164 = arith.mulf %159, %163 : vector<8x32xf32>
    %165 = arith.index_cast %c2_i32 : i32 to index
    %c0_39 = arith.constant 0 : index
    %c0_40 = arith.constant 0 : index
    %166 = vector.load %arg18[%165, %c0_39, %c0_40] : memref<8x8x32xf32, #tpu.memory_space<vmem>>, vector<1x8x32xf32>
    %167 = vector.shape_cast %166 : vector<1x8x32xf32> to vector<8x32xf32>
    %168 = vector.shape_cast %164 : vector<8x32xf32> to vector<1x8x32xf32>
    tpu.vector_store %arg18[%165, %c0_39, %c0_40], %168 {strides = array<i32>} : memref<8x8x32xf32, #tpu.memory_space<vmem>>, vector<1x8x32xf32>,
    %c3_i32 = arith.constant 3 : i32
    %169 = arith.index_cast %c3_i32 : i32 to index
    %c0_41 = arith.constant 0 : index
    %c0_42 = arith.constant 0 : index
    %170 = vector.load %arg0[%169, %c0_41, %c0_42] : memref<8x8x32xbf16, #tpu.memory_space<vmem>>, vector<1x8x32xbf16>
    %171 = vector.shape_cast %170 : vector<1x8x32xbf16> to vector<8x32xbf16>
    %cst_43 = arith.constant dense<0.000000e+00> : vector<8x128xf32>
    %172 = tpu.matmul %171, %0, %cst_43 {dimension_numbers = #tpu.dot_dimension_numbers<[1], [0], [0], [1], [0, 0, 1, 1], [], []>} : vector<8x32xbf16>, vector<32x128xbf16>, vector<8x128xf32> -> vector<8x128xf32>
    %173 = arith.truncf %141 : vector<8x32xf32> to vector<8x32xbf16>
    %cst_44 = arith.constant dense<0.000000e+00> : vector<8x128xf32>
    %174 = tpu.matmul %173, %1, %cst_44 {dimension_numbers = #tpu.dot_dimension_numbers<[1], [0], [0], [1], [0, 0, 1, 1], [], []>} : vector<8x32xbf16>, vector<32x128xbf16>, vector<8x128xf32> -> vector<8x128xf32>
    %175 = arith.addf %172, %174 : vector<8x128xf32>
    %176 = vector.broadcast %2 : vector<1x128xf32> to vector<8x128xf32>
    %177 = arith.addf %175, %176 : vector<8x128xf32>
    %178 = math.tanh %177 : vector<8x128xf32>
    %179 = arith.negf %177 : vector<8x128xf32>
    %180 = math.exp %179 : vector<8x128xf32>
    %cst_45 = arith.constant 1.000000e+00 : f32
    %181 = vector.broadcast %cst_45 : f32 to vector<8x128xf32>
    %182 = arith.addf %181, %180 : vector<8x128xf32>
    %183 = arith.divf %181, %182 : vector<8x128xf32>
    %184 = arith.select %11, %178, %183 : vector<8x128xi1>, vector<8x128xf32>
    %185 = vector.extract_strided_slice %184 {offsets = [0, 0], sizes = [8, 32], strides = [1, 1]} : vector<8x128xf32> to vector<8x32xf32>
    %186 = vector.extract_strided_slice %184 {offsets = [0, 32], sizes = [8, 32], strides = [1, 1]} : vector<8x128xf32> to vector<8x32xf32>
    %187 = vector.extract_strided_slice %184 {offsets = [0, 64], sizes = [8, 32], strides = [1, 1]} : vector<8x128xf32> to vector<8x32xf32>
    %188 = vector.extract_strided_slice %184 {offsets = [0, 96], sizes = [8, 32], strides = [1, 1]} : vector<8x128xf32> to vector<8x32xf32>
    %189 = arith.mulf %186, %139 : vector<8x32xf32>
    %190 = arith.mulf %185, %187 : vector<8x32xf32>
    %191 = arith.addf %189, %190 : vector<8x32xf32>
    %192 = math.tanh %191 : vector<8x32xf32>
    %193 = arith.mulf %188, %192 : vector<8x32xf32>
    %194 = arith.truncf %193 : vector<8x32xf32> to vector<8x32xbf16>
    %cst_46 = arith.constant dense<0.000000e+00> : vector<8x128xf32>
    %195 = tpu.matmul %194, %3, %cst_46 {dimension_numbers = #tpu.dot_dimension_numbers<[1], [0], [0], [1], [0, 0, 1, 1], [], []>} : vector<8x32xbf16>, vector<32x128xbf16>, vector<8x128xf32> -> vector<8x128xf32>
    %196 = arith.truncf %164 : vector<8x32xf32> to vector<8x32xbf16>
    %cst_47 = arith.constant dense<0.000000e+00> : vector<8x128xf32>
    %197 = tpu.matmul %196, %4, %cst_47 {dimension_numbers = #tpu.dot_dimension_numbers<[1], [0], [0], [1], [0, 0, 1, 1], [], []>} : vector<8x32xbf16>, vector<32x128xbf16>, vector<8x128xf32> -> vector<8x128xf32>
    %198 = arith.addf %195, %197 : vector<8x128xf32>
    %199 = vector.broadcast %5 : vector<1x128xf32> to vector<8x128xf32>
    %200 = arith.addf %198, %199 : vector<8x128xf32>
    %201 = math.tanh %200 : vector<8x128xf32>
    %202 = arith.negf %200 : vector<8x128xf32>
    %203 = math.exp %202 : vector<8x128xf32>
    %cst_48 = arith.constant 1.000000e+00 : f32
    %204 = vector.broadcast %cst_48 : f32 to vector<8x128xf32>
    %205 = arith.addf %204, %203 : vector<8x128xf32>
    %206 = arith.divf %204, %205 : vector<8x128xf32>
    %207 = arith.select %11, %201, %206 : vector<8x128xi1>, vector<8x128xf32>
    %208 = vector.extract_strided_slice %207 {offsets = [0, 0], sizes = [8, 32], strides = [1, 1]} : vector<8x128xf32> to vector<8x32xf32>
    %209 = vector.extract_strided_slice %207 {offsets = [0, 32], sizes = [8, 32], strides = [1, 1]} : vector<8x128xf32> to vector<8x32xf32>
    %210 = vector.extract_strided_slice %207 {offsets = [0, 64], sizes = [8, 32], strides = [1, 1]} : vector<8x128xf32> to vector<8x32xf32>
    %211 = vector.extract_strided_slice %207 {offsets = [0, 96], sizes = [8, 32], strides = [1, 1]} : vector<8x128xf32> to vector<8x32xf32>
    %212 = arith.mulf %209, %162 : vector<8x32xf32>
    %213 = arith.mulf %208, %210 : vector<8x32xf32>
    %214 = arith.addf %212, %213 : vector<8x32xf32>
    %215 = math.tanh %214 : vector<8x32xf32>
    %216 = arith.mulf %211, %215 : vector<8x32xf32>
    %217 = arith.index_cast %c3_i32 : i32 to index
    %c0_49 = arith.constant 0 : index
    %c0_50 = arith.constant 0 : index
    %218 = vector.load %arg18[%217, %c0_49, %c0_50] : memref<8x8x32xf32, #tpu.memory_space<vmem>>, vector<1x8x32xf32>
    %219 = vector.shape_cast %218 : vector<1x8x32xf32> to vector<8x32xf32>
    %220 = vector.shape_cast %216 : vector<8x32xf32> to vector<1x8x32xf32>
    tpu.vector_store %arg18[%217, %c0_49, %c0_50], %220 {strides = array<i32>} : memref<8x8x32xf32, #tpu.memory_space<vmem>>, vector<1x8x32xf32>,
    %c4_i32 = arith.constant 4 : i32
    %221 = arith.index_cast %c4_i32 : i32 to index
    %c0_51 = arith.constant 0 : index
    %c0_52 = arith.constant 0 : index
    %222 = vector.load %arg0[%221, %c0_51, %c0_52] : memref<8x8x32xbf16, #tpu.memory_space<vmem>>, vector<1x8x32xbf16>
    %223 = vector.shape_cast %222 : vector<1x8x32xbf16> to vector<8x32xbf16>
    %cst_53 = arith.constant dense<0.000000e+00> : vector<8x128xf32>
    %224 = tpu.matmul %223, %0, %cst_53 {dimension_numbers = #tpu.dot_dimension_numbers<[1], [0], [0], [1], [0, 0, 1, 1], [], []>} : vector<8x32xbf16>, vector<32x128xbf16>, vector<8x128xf32> -> vector<8x128xf32>
    %225 = arith.truncf %193 : vector<8x32xf32> to vector<8x32xbf16>
    %cst_54 = arith.constant dense<0.000000e+00> : vector<8x128xf32>
    %226 = tpu.matmul %225, %1, %cst_54 {dimension_numbers = #tpu.dot_dimension_numbers<[1], [0], [0], [1], [0, 0, 1, 1], [], []>} : vector<8x32xbf16>, vector<32x128xbf16>, vector<8x128xf32> -> vector<8x128xf32>
    %227 = arith.addf %224, %226 : vector<8x128xf32>
    %228 = vector.broadcast %2 : vector<1x128xf32> to vector<8x128xf32>
    %229 = arith.addf %227, %228 : vector<8x128xf32>
    %230 = math.tanh %229 : vector<8x128xf32>
    %231 = arith.negf %229 : vector<8x128xf32>
    %232 = math.exp %231 : vector<8x128xf32>
    %cst_55 = arith.constant 1.000000e+00 : f32
    %233 = vector.broadcast %cst_55 : f32 to vector<8x128xf32>
    %234 = arith.addf %233, %232 : vector<8x128xf32>
    %235 = arith.divf %233, %234 : vector<8x128xf32>
    %236 = arith.select %11, %230, %235 : vector<8x128xi1>, vector<8x128xf32>
    %237 = vector.extract_strided_slice %236 {offsets = [0, 0], sizes = [8, 32], strides = [1, 1]} : vector<8x128xf32> to vector<8x32xf32>
    %238 = vector.extract_strided_slice %236 {offsets = [0, 32], sizes = [8, 32], strides = [1, 1]} : vector<8x128xf32> to vector<8x32xf32>
    %239 = vector.extract_strided_slice %236 {offsets = [0, 64], sizes = [8, 32], strides = [1, 1]} : vector<8x128xf32> to vector<8x32xf32>
    %240 = vector.extract_strided_slice %236 {offsets = [0, 96], sizes = [8, 32], strides = [1, 1]} : vector<8x128xf32> to vector<8x32xf32>
    %241 = arith.mulf %238, %191 : vector<8x32xf32>
    %242 = arith.mulf %237, %239 : vector<8x32xf32>
    %243 = arith.addf %241, %242 : vector<8x32xf32>
    %244 = math.tanh %243 : vector<8x32xf32>
    %245 = arith.mulf %240, %244 : vector<8x32xf32>
    %246 = arith.truncf %245 : vector<8x32xf32> to vector<8x32xbf16>
    %cst_56 = arith.constant dense<0.000000e+00> : vector<8x128xf32>
    %247 = tpu.matmul %246, %3, %cst_56 {dimension_numbers = #tpu.dot_dimension_numbers<[1], [0], [0], [1], [0, 0, 1, 1], [], []>} : vector<8x32xbf16>, vector<32x128xbf16>, vector<8x128xf32> -> vector<8x128xf32>
    %248 = arith.truncf %216 : vector<8x32xf32> to vector<8x32xbf16>
    %cst_57 = arith.constant dense<0.000000e+00> : vector<8x128xf32>
    %249 = tpu.matmul %248, %4, %cst_57 {dimension_numbers = #tpu.dot_dimension_numbers<[1], [0], [0], [1], [0, 0, 1, 1], [], []>} : vector<8x32xbf16>, vector<32x128xbf16>, vector<8x128xf32> -> vector<8x128xf32>
    %250 = arith.addf %247, %249 : vector<8x128xf32>
    %251 = vector.broadcast %5 : vector<1x128xf32> to vector<8x128xf32>
    %252 = arith.addf %250, %251 : vector<8x128xf32>
    %253 = math.tanh %252 : vector<8x128xf32>
    %254 = arith.negf %252 : vector<8x128xf32>
    %255 = math.exp %254 : vector<8x128xf32>
    %cst_58 = arith.constant 1.000000e+00 : f32
    %256 = vector.broadcast %cst_58 : f32 to vector<8x128xf32>
    %257 = arith.addf %256, %255 : vector<8x128xf32>
    %258 = arith.divf %256, %257 : vector<8x128xf32>
    %259 = arith.select %11, %253, %258 : vector<8x128xi1>, vector<8x128xf32>
    %260 = vector.extract_strided_slice %259 {offsets = [0, 0], sizes = [8, 32], strides = [1, 1]} : vector<8x128xf32> to vector<8x32xf32>
    %261 = vector.extract_strided_slice %259 {offsets = [0, 32], sizes = [8, 32], strides = [1, 1]} : vector<8x128xf32> to vector<8x32xf32>
    %262 = vector.extract_strided_slice %259 {offsets = [0, 64], sizes = [8, 32], strides = [1, 1]} : vector<8x128xf32> to vector<8x32xf32>
    %263 = vector.extract_strided_slice %259 {offsets = [0, 96], sizes = [8, 32], strides = [1, 1]} : vector<8x128xf32> to vector<8x32xf32>
    %264 = arith.mulf %261, %214 : vector<8x32xf32>
    %265 = arith.mulf %260, %262 : vector<8x32xf32>
    %266 = arith.addf %264, %265 : vector<8x32xf32>
    %267 = math.tanh %266 : vector<8x32xf32>
    %268 = arith.mulf %263, %267 : vector<8x32xf32>
    %269 = arith.index_cast %c4_i32 : i32 to index
    %c0_59 = arith.constant 0 : index
    %c0_60 = arith.constant 0 : index
    %270 = vector.load %arg18[%269, %c0_59, %c0_60] : memref<8x8x32xf32, #tpu.memory_space<vmem>>, vector<1x8x32xf32>
    %271 = vector.shape_cast %270 : vector<1x8x32xf32> to vector<8x32xf32>
    %272 = vector.shape_cast %268 : vector<8x32xf32> to vector<1x8x32xf32>
    tpu.vector_store %arg18[%269, %c0_59, %c0_60], %272 {strides = array<i32>} : memref<8x8x32xf32, #tpu.memory_space<vmem>>, vector<1x8x32xf32>,
    %c5_i32 = arith.constant 5 : i32
    %273 = arith.index_cast %c5_i32 : i32 to index
    %c0_61 = arith.constant 0 : index
    %c0_62 = arith.constant 0 : index
    %274 = vector.load %arg0[%273, %c0_61, %c0_62] : memref<8x8x32xbf16, #tpu.memory_space<vmem>>, vector<1x8x32xbf16>
    %275 = vector.shape_cast %274 : vector<1x8x32xbf16> to vector<8x32xbf16>
    %cst_63 = arith.constant dense<0.000000e+00> : vector<8x128xf32>
    %276 = tpu.matmul %275, %0, %cst_63 {dimension_numbers = #tpu.dot_dimension_numbers<[1], [0], [0], [1], [0, 0, 1, 1], [], []>} : vector<8x32xbf16>, vector<32x128xbf16>, vector<8x128xf32> -> vector<8x128xf32>
    %277 = arith.truncf %245 : vector<8x32xf32> to vector<8x32xbf16>
    %cst_64 = arith.constant dense<0.000000e+00> : vector<8x128xf32>
    %278 = tpu.matmul %277, %1, %cst_64 {dimension_numbers = #tpu.dot_dimension_numbers<[1], [0], [0], [1], [0, 0, 1, 1], [], []>} : vector<8x32xbf16>, vector<32x128xbf16>, vector<8x128xf32> -> vector<8x128xf32>
    %279 = arith.addf %276, %278 : vector<8x128xf32>
    %280 = vector.broadcast %2 : vector<1x128xf32> to vector<8x128xf32>
    %281 = arith.addf %279, %280 : vector<8x128xf32>
    %282 = math.tanh %281 : vector<8x128xf32>
    %283 = arith.negf %281 : vector<8x128xf32>
    %284 = math.exp %283 : vector<8x128xf32>
    %cst_65 = arith.constant 1.000000e+00 : f32
    %285 = vector.broadcast %cst_65 : f32 to vector<8x128xf32>
    %286 = arith.addf %285, %284 : vector<8x128xf32>
    %287 = arith.divf %285, %286 : vector<8x128xf32>
    %288 = arith.select %11, %282, %287 : vector<8x128xi1>, vector<8x128xf32>
    %289 = vector.extract_strided_slice %288 {offsets = [0, 0], sizes = [8, 32], strides = [1, 1]} : vector<8x128xf32> to vector<8x32xf32>
    %290 = vector.extract_strided_slice %288 {offsets = [0, 32], sizes = [8, 32], strides = [1, 1]} : vector<8x128xf32> to vector<8x32xf32>
    %291 = vector.extract_strided_slice %288 {offsets = [0, 64], sizes = [8, 32], strides = [1, 1]} : vector<8x128xf32> to vector<8x32xf32>
    %292 = vector.extract_strided_slice %288 {offsets = [0, 96], sizes = [8, 32], strides = [1, 1]} : vector<8x128xf32> to vector<8x32xf32>
    %293 = arith.mulf %290, %243 : vector<8x32xf32>
    %294 = arith.mulf %289, %291 : vector<8x32xf32>
    %295 = arith.addf %293, %294 : vector<8x32xf32>
    %296 = math.tanh %295 : vector<8x32xf32>
    %297 = arith.mulf %292, %296 : vector<8x32xf32>
    %298 = arith.truncf %297 : vector<8x32xf32> to vector<8x32xbf16>
    %cst_66 = arith.constant dense<0.000000e+00> : vector<8x128xf32>
    %299 = tpu.matmul %298, %3, %cst_66 {dimension_numbers = #tpu.dot_dimension_numbers<[1], [0], [0], [1], [0, 0, 1, 1], [], []>} : vector<8x32xbf16>, vector<32x128xbf16>, vector<8x128xf32> -> vector<8x128xf32>
    %300 = arith.truncf %268 : vector<8x32xf32> to vector<8x32xbf16>
    %cst_67 = arith.constant dense<0.000000e+00> : vector<8x128xf32>
    %301 = tpu.matmul %300, %4, %cst_67 {dimension_numbers = #tpu.dot_dimension_numbers<[1], [0], [0], [1], [0, 0, 1, 1], [], []>} : vector<8x32xbf16>, vector<32x128xbf16>, vector<8x128xf32> -> vector<8x128xf32>
    %302 = arith.addf %299, %301 : vector<8x128xf32>
    %303 = vector.broadcast %5 : vector<1x128xf32> to vector<8x128xf32>
    %304 = arith.addf %302, %303 : vector<8x128xf32>
    %305 = math.tanh %304 : vector<8x128xf32>
    %306 = arith.negf %304 : vector<8x128xf32>
    %307 = math.exp %306 : vector<8x128xf32>
    %cst_68 = arith.constant 1.000000e+00 : f32
    %308 = vector.broadcast %cst_68 : f32 to vector<8x128xf32>
    %309 = arith.addf %308, %307 : vector<8x128xf32>
    %310 = arith.divf %308, %309 : vector<8x128xf32>
    %311 = arith.select %11, %305, %310 : vector<8x128xi1>, vector<8x128xf32>
    %312 = vector.extract_strided_slice %311 {offsets = [0, 0], sizes = [8, 32], strides = [1, 1]} : vector<8x128xf32> to vector<8x32xf32>
    %313 = vector.extract_strided_slice %311 {offsets = [0, 32], sizes = [8, 32], strides = [1, 1]} : vector<8x128xf32> to vector<8x32xf32>
    %314 = vector.extract_strided_slice %311 {offsets = [0, 64], sizes = [8, 32], strides = [1, 1]} : vector<8x128xf32> to vector<8x32xf32>
    %315 = vector.extract_strided_slice %311 {offsets = [0, 96], sizes = [8, 32], strides = [1, 1]} : vector<8x128xf32> to vector<8x32xf32>
    %316 = arith.mulf %313, %266 : vector<8x32xf32>
    %317 = arith.mulf %312, %314 : vector<8x32xf32>
    %318 = arith.addf %316, %317 : vector<8x32xf32>
    %319 = math.tanh %318 : vector<8x32xf32>
    %320 = arith.mulf %315, %319 : vector<8x32xf32>
    %321 = arith.index_cast %c5_i32 : i32 to index
    %c0_69 = arith.constant 0 : index
    %c0_70 = arith.constant 0 : index
    %322 = vector.load %arg18[%321, %c0_69, %c0_70] : memref<8x8x32xf32, #tpu.memory_space<vmem>>, vector<1x8x32xf32>
    %323 = vector.shape_cast %322 : vector<1x8x32xf32> to vector<8x32xf32>
    %324 = vector.shape_cast %320 : vector<8x32xf32> to vector<1x8x32xf32>
    tpu.vector_store %arg18[%321, %c0_69, %c0_70], %324 {strides = array<i32>} : memref<8x8x32xf32, #tpu.memory_space<vmem>>, vector<1x8x32xf32>,
    %c6_i32 = arith.constant 6 : i32
    %325 = arith.index_cast %c6_i32 : i32 to index
    %c0_71 = arith.constant 0 : index
    %c0_72 = arith.constant 0 : index
    %326 = vector.load %arg0[%325, %c0_71, %c0_72] : memref<8x8x32xbf16, #tpu.memory_space<vmem>>, vector<1x8x32xbf16>
    %327 = vector.shape_cast %326 : vector<1x8x32xbf16> to vector<8x32xbf16>
    %cst_73 = arith.constant dense<0.000000e+00> : vector<8x128xf32>
    %328 = tpu.matmul %327, %0, %cst_73 {dimension_numbers = #tpu.dot_dimension_numbers<[1], [0], [0], [1], [0, 0, 1, 1], [], []>} : vector<8x32xbf16>, vector<32x128xbf16>, vector<8x128xf32> -> vector<8x128xf32>
    %329 = arith.truncf %297 : vector<8x32xf32> to vector<8x32xbf16>
    %cst_74 = arith.constant dense<0.000000e+00> : vector<8x128xf32>
    %330 = tpu.matmul %329, %1, %cst_74 {dimension_numbers = #tpu.dot_dimension_numbers<[1], [0], [0], [1], [0, 0, 1, 1], [], []>} : vector<8x32xbf16>, vector<32x128xbf16>, vector<8x128xf32> -> vector<8x128xf32>
    %331 = arith.addf %328, %330 : vector<8x128xf32>
    %332 = vector.broadcast %2 : vector<1x128xf32> to vector<8x128xf32>
    %333 = arith.addf %331, %332 : vector<8x128xf32>
    %334 = math.tanh %333 : vector<8x128xf32>
    %335 = arith.negf %333 : vector<8x128xf32>
    %336 = math.exp %335 : vector<8x128xf32>
    %cst_75 = arith.constant 1.000000e+00 : f32
    %337 = vector.broadcast %cst_75 : f32 to vector<8x128xf32>
    %338 = arith.addf %337, %336 : vector<8x128xf32>
    %339 = arith.divf %337, %338 : vector<8x128xf32>
    %340 = arith.select %11, %334, %339 : vector<8x128xi1>, vector<8x128xf32>
    %341 = vector.extract_strided_slice %340 {offsets = [0, 0], sizes = [8, 32], strides = [1, 1]} : vector<8x128xf32> to vector<8x32xf32>
    %342 = vector.extract_strided_slice %340 {offsets = [0, 32], sizes = [8, 32], strides = [1, 1]} : vector<8x128xf32> to vector<8x32xf32>
    %343 = vector.extract_strided_slice %340 {offsets = [0, 64], sizes = [8, 32], strides = [1, 1]} : vector<8x128xf32> to vector<8x32xf32>
    %344 = vector.extract_strided_slice %340 {offsets = [0, 96], sizes = [8, 32], strides = [1, 1]} : vector<8x128xf32> to vector<8x32xf32>
    %345 = arith.mulf %342, %295 : vector<8x32xf32>
    %346 = arith.mulf %341, %343 : vector<8x32xf32>
    %347 = arith.addf %345, %346 : vector<8x32xf32>
    %348 = math.tanh %347 : vector<8x32xf32>
    %349 = arith.mulf %344, %348 : vector<8x32xf32>
    %350 = arith.truncf %349 : vector<8x32xf32> to vector<8x32xbf16>
    %cst_76 = arith.constant dense<0.000000e+00> : vector<8x128xf32>
    %351 = tpu.matmul %350, %3, %cst_76 {dimension_numbers = #tpu.dot_dimension_numbers<[1], [0], [0], [1], [0, 0, 1, 1], [], []>} : vector<8x32xbf16>, vector<32x128xbf16>, vector<8x128xf32> -> vector<8x128xf32>
    %352 = arith.truncf %320 : vector<8x32xf32> to vector<8x32xbf16>
    %cst_77 = arith.constant dense<0.000000e+00> : vector<8x128xf32>
    %353 = tpu.matmul %352, %4, %cst_77 {dimension_numbers = #tpu.dot_dimension_numbers<[1], [0], [0], [1], [0, 0, 1, 1], [], []>} : vector<8x32xbf16>, vector<32x128xbf16>, vector<8x128xf32> -> vector<8x128xf32>
    %354 = arith.addf %351, %353 : vector<8x128xf32>
    %355 = vector.broadcast %5 : vector<1x128xf32> to vector<8x128xf32>
    %356 = arith.addf %354, %355 : vector<8x128xf32>
    %357 = math.tanh %356 : vector<8x128xf32>
    %358 = arith.negf %356 : vector<8x128xf32>
    %359 = math.exp %358 : vector<8x128xf32>
    %cst_78 = arith.constant 1.000000e+00 : f32
    %360 = vector.broadcast %cst_78 : f32 to vector<8x128xf32>
    %361 = arith.addf %360, %359 : vector<8x128xf32>
    %362 = arith.divf %360, %361 : vector<8x128xf32>
    %363 = arith.select %11, %357, %362 : vector<8x128xi1>, vector<8x128xf32>
    %364 = vector.extract_strided_slice %363 {offsets = [0, 0], sizes = [8, 32], strides = [1, 1]} : vector<8x128xf32> to vector<8x32xf32>
    %365 = vector.extract_strided_slice %363 {offsets = [0, 32], sizes = [8, 32], strides = [1, 1]} : vector<8x128xf32> to vector<8x32xf32>
    %366 = vector.extract_strided_slice %363 {offsets = [0, 64], sizes = [8, 32], strides = [1, 1]} : vector<8x128xf32> to vector<8x32xf32>
    %367 = vector.extract_strided_slice %363 {offsets = [0, 96], sizes = [8, 32], strides = [1, 1]} : vector<8x128xf32> to vector<8x32xf32>
    %368 = arith.mulf %365, %318 : vector<8x32xf32>
    %369 = arith.mulf %364, %366 : vector<8x32xf32>
    %370 = arith.addf %368, %369 : vector<8x32xf32>
    %371 = math.tanh %370 : vector<8x32xf32>
    %372 = arith.mulf %367, %371 : vector<8x32xf32>
    %373 = arith.index_cast %c6_i32 : i32 to index
    %c0_79 = arith.constant 0 : index
    %c0_80 = arith.constant 0 : index
    %374 = vector.load %arg18[%373, %c0_79, %c0_80] : memref<8x8x32xf32, #tpu.memory_space<vmem>>, vector<1x8x32xf32>
    %375 = vector.shape_cast %374 : vector<1x8x32xf32> to vector<8x32xf32>
    %376 = vector.shape_cast %372 : vector<8x32xf32> to vector<1x8x32xf32>
    tpu.vector_store %arg18[%373, %c0_79, %c0_80], %376 {strides = array<i32>} : memref<8x8x32xf32, #tpu.memory_space<vmem>>, vector<1x8x32xf32>,
    %c7_i32 = arith.constant 7 : i32
    %377 = arith.index_cast %c7_i32 : i32 to index
    %c0_81 = arith.constant 0 : index
    %c0_82 = arith.constant 0 : index
    %378 = vector.load %arg0[%377, %c0_81, %c0_82] : memref<8x8x32xbf16, #tpu.memory_space<vmem>>, vector<1x8x32xbf16>
    %379 = vector.shape_cast %378 : vector<1x8x32xbf16> to vector<8x32xbf16>
    %cst_83 = arith.constant dense<0.000000e+00> : vector<8x128xf32>
    %380 = tpu.matmul %379, %0, %cst_83 {dimension_numbers = #tpu.dot_dimension_numbers<[1], [0], [0], [1], [0, 0, 1, 1], [], []>} : vector<8x32xbf16>, vector<32x128xbf16>, vector<8x128xf32> -> vector<8x128xf32>
    %381 = arith.truncf %349 : vector<8x32xf32> to vector<8x32xbf16>
    %cst_84 = arith.constant dense<0.000000e+00> : vector<8x128xf32>
    %382 = tpu.matmul %381, %1, %cst_84 {dimension_numbers = #tpu.dot_dimension_numbers<[1], [0], [0], [1], [0, 0, 1, 1], [], []>} : vector<8x32xbf16>, vector<32x128xbf16>, vector<8x128xf32> -> vector<8x128xf32>
    %383 = arith.addf %380, %382 : vector<8x128xf32>
    %384 = vector.broadcast %2 : vector<1x128xf32> to vector<8x128xf32>
    %385 = arith.addf %383, %384 : vector<8x128xf32>
    %386 = math.tanh %385 : vector<8x128xf32>
    %387 = arith.negf %385 : vector<8x128xf32>
    %388 = math.exp %387 : vector<8x128xf32>
    %cst_85 = arith.constant 1.000000e+00 : f32
    %389 = vector.broadcast %cst_85 : f32 to vector<8x128xf32>
    %390 = arith.addf %389, %388 : vector<8x128xf32>
    %391 = arith.divf %389, %390 : vector<8x128xf32>
    %392 = arith.select %11, %386, %391 : vector<8x128xi1>, vector<8x128xf32>
    %393 = vector.extract_strided_slice %392 {offsets = [0, 0], sizes = [8, 32], strides = [1, 1]} : vector<8x128xf32> to vector<8x32xf32>
    %394 = vector.extract_strided_slice %392 {offsets = [0, 32], sizes = [8, 32], strides = [1, 1]} : vector<8x128xf32> to vector<8x32xf32>
    %395 = vector.extract_strided_slice %392 {offsets = [0, 64], sizes = [8, 32], strides = [1, 1]} : vector<8x128xf32> to vector<8x32xf32>
    %396 = vector.extract_strided_slice %392 {offsets = [0, 96], sizes = [8, 32], strides = [1, 1]} : vector<8x128xf32> to vector<8x32xf32>
    %397 = arith.mulf %394, %347 : vector<8x32xf32>
    %398 = arith.mulf %393, %395 : vector<8x32xf32>
    %399 = arith.addf %397, %398 : vector<8x32xf32>
    %400 = math.tanh %399 : vector<8x32xf32>
    %401 = arith.mulf %396, %400 : vector<8x32xf32>
    %402 = arith.truncf %401 : vector<8x32xf32> to vector<8x32xbf16>
    %cst_86 = arith.constant dense<0.000000e+00> : vector<8x128xf32>
    %403 = tpu.matmul %402, %3, %cst_86 {dimension_numbers = #tpu.dot_dimension_numbers<[1], [0], [0], [1], [0, 0, 1, 1], [], []>} : vector<8x32xbf16>, vector<32x128xbf16>, vector<8x128xf32> -> vector<8x128xf32>
    %404 = arith.truncf %372 : vector<8x32xf32> to vector<8x32xbf16>
    %cst_87 = arith.constant dense<0.000000e+00> : vector<8x128xf32>
    %405 = tpu.matmul %404, %4, %cst_87 {dimension_numbers = #tpu.dot_dimension_numbers<[1], [0], [0], [1], [0, 0, 1, 1], [], []>} : vector<8x32xbf16>, vector<32x128xbf16>, vector<8x128xf32> -> vector<8x128xf32>
    %406 = arith.addf %403, %405 : vector<8x128xf32>
    %407 = vector.broadcast %5 : vector<1x128xf32> to vector<8x128xf32>
    %408 = arith.addf %406, %407 : vector<8x128xf32>
    %409 = math.tanh %408 : vector<8x128xf32>
    %410 = arith.negf %408 : vector<8x128xf32>
    %411 = math.exp %410 : vector<8x128xf32>
    %cst_88 = arith.constant 1.000000e+00 : f32
    %412 = vector.broadcast %cst_88 : f32 to vector<8x128xf32>
    %413 = arith.addf %412, %411 : vector<8x128xf32>
    %414 = arith.divf %412, %413 : vector<8x128xf32>
    %415 = arith.select %11, %409, %414 : vector<8x128xi1>, vector<8x128xf32>
    %416 = vector.extract_strided_slice %415 {offsets = [0, 0], sizes = [8, 32], strides = [1, 1]} : vector<8x128xf32> to vector<8x32xf32>
    %417 = vector.extract_strided_slice %415 {offsets = [0, 32], sizes = [8, 32], strides = [1, 1]} : vector<8x128xf32> to vector<8x32xf32>
    %418 = vector.extract_strided_slice %415 {offsets = [0, 64], sizes = [8, 32], strides = [1, 1]} : vector<8x128xf32> to vector<8x32xf32>
    %419 = vector.extract_strided_slice %415 {offsets = [0, 96], sizes = [8, 32], strides = [1, 1]} : vector<8x128xf32> to vector<8x32xf32>
    %420 = arith.mulf %417, %370 : vector<8x32xf32>
    %421 = arith.mulf %416, %418 : vector<8x32xf32>
    %422 = arith.addf %420, %421 : vector<8x32xf32>
    %423 = math.tanh %422 : vector<8x32xf32>
    %424 = arith.mulf %419, %423 : vector<8x32xf32>
    %425 = arith.index_cast %c7_i32 : i32 to index
    %c0_89 = arith.constant 0 : index
    %c0_90 = arith.constant 0 : index
    %426 = vector.load %arg18[%425, %c0_89, %c0_90] : memref<8x8x32xf32, #tpu.memory_space<vmem>>, vector<1x8x32xf32>
    %427 = vector.shape_cast %426 : vector<1x8x32xf32> to vector<8x32xf32>
    %428 = vector.shape_cast %424 : vector<8x32xf32> to vector<1x8x32xf32>
    tpu.vector_store %arg18[%425, %c0_89, %c0_90], %428 {strides = array<i32>} : memref<8x8x32xf32, #tpu.memory_space<vmem>>, vector<1x8x32xf32>,
    %c8_i32 = arith.constant 8 : i32
    %c0_91 = arith.constant 0 : index
    %c0_92 = arith.constant 0 : index
    %c0_93 = arith.constant 0 : index
    %429 = vector.load %arg18[%c0_91, %c0_92, %c0_93] : memref<8x8x32xf32, #tpu.memory_space<vmem>>, vector<8x8x32xf32>
    %c0_94 = arith.constant 0 : index
    %c0_95 = arith.constant 0 : index
    %c0_96 = arith.constant 0 : index
    %430 = vector.load %arg11[%c0_94, %c0_95, %c0_96] : memref<1x1x32xf32, #tpu.memory_space<vmem>>, vector<1x1x32xf32>
    %431 = vector.broadcast %430 : vector<1x1x32xf32> to vector<8x8x32xf32>
    %432 = arith.mulf %429, %431 : vector<8x8x32xf32>
    %cst_97 = arith.constant dense<0.000000e+00> : vector<8x8xf32>
    %433 = vector.multi_reduction <add>, %432, %cst_97 [2] : vector<8x8x32xf32> to vector<8x8xf32>
    %434 = vector.shape_cast %433 : vector<8x8xf32> to vector<8x8x1xf32>
    %c0_98 = arith.constant 0 : index
    %c0_99 = arith.constant 0 : index
    %435 = vector.load %arg12[%c0_98, %c0_99] : memref<1x1xf32, #tpu.memory_space<vmem>>, vector<1x1xf32>
    %436 = vector.shape_cast %435 : vector<1x1xf32> to vector<1x1x1xf32>
    %437 = vector.broadcast %436 : vector<1x1x1xf32> to vector<8x8x1xf32>
    %438 = arith.addf %434, %437 : vector<8x8x1xf32>
    %439 = arith.negf %438 : vector<8x8x1xf32>
    %440 = math.exp %439 : vector<8x8x1xf32>
    %cst_100 = arith.constant 1.000000e+00 : f32
    %441 = vector.broadcast %cst_100 : f32 to vector<8x8x1xf32>
    %442 = arith.addf %441, %440 : vector<8x8x1xf32>
    %443 = arith.divf %441, %442 : vector<8x8x1xf32>
    %cst_101 = arith.constant 1.000000e+00 : f32
    %444 = vector.broadcast %cst_101 : f32 to vector<8x8x1xf32>
    %445 = arith.subf %444, %443 : vector<8x8x1xf32>
    %c0_102 = arith.constant 0 : index
    %c0_103 = arith.constant 0 : index
    %c0_104 = arith.constant 0 : index
    %446 = vector.load %arg1[%c0_102, %c0_103, %c0_104] : memref<8x8x2xf32, #tpu.memory_space<vmem>>, vector<8x8x2xf32>
    %447 = vector.extract_strided_slice %446 {offsets = [0, 0, 1], sizes = [8, 8, 1], strides = [1, 1, 1]} : vector<8x8x2xf32> to vector<8x8x1xf32>
    %448 = arith.addf %445, %447 : vector<8x8x1xf32>
    %449 = vector.extract_strided_slice %446 {offsets = [0, 0, 0], sizes = [8, 8, 1], strides = [1, 1, 1]} : vector<8x8x2xf32> to vector<8x8x1xf32>
    %450 = arith.addf %443, %449 : vector<8x8x1xf32>
    %451 = arith.cmpf ogt, %448, %450 : vector<8x8x1xf32>
    %452 = arith.extui %451 : vector<8x8x1xi1> to vector<8x8x1xi32>
    %453 = arith.sitofp %452 : vector<8x8x1xi32> to vector<8x8x1xf32>
    %c0_105 = arith.constant 0 : index
    %c0_106 = arith.constant 0 : index
    %c0_107 = arith.constant 0 : index
    %454 = vector.load %arg2[%c0_105, %c0_106, %c0_107] : memref<8x8x1xf32, #tpu.memory_space<vmem>>, vector<8x8x1xf32>
    %455 = arith.mulf %453, %454 : vector<8x8x1xf32>
    %cst_108 = arith.constant 1.000000e+00 : f32
    %456 = vector.broadcast %cst_108 : f32 to vector<8x8x1xf32>
    %457 = arith.subf %456, %453 : vector<8x8x1xf32>
    %458 = arith.mulf %457, %454 : vector<8x8x1xf32>
    %459 = vector.broadcast %455 : vector<8x8x1xf32> to vector<8x8x32xf32>
    %460 = arith.mulf %459, %429 : vector<8x8x32xf32>
    %cst_109 = arith.constant dense<0.000000e+00> : vector<8x32xf32>
    %461 = vector.multi_reduction <add>, %460, %cst_109 [0] : vector<8x8x32xf32> to vector<8x32xf32>
    %462 = vector.broadcast %458 : vector<8x8x1xf32> to vector<8x8x32xf32>
    %463 = arith.mulf %462, %429 : vector<8x8x32xf32>
    %cst_110 = arith.constant dense<0.000000e+00> : vector<8x32xf32>
    %464 = vector.multi_reduction <add>, %463, %cst_110 [0] : vector<8x8x32xf32> to vector<8x32xf32>
    %cst_111 = arith.constant dense<0.000000e+00> : vector<8x1xf32>
    %465 = vector.multi_reduction <add>, %455, %cst_111 [0] : vector<8x8x1xf32> to vector<8x1xf32>
    %cst_112 = arith.constant dense<0.000000e+00> : vector<8x1xf32>
    %466 = vector.multi_reduction <add>, %458, %cst_112 [0] : vector<8x8x1xf32> to vector<8x1xf32>
    %c0_113 = arith.constant 0 : index
    %c0_114 = arith.constant 0 : index
    %467 = vector.load %arg3[%c0_113, %c0_114] : memref<8x1xf32, #tpu.memory_space<vmem>>, vector<8x1xf32>
    %c0_115 = arith.constant 0 : index
    %c0_116 = arith.constant 0 : index
    %468 = vector.load %arg4[%c0_115, %c0_116] : memref<8x5xf32, #tpu.memory_space<vmem>>, vector<8x5xf32>
    %c0_117 = arith.constant 0 : index
    %c0_118 = arith.constant 0 : index
    %469 = vector.load %arg13[%c0_117, %c0_118] : memref<32x32xf32, #tpu.memory_space<vmem>>, vector<32x32xf32>
    %c0_119 = arith.constant 0 : index
    %c0_120 = arith.constant 0 : index
    %470 = vector.load %arg14[%c0_119, %c0_120] : memref<1x32xf32, #tpu.memory_space<vmem>>, vector<1x32xf32>
    %c0_121 = arith.constant 0 : index
    %c0_122 = arith.constant 0 : index
    %471 = vector.load %arg15[%c0_121, %c0_122] : memref<32x5xf32, #tpu.memory_space<vmem>>, vector<32x5xf32>
    %c0_123 = arith.constant 0 : index
    %c0_124 = arith.constant 0 : index
    %472 = vector.load %arg16[%c0_123, %c0_124] : memref<1x5xf32, #tpu.memory_space<vmem>>, vector<1x5xf32>
    %cst_125 = arith.constant 0.000000e+00 : f32
    %473 = vector.broadcast %cst_125 : f32 to vector<8x1xf32>
    %474 = arith.cmpf oeq, %465, %473 : vector<8x1xf32>
    %475 = arith.extui %474 : vector<8x1xi1> to vector<8x1xi32>
    %476 = arith.sitofp %475 : vector<8x1xi32> to vector<8x1xf32>
    %477 = arith.addf %465, %476 : vector<8x1xf32>
    %cst_126 = arith.constant dense<0.000000e+00> : vector<8x32xf32>
    %478 = tpu.matmul %461, %469, %cst_126 {dimension_numbers = #tpu.dot_dimension_numbers<[1], [0], [0], [1], [0, 0, 1, 1], [], []>} : vector<8x32xf32>, vector<32x32xf32>, vector<8x32xf32> -> vector<8x32xf32>
    %cst_127 = arith.constant 8.000000e+00 : f32
    %479 = vector.broadcast %cst_127 : f32 to vector<1x32xf32>
    %480 = arith.mulf %479, %470 : vector<1x32xf32>
    %481 = vector.broadcast %480 : vector<1x32xf32> to vector<8x32xf32>
    %482 = arith.addf %478, %481 : vector<8x32xf32>
    %483 = vector.broadcast %477 : vector<8x1xf32> to vector<8x32xf32>
    %484 = arith.divf %482, %483 : vector<8x32xf32>
    %cst_128 = arith.constant dense<0.000000e+00> : vector<8x5xf32>
    %485 = tpu.matmul %484, %471, %cst_128 {dimension_numbers = #tpu.dot_dimension_numbers<[1], [0], [0], [1], [0, 0, 1, 1], [], []>} : vector<8x32xf32>, vector<32x5xf32>, vector<8x5xf32> -> vector<8x5xf32>
    %486 = vector.broadcast %472 : vector<1x5xf32> to vector<8x5xf32>
    %487 = arith.addf %485, %486 : vector<8x5xf32>
    %cst_129 = arith.constant dense<0xFF800000> : vector<8xf32>
    %488 = vector.multi_reduction <maximumf>, %487, %cst_129 [1] : vector<8x5xf32> to vector<8xf32>
    %cst_130 = arith.constant 0xFF800000 : f32
    %489 = vector.broadcast %cst_130 : f32 to vector<8xf32>
    %490 = arith.maximumf %489, %488 : vector<8xf32>
    %491 = vector.shape_cast %490 : vector<8xf32> to vector<8x1xf32>
    %492 = vector.broadcast %491 : vector<8x1xf32> to vector<8x5xf32>
    %493 = arith.subf %487, %492 : vector<8x5xf32>
    %494 = math.exp %493 : vector<8x5xf32>
    %cst_131 = arith.constant dense<0.000000e+00> : vector<8xf32>
    %495 = vector.multi_reduction <add>, %494, %cst_131 [1] : vector<8x5xf32> to vector<8xf32>
    %496 = vector.shape_cast %495 : vector<8xf32> to vector<8x1xf32>
    %497 = math.log %496 : vector<8x1xf32>
    %498 = vector.broadcast %497 : vector<8x1xf32> to vector<8x5xf32>
    %499 = arith.subf %493, %498 : vector<8x5xf32>
    %cst_132 = arith.constant 0.000000e+00 : f32
    %500 = vector.broadcast %cst_132 : f32 to vector<8x1xf32>
    %501 = arith.cmpf oeq, %466, %500 : vector<8x1xf32>
    %502 = arith.extui %501 : vector<8x1xi1> to vector<8x1xi32>
    %503 = arith.sitofp %502 : vector<8x1xi32> to vector<8x1xf32>
    %504 = arith.addf %466, %503 : vector<8x1xf32>
    %cst_133 = arith.constant dense<0.000000e+00> : vector<8x32xf32>
    %505 = tpu.matmul %464, %469, %cst_133 {dimension_numbers = #tpu.dot_dimension_numbers<[1], [0], [0], [1], [0, 0, 1, 1], [], []>} : vector<8x32xf32>, vector<32x32xf32>, vector<8x32xf32> -> vector<8x32xf32>
    %cst_134 = arith.constant 8.000000e+00 : f32
    %506 = vector.broadcast %cst_134 : f32 to vector<1x32xf32>
    %507 = arith.mulf %506, %470 : vector<1x32xf32>
    %508 = vector.broadcast %507 : vector<1x32xf32> to vector<8x32xf32>
    %509 = arith.addf %505, %508 : vector<8x32xf32>
    %510 = vector.broadcast %504 : vector<8x1xf32> to vector<8x32xf32>
    %511 = arith.divf %509, %510 : vector<8x32xf32>
    %cst_135 = arith.constant dense<0.000000e+00> : vector<8x5xf32>
    %512 = tpu.matmul %511, %471, %cst_135 {dimension_numbers = #tpu.dot_dimension_numbers<[1], [0], [0], [1], [0, 0, 1, 1], [], []>} : vector<8x32xf32>, vector<32x5xf32>, vector<8x5xf32> -> vector<8x5xf32>
    %513 = vector.broadcast %472 : vector<1x5xf32> to vector<8x5xf32>
    %514 = arith.addf %512, %513 : vector<8x5xf32>
    %cst_136 = arith.constant dense<0xFF800000> : vector<8xf32>
    %515 = vector.multi_reduction <maximumf>, %514, %cst_136 [1] : vector<8x5xf32> to vector<8xf32>
    %cst_137 = arith.constant 0xFF800000 : f32
    %516 = vector.broadcast %cst_137 : f32 to vector<8xf32>
    %517 = arith.maximumf %516, %515 : vector<8xf32>
    %518 = vector.shape_cast %517 : vector<8xf32> to vector<8x1xf32>
    %519 = vector.broadcast %518 : vector<8x1xf32> to vector<8x5xf32>
    %520 = arith.subf %514, %519 : vector<8x5xf32>
    %521 = math.exp %520 : vector<8x5xf32>
    %cst_138 = arith.constant dense<0.000000e+00> : vector<8xf32>
    %522 = vector.multi_reduction <add>, %521, %cst_138 [1] : vector<8x5xf32> to vector<8xf32>
    %523 = vector.shape_cast %522 : vector<8xf32> to vector<8x1xf32>
    %524 = math.log %523 : vector<8x1xf32>
    %525 = vector.broadcast %524 : vector<8x1xf32> to vector<8x5xf32>
    %526 = arith.subf %520, %525 : vector<8x5xf32>
    %527 = arith.mulf %499, %468 : vector<8x5xf32>
    %cst_139 = arith.constant dense<0.000000e+00> : vector<8xf32>
    %528 = vector.multi_reduction <add>, %527, %cst_139 [1] : vector<8x5xf32> to vector<8xf32>
    %529 = vector.shape_cast %528 : vector<8xf32> to vector<8x1xf32>
    %cst_140 = arith.constant 0.000000e+00 : f32
    %530 = vector.broadcast %cst_140 : f32 to vector<8x1xf32>
    %531 = arith.subf %530, %529 : vector<8x1xf32>
    %532 = arith.mulf %467, %531 : vector<8x1xf32>
    %533 = vector.shape_cast %532 : vector<8x1xf32> to vector<1x8x1xf32>
    %cst_141 = arith.constant dense<0.000000e+00> : vector<1xf32>
    %534 = vector.multi_reduction <add>, %533, %cst_141 [1, 2] : vector<1x8x1xf32> to vector<1xf32>
    %535 = vector.shape_cast %534 : vector<1xf32> to vector<1x1x1xf32>
    %536 = vector.extract %535[0, 0, 0] : f32 from vector<1x1x1xf32>
    %cst_142 = arith.constant 5.000000e-01 : f32
    %537 = arith.mulf %536, %cst_142 : f32
    %cst_143 = arith.constant 9.99999997E-7 : f32
    %538 = vector.broadcast %cst_143 : f32 to vector<8x8x1xf32>
    %539 = arith.addf %443, %538 : vector<8x8x1xf32>
    %540 = math.log %539 : vector<8x8x1xf32>
    %cst_144 = arith.constant 0.000000e+00 : f32
    %541 = vector.broadcast %cst_144 : f32 to vector<8x8x1xf32>
    %542 = arith.subf %541, %540 : vector<8x8x1xf32>
    %543 = vector.shape_cast %467 : vector<8x1xf32> to vector<1x8x1xf32>
    %544 = vector.broadcast %543 : vector<1x8x1xf32> to vector<8x8x1xf32>
    %545 = arith.mulf %544, %542 : vector<8x8x1xf32>
    %546 = vector.shape_cast %545 : vector<8x8x1xf32> to vector<1x8x8x1xf32>
    %cst_145 = arith.constant dense<0.000000e+00> : vector<1xf32>
    %547 = vector.multi_reduction <add>, %546, %cst_145 [1, 2, 3] : vector<1x8x8x1xf32> to vector<1xf32>
    %548 = vector.shape_cast %547 : vector<1xf32> to vector<1x1x1x1xf32>
    %549 = vector.extract %548[0, 0, 0, 0] : f32 from vector<1x1x1x1xf32>
    %cst_146 = arith.constant 6.250000e-02 : f32
    %550 = arith.mulf %549, %cst_146 : f32
    %551 = math.exp %526 : vector<8x5xf32>
    %552 = arith.mulf %526, %551 : vector<8x5xf32>
    %cst_147 = arith.constant dense<0.000000e+00> : vector<8xf32>
    %553 = vector.multi_reduction <add>, %552, %cst_147 [1] : vector<8x5xf32> to vector<8xf32>
    %554 = vector.shape_cast %553 : vector<8xf32> to vector<8x1xf32>
    %555 = arith.mulf %467, %554 : vector<8x1xf32>
    %556 = vector.shape_cast %555 : vector<8x1xf32> to vector<1x8x1xf32>
    %cst_148 = arith.constant dense<0.000000e+00> : vector<1xf32>
    %557 = vector.multi_reduction <add>, %556, %cst_148 [1, 2] : vector<1x8x1xf32> to vector<1xf32>
    %558 = vector.shape_cast %557 : vector<1xf32> to vector<1x1x1xf32>
    %559 = vector.extract %558[0, 0, 0] : f32 from vector<1x1x1xf32>
    %cst_149 = arith.constant 5.000000e-01 : f32
    %560 = arith.mulf %559, %cst_149 : f32
    %561 = arith.addf %537, %550 : f32
    %562 = arith.addf %561, %560 : f32
    %563 = vector.broadcast %562 : f32 to vector<1x1xf32>
    %c0_150 = arith.constant 0 : index
    %c0_151 = arith.constant 0 : index
    %564 = vector.load %arg17[%c0_150, %c0_151] : memref<1x1xf32, #tpu.memory_space<vmem>>, vector<1x1xf32>
    tpu.vector_store %arg17[%c0_150, %c0_151], %563 {strides = array<i32>} : memref<1x1xf32, #tpu.memory_space<vmem>>, vector<1x1xf32>,
    return
  }
}

</mosaic_0001>

<bundles_post_ra>
// kernel: model_forward.1
= control target key start
LH: loop header
LB: loop body
LE: loop exit
PB: predicated region body
PF: predicated region fallthrough
CT: control target
= control target key end

     0   :  { %s4671_s0 = inlined_call_operand.vmem [shape: bf16[8,8,32], index: 0, kind: input, shape index: {}]   ;;  %s4672_s1 = inlined_call_operand.vmem [shape: f32[8,8,2], index: 1, kind: input, shape index: {}]   ;;  %s4673_s2 = inlined_call_operand.vmem [shape: f32[8,8,1], index: 2, kind: input, shape index: {}]   ;;  %s4674_s3 = inlined_call_operand.vmem [shape: f32[8,1], index: 3, kind: input, shape index: {}]   ;;  %s4675_s4 = inlined_call_operand.vmem [shape: f32[8,5], index: 4, kind: input, shape index: {}]   ;;  %s4676_s5 = inlined_call_operand.vmem [shape: bf16[32,128], index: 5, kind: input, shape index: {}]   ;;  %s4677_s6 = inlined_call_operand.vmem [shape: bf16[32,128], index: 6, kind: input, shape index: {}]   ;;  %s4678_s7 = inlined_call_operand.vmem [shape: f32[1,128], index: 7, kind: input, shape index: {}]   ;;  %s4679_s8 = inlined_call_operand.vmem [shape: bf16[32,128], index: 8, kind: input, shape index: {}]   ;;  %s4680_s9 = inlined_call_operand.vmem [shape: bf16[32,128], index: 9, kind: input, shape index: {}]   ;;  %s4681_s10 = inlined_call_operand.vmem [shape: f32[1,128], index: 10, kind: input, shape index: {}]   ;;  %s4682_s11 = inlined_call_operand.vmem [shape: f32[1,1,32], index: 11, kind: input, shape index: {}]   ;;  %s4683_s12 = inlined_call_operand.<no memory space> [shape: f32[1,1], index: 12, kind: input, shape index: {}]   ;;  %s4684_s13 = inlined_call_operand.vmem [shape: f32[32,32], index: 13, kind: input, shape index: {}]   ;;  %s4685_s14 = inlined_call_operand.vmem [shape: f32[1,32], index: 14, kind: input, shape index: {}]   ;;  %s4686_s15 = inlined_call_operand.vmem [shape: f32[32,5], index: 15, kind: input, shape index: {}]   ;;  %s4687_s16 = inlined_call_operand.vmem [shape: f32[1,5], index: 16, kind: input, shape index: {}]   ;;  %s4688_s17 = inlined_call_operand.hbm [shape: f32[1,1], index: 17, kind: output, shape index: {}]  }
   0x1   :  { %4691 = sst [smem:[#allocation7_spill]] %s4671_s0  ;;  %v22_v0 = vstv %s4683_s12 }
   0x2   :  { %4692 = sst [smem:[#allocation8_spill]] %s4672_s1  ;;  %23 = vst [vmem:[#allocation3] sm:$0x1] %v22_v0 }
   0x3   :  { %v3784_v1 = vld [vmem:[%s4677_s6] sm:$0xff]   ;;  %v3680_v2 = vmov 0.0   ;;  %v3797_v4 = vld [vmem:[%s4677_s6 + $0x8] sm:$0xff]   ;;  %vm3681_vm0 = vmmov 0   ;;  %v3682_v6 = vmov 0   ;;  %s4693_s20 = sld [smem:[#allocation7_spill]] }
   0x4   :  { %3108 = vmatprep.subr.bf16.mxu0 %v3680_v2  ;;  %3116 = vmatprep.subr.bf16.mxu1 %v3680_v2  ;;  %v3791_v3 = vld [vmem:[%s4676_s5] sm:$0xff]   ;;  %v3806_v5 = vld [vmem:[%s4676_s5 + $0x8] sm:$0xff]   ;;  %vm96_vm1 = vcmask 261120  }
   0x5   :  { %3109 = vmatpush3.bf16.msra.mxu0 %v3784_v1  ;;  %3112 = vmatprep.mubr.msk.bf16.mxu0 %vm3681_vm0, %v3680_v2 }
   0x6   :  { %3117 = vmatpush3.bf16.msra.mxu1 %v3791_v3  ;;  %3110 = vmatprep.subr.bf16.mxu0 %v3680_v2 }
   0x7   :  { %3118 = vmatprep.subr.bf16.mxu1 %v3680_v2  ;;  %3120 = vmatprep.mubr.msk.bf16.mxu1 %vm3681_vm0, %v3680_v2 }
   0x8   :  { %3446 = vset.pattern.permute.xlu1 %v3682_v6  ;;  %3447 = vset.pattern.permute.xlu0 %v3682_v6 }
   0x9   :  { %3111 = vmatpush3.bf16.msra.mxu0 %v3797_v4  ;;  %v83_v7 = vld [vmem:[%s4693_s20] sm:$0xf] }
   0xa   :  { %3119 = vmatpush3.bf16.msra.mxu1 %v3806_v5  ;;  %3124 = vmatprep.subr.bf16.mxu0 %v3680_v2 }
   0xb   :  { %24 = vsyncpa [#allocation5], 0  ;;  %3132 = vmatprep.subr.bf16.mxu1 %v3680_v2  ;;  %v3826_v9 = vld [vmem:[%s4678_s7] ss:$0 sm:$0xff]  ;;  %v78_v21 = vlaneseq  ;;  %s3683_s23 = smov 64   ;;  %s3684_s24 = smov 32  }
   0xc   :  { %3113 = vmatmul.mubr.bf16.vlgmr.msra.gmra.mrb[0].mxu0 %v3682_v6  ;;  %v3844_v33 = vld [vmem:[%s4680_s9] sm:$0xff]   ;;  %v3855_v35 = vld [vmem:[%s4680_s9 + $0x8] sm:$0xff]   ;;  %vm2390_vm7 = vcmask 7168  }
   0xd   :  { %3121 = vmatmul.mubr.msk.bf16.vlgmr.msra.gmra.mrb[0].mxu1 %vm96_vm1, %v83_v7  ;;  %3128 = vmatprep.mubr.msk.bf16.mxu0 %vm3681_vm0, %v3680_v2  ;;  %v79_v23 = vand.u32 127, %v78_v21  ;;  %v3849_v34 = vld [vmem:[%s4679_s8] sm:$0xff]   ;;  %v3861_v36 = vld [vmem:[%s4679_s8 + $0x8] sm:$0xff]  }
   0xe   :  { %3136 = vmatprep.mubr.msk.bf16.mxu1 %vm3681_vm0, %v3680_v2  ;;  %3125 = vmatpush3.bf16.msra.mxu0 %v3844_v33  ;;  %v2918_v46 = vld [vmem:[%s4693_s20 + $0x4] sm:$0xf]  ;;  %v3904_v47 = vld [vmem:[%s4681_s10] ss:$0 sm:$0xff] }
   0xf   :  { %vm80_vm2 = vcmp.ge.s32.totalorder %v79_v23, 64  ;;  %vm81_vm3 = vcmp.lt.s32.totalorder %v79_v23, 96  ;;  %3133 = vmatpush3.bf16.msra.mxu1 %v3849_v34  ;;  %3126 = vmatprep.subr.bf16.mxu0 %v3680_v2 }
  0x10   :  { %vm3830_vm4 = vmand %vm80_vm2, %vm81_vm3  ;;  %3134 = vmatprep.subr.bf16.mxu1 %v3680_v2  ;;  %vm2603_vm2 = vcmask 39936  }
  0x12   :  { %3127 = vmatpush3.bf16.msra.mxu0 %v3855_v35 }
  0x13   :  { %3135 = vmatpush3.bf16.msra.mxu1 %v3861_v36  ;;  %3140 = vmatprep.subr.bf16.mxu0 %v3680_v2 }
  0x14   :  { %3148 = vmatprep.subr.bf16.mxu1 %v3680_v2 }
  0x15   :  { %3129 = vmatmul.mubr.bf16.vlgmr.msra.gmra.mrb[4].mxu0 %v3682_v6 }
  0x16   :  { %3141 = vmatpush3.bf16.msra.mxu0 %v3784_v1  ;;  %3144 = vmatprep.mubr.msk.bf16.mxu0 %vm3681_vm0, %v3680_v2 }
  0x17   :  { %3142 = vmatprep.subr.bf16.mxu0 %v3680_v2 }
  0x1a   :  { %3143 = vmatpush3.bf16.msra.mxu0 %v3797_v4 }
  0x1b   :  { %3156 = vmatprep.subr.bf16.mxu0 %v3680_v2 }
  0xdf   :  { %v134_v8 = vpop.f32.mrb[0].mxu0 }
  0xe0   :  { %v189_v10 = vpop.f32.mrb[0].mxu1  ;;  %v3114_v11 = vpop.f32.mrb[1].mxu0 }
  0xe1   :  { %v190_v12 = vadd.f32 %v189_v10, %v134_v8  ;;  %v3122_v13 = vpop.f32.mrb[1].mxu1  ;;  %v137_v14 = vpop.f32.mrb[2].mxu0 }
  0xe2   :  { %v192_v15 = vpop.f32.mrb[2].mxu1  ;;  %v3115_v16 = vpop.f32.mrb[3].mxu0 }
  0xe3   :  { %v201_v17 = vadd.f32 %v3826_v9, %v190_v12  ;;  %v3123_v18 = vpop.f32.mrb[3].mxu1 }
  0xe5   :  { %v2910_v19 = vmul.f32 -1.442695, %v201_v17 }
  0xe7   :  { %3456 = vpow2.f32 %v2910_v19 }
  0xe8   :  { %3458 = vtanh.f32 %v201_v17  ;;  %v274_v41 = vpop.f32.mrb[4].mxu0 }
  0xe9   :  { %v3130_v42 = vpop.f32.mrb[5].mxu0 }
  0xea   :  { %v277_v43 = vpop.f32.mrb[6].mxu0 }
  0xeb   :  { %v3131_v44 = vpop.f32.mrb[7].mxu0 }
  0xec   :  { %v2925_v44 = vld [vmem:[%s4693_s20 + $0x8] sm:$0xf] }
  0xf1   :  { %v3457_v20 = vpop.eup %3456 }
  0xf2   :  { %v206_v22 = vadd.f32 1.0, %v3457_v20  ;;  %v3459_v25 = vpop.eup %3458 }
  0xf4   :  { %3460 = vrcp.f32 %v206_v22 }
  0xfe   :  { %v3461_v26 = vpop.eup %3460 }
  0xff   :  { %v209_v27 = vsel %vm3830_vm4, %v3459_v25, %v3461_v26 }
 0x100   :  { %212 = vrot.lane.b32.xlu0 %v209_v27, %s3683_s23  ;;  %v210_v30 = vmul.f32 0.0, %v209_v27 }
 0x172   :  { %v213_v28 = vpop.permute.xlu0 %212 }
 0x173   :  { %v215_v29 = vmul.f32 %v213_v28, %v209_v27 }
 0x175   :  { %217 = vrot.lane.b32.xlu0 %v215_v29, %s3684_s24 }
 0x1e7   :  { %v218_v31 = vpop.permute.xlu0 %217 }
 0x1e8   :  { %v3838_v32 = vadd.f32 %v218_v31, %v210_v30 }
 0x1ea   :  { %3462 = vtanh.f32 %v3838_v32 }
 0x1f4   :  { %v3463_v37 = vpop.eup %3462 }
 0x1f5   :  { %223 = vrot.lane.b32.xlu1 %v3463_v37, %s3683_s23 }
 0x267   :  { %v224_v38 = vpop.permute.xlu1 %223 }
 0x268   :  { %v226_v39 = vmul.f32 %v224_v38, %v209_v27 }
 0x26a   :  { %v227_v40 = vpack.c.bf16 %v226_v39, %v226_v39 }
 0x26c   :  { %281 = vrot.lane.b32.xlu1 %v227_v40, %s3684_s24 }
 0x2de   :  { %v282_v45 = vpop.permute.xlu1 %281 }
 0x2df   :  { %3137 = vmatmul.mubr.msk.bf16.vlgmr.msra.gmra.mrb[4].mxu1 %vm96_vm1, %v282_v45  ;;  %3145 = vmatmul.mubr.msk.bf16.vlgmr.msra.gmra.mrb[8].mxu0 %vm96_vm1, %v282_v45 }
 0x2e0   :  { %3149 = vmatpush3.bf16.msra.mxu1 %v3791_v3  ;;  %3152 = vmatprep.mubr.msk.bf16.mxu1 %vm3681_vm0, %v3680_v2 }
 0x2e1   :  { %3150 = vmatprep.subr.bf16.mxu1 %v3680_v2  ;;  %3157 = vmatpush3.bf16.msra.mxu0 %v3844_v33 }
 0x2e2   :  { %3158 = vmatprep.subr.bf16.mxu0 %v3680_v2  ;;  %3160 = vmatprep.mubr.msk.bf16.mxu0 %vm3681_vm0, %v3680_v2 }
 0x2e4   :  { %3151 = vmatpush3.bf16.msra.mxu1 %v3806_v5 }
 0x2e5   :  { %3159 = vmatpush3.bf16.msra.mxu0 %v3855_v35  ;;  %3164 = vmatprep.subr.bf16.mxu1 %v3680_v2 }
 0x2e6   :  { %3172 = vmatprep.subr.bf16.mxu0 %v3680_v2 }
 0x2e7   :  { %3153 = vmatmul.mubr.msk.bf16.vlgmr.msra.gmra.mrb[8].mxu1 %vm96_vm1, %v2918_v46 }
 0x2e8   :  { %3165 = vmatpush3.bf16.msra.mxu1 %v3849_v34  ;;  %3168 = vmatprep.mubr.msk.bf16.mxu1 %vm3681_vm0, %v3680_v2 }
 0x2e9   :  { %3166 = vmatprep.subr.bf16.mxu1 %v3680_v2 }
 0x2ec   :  { %3167 = vmatpush3.bf16.msra.mxu1 %v3861_v36 }
 0x2ed   :  { %3180 = vmatprep.subr.bf16.mxu1 %v3680_v2 }
 0x3b2   :  { %v332_v48 = vpop.f32.mrb[4].mxu1  ;;  %v411_v49 = vpop.f32.mrb[8].mxu0 }
 0x3b3   :  { %v333_v50 = vadd.f32 %v332_v48, %v274_v41  ;;  %v3138_v51 = vpop.f32.mrb[5].mxu1  ;;  %v3146_v52 = vpop.f32.mrb[9].mxu0 }
 0x3b4   :  { %v335_v53 = vpop.f32.mrb[6].mxu1  ;;  %v414_v54 = vpop.f32.mrb[10].mxu0 }
 0x3b5   :  { %v344_v55 = vadd.f32 %v3904_v47, %v333_v50  ;;  %v3139_v56 = vpop.f32.mrb[7].mxu1  ;;  %v3147_v57 = vpop.f32.mrb[11].mxu0 }
 0x3b7   :  { %v2917_v58 = vmul.f32 -1.442695, %v344_v55 }
 0x3b9   :  { %3464 = vpow2.f32 %v2917_v58 }
 0x3ba   :  { %v454_v59 = vpop.f32.mrb[8].mxu1 }
 0x3bb   :  { %v455_v60 = vadd.f32 %v454_v59, %v411_v49  ;;  %v3154_v61 = vpop.f32.mrb[9].mxu1 }
 0x3bc   :  { %v457_v62 = vpop.f32.mrb[10].mxu1 }
 0x3bd   :  { %v460_v63 = vadd.f32 %v3826_v9, %v455_v60  ;;  %v3155_v0 = vpop.f32.mrb[11].mxu1 }
 0x3bf   :  { %v2921_v6 = vmul.f32 -1.442695, %v460_v63 }
 0x3c1   :  { %3466 = vpow2.f32 %v2921_v6 }
 0x3c2   :  { %3468 = vtanh.f32 %v344_v55 }
 0x3c3   :  { %v3465_v7 = vpop.eup %3464 }
 0x3c4   :  { %v349_v8 = vadd.f32 1.0, %v3465_v7 }
 0x3c6   :  { %3470 = vrcp.f32 %v349_v8 }
 0x3c7   :  { %3472 = vtanh.f32 %v460_v63 }
 0x3cb   :  { %v3467_v10 = vpop.eup %3466 }
 0x3cc   :  { %v465_v11 = vadd.f32 1.0, %v3467_v10  ;;  %v3469_v12 = vpop.eup %3468 }
 0x3ce   :  { %3474 = vrcp.f32 %v465_v11 }
 0x3d0   :  { %v3471_v13 = vpop.eup %3470 }
 0x3d1   :  { %v352_v14 = vsel %vm3830_vm4, %v3469_v12, %v3471_v13  ;;  %v3473_v15 = vpop.eup %3472 }
 0x3d2   :  { %355 = vrot.lane.b32.xlu0 %v352_v14, %s3683_s23  ;;  %v353_v23 = vmul.f32 0.0, %v352_v14 }
 0x3d8   :  { %v3475_v16 = vpop.eup %3474 }
 0x3d9   :  { %v468_v17 = vsel %vm3830_vm4, %v3473_v15, %v3475_v16 }
 0x3da   :  { %471 = vrot.lane.b32.xlu1 %v468_v17, %s3683_s23  ;;  %v469_v27 = vmul.f32 %v468_v17, %v3838_v32 }
 0x444   :  { %v356_v18 = vpop.permute.xlu0 %355 }
 0x445   :  { %v358_v19 = vmul.f32 %v356_v18, %v352_v14 }
 0x447   :  { %360 = vrot.lane.b32.xlu0 %v358_v19, %s3684_s24 }
 0x44c   :  { %v472_v20 = vpop.permute.xlu1 %471 }
 0x44d   :  { %v474_v22 = vmul.f32 %v472_v20, %v468_v17 }
 0x44f   :  { %476 = vrot.lane.b32.xlu1 %v474_v22, %s3684_s24 }
 0x4b9   :  { %v361_v25 = vpop.permute.xlu0 %360 }
 0x4ba   :  { %v3916_v26 = vadd.f32 %v361_v25, %v353_v23 }
 0x4bc   :  { %3476 = vtanh.f32 %v3916_v26 }
 0x4c1   :  { %v477_v28 = vpop.permute.xlu1 %476 }
 0x4c2   :  { %v3920_v29 = vadd.f32 %v477_v28, %v469_v27 }
 0x4c4   :  { %3478 = vtanh.f32 %v3920_v29 }
 0x4c6   :  { %v3477_v30 = vpop.eup %3476 }
 0x4c7   :  { %366 = vrot.lane.b32.xlu0 %v3477_v30, %s3683_s23 }
 0x4ce   :  { %v3479_v31 = vpop.eup %3478 }
 0x4cf   :  { %482 = vrot.lane.b32.xlu1 %v3479_v31, %s3683_s23 }
 0x539   :  { %v367_v37 = vpop.permute.xlu0 %366 }
 0x53a   :  { %v3925_v38 = vmul.f32 %v367_v37, %v352_v14 }
 0x53c   :  { %v487_v39 = vpack.c.bf16 %v3925_v38, %v3925_v38 }
 0x53e   :  { %489 = vrot.lane.b32.xlu0 %v487_v39, %s3684_s24 }
 0x541   :  { %v483_v32 = vpop.permute.xlu1 %482 }
 0x542   :  { %v485_v40 = vmul.f32 %v483_v32, %v468_v17 }
 0x544   :  { %v486_v41 = vpack.c.bf16 %v485_v40, %v485_v40 }
 0x546   :  { %535 = vrot.lane.b32.xlu1 %v486_v41, %s3684_s24 }
 0x5b0   :  { %v490_v42 = vpop.permute.xlu0 %489 }
 0x5b1   :  { %3161 = vmatmul.mubr.msk.bf16.vlgmr.msra.gmra.mrb[12].mxu0 %vm96_vm1, %v490_v42 }
 0x5b2   :  { %3173 = vmatpush3.bf16.msra.mxu0 %v3784_v1  ;;  %3176 = vmatprep.mubr.msk.bf16.mxu0 %vm3681_vm0, %v3680_v2 }
 0x5b3   :  { %3174 = vmatprep.subr.bf16.mxu0 %v3680_v2 }
 0x5b6   :  { %3175 = vmatpush3.bf16.msra.mxu0 %v3797_v4 }
 0x5b7   :  { %3188 = vmatprep.subr.bf16.mxu0 %v3680_v2 }
 0x5b8   :  { %v536_v43 = vpop.permute.xlu1 %535 }
 0x5b9   :  { %3169 = vmatmul.mubr.msk.bf16.vlgmr.msra.gmra.mrb[12].mxu1 %vm96_vm1, %v536_v43  ;;  %3177 = vmatmul.mubr.msk.bf16.vlgmr.msra.gmra.mrb[16].mxu0 %vm96_vm1, %v536_v43 }
 0x5ba   :  { %3181 = vmatpush3.bf16.msra.mxu1 %v3791_v3  ;;  %3184 = vmatprep.mubr.msk.bf16.mxu1 %vm3681_vm0, %v3680_v2 }
 0x5bb   :  { %3182 = vmatprep.subr.bf16.mxu1 %v3680_v2  ;;  %3189 = vmatpush3.bf16.msra.mxu0 %v3844_v33 }
 0x5bc   :  { %3190 = vmatprep.subr.bf16.mxu0 %v3680_v2  ;;  %3192 = vmatprep.mubr.msk.bf16.mxu0 %vm3681_vm0, %v3680_v2 }
 0x5be   :  { %3183 = vmatpush3.bf16.msra.mxu1 %v3806_v5 }
 0x5bf   :  { %3191 = vmatpush3.bf16.msra.mxu0 %v3855_v35  ;;  %3196 = vmatprep.subr.bf16.mxu1 %v3680_v2 }
 0x5c0   :  { %3204 = vmatprep.subr.bf16.mxu0 %v3680_v2 }
 0x5c1   :  { %3185 = vmatmul.mubr.msk.bf16.vlgmr.msra.gmra.mrb[16].mxu1 %vm96_vm1, %v2925_v44 }
 0x5c2   :  { %3197 = vmatpush3.bf16.msra.mxu1 %v3849_v34  ;;  %3200 = vmatprep.mubr.msk.bf16.mxu1 %vm3681_vm0, %v3680_v2 }
 0x5c3   :  { %3198 = vmatprep.subr.bf16.mxu1 %v3680_v2 }
 0x5c6   :  { %3199 = vmatpush3.bf16.msra.mxu1 %v3861_v36 }
 0x5c7   :  { %3212 = vmatprep.subr.bf16.mxu1 %v3680_v2 }
 0x684   :  { %v528_v45 = vpop.f32.mrb[12].mxu0 }
 0x685   :  { %v3162_v46 = vpop.f32.mrb[13].mxu0 }
 0x686   :  { %v531_v48 = vpop.f32.mrb[14].mxu0 }
 0x687   :  { %v3163_v49 = vpop.f32.mrb[15].mxu0  ;;  %v2932_v48 = vld [vmem:[%s4693_s20 + $0xc] sm:$0xf] }
 0x68c   :  { %v574_v50 = vpop.f32.mrb[12].mxu1  ;;  %v648_v51 = vpop.f32.mrb[16].mxu0 }
 0x68d   :  { %v575_v52 = vadd.f32 %v574_v50, %v528_v45  ;;  %v3170_v53 = vpop.f32.mrb[13].mxu1  ;;  %v3178_v54 = vpop.f32.mrb[17].mxu0 }
 0x68e   :  { %v577_v55 = vpop.f32.mrb[14].mxu1  ;;  %v651_v56 = vpop.f32.mrb[18].mxu0 }
 0x68f   :  { %v580_v57 = vadd.f32 %v3904_v47, %v575_v52  ;;  %v3171_v58 = vpop.f32.mrb[15].mxu1  ;;  %v3179_v59 = vpop.f32.mrb[19].mxu0 }
 0x691   :  { %v2924_v60 = vmul.f32 -1.442695, %v580_v57 }
 0x693   :  { %3480 = vpow2.f32 %v2924_v60 }
 0x694   :  { %v691_v61 = vpop.f32.mrb[16].mxu1 }
 0x695   :  { %v692_v62 = vadd.f32 %v691_v61, %v648_v51  ;;  %v3186_v63 = vpop.f32.mrb[17].mxu1 }
 0x696   :  { %v694_v0 = vpop.f32.mrb[18].mxu1 }
 0x697   :  { %v697_v6 = vadd.f32 %v3826_v9, %v692_v62  ;;  %v3187_v7 = vpop.f32.mrb[19].mxu1 }
 0x699   :  { %v2928_v8 = vmul.f32 -1.442695, %v697_v6 }
 0x69b   :  { %3482 = vpow2.f32 %v2928_v8 }
 0x69c   :  { %3484 = vtanh.f32 %v580_v57 }
 0x69d   :  { %v3481_v10 = vpop.eup %3480 }
 0x69e   :  { %v585_v11 = vadd.f32 1.0, %v3481_v10 }
 0x6a0   :  { %3486 = vrcp.f32 %v585_v11 }
 0x6a1   :  { %3488 = vtanh.f32 %v697_v6 }
 0x6a5   :  { %v3483_v12 = vpop.eup %3482 }
 0x6a6   :  { %v702_v13 = vadd.f32 1.0, %v3483_v12  ;;  %v3485_v14 = vpop.eup %3484 }
 0x6a8   :  { %3490 = vrcp.f32 %v702_v13 }
 0x6aa   :  { %v3487_v15 = vpop.eup %3486 }
 0x6ab   :  { %v588_v16 = vsel %vm3830_vm4, %v3485_v14, %v3487_v15  ;;  %v3489_v17 = vpop.eup %3488 }
 0x6ac   :  { %591 = vrot.lane.b32.xlu0 %v588_v16, %s3683_s23  ;;  %v589_v27 = vmul.f32 %v588_v16, %v3916_v26 }
 0x6b2   :  { %v3491_v18 = vpop.eup %3490 }
 0x6b3   :  { %v705_v19 = vsel %vm3830_vm4, %v3489_v17, %v3491_v18 }
 0x6b4   :  { %708 = vrot.lane.b32.xlu1 %v705_v19, %s3683_s23  ;;  %v706_v31 = vmul.f32 %v705_v19, %v3920_v29 }
 0x71e   :  { %v592_v20 = vpop.permute.xlu0 %591 }
 0x71f   :  { %v594_v22 = vmul.f32 %v592_v20, %v588_v16 }
 0x721   :  { %596 = vrot.lane.b32.xlu0 %v594_v22, %s3684_s24 }
 0x726   :  { %v709_v23 = vpop.permute.xlu1 %708 }
 0x727   :  { %v711_v25 = vmul.f32 %v709_v23, %v705_v19 }
 0x729   :  { %713 = vrot.lane.b32.xlu1 %v711_v25, %s3684_s24 }
 0x793   :  { %v597_v28 = vpop.permute.xlu0 %596 }
 0x794   :  { %v3973_v30 = vadd.f32 %v597_v28, %v589_v27 }
 0x796   :  { %3492 = vtanh.f32 %v3973_v30 }
 0x79b   :  { %v714_v37 = vpop.permute.xlu1 %713 }
 0x79c   :  { %v3977_v39 = vadd.f32 %v714_v37, %v706_v31 }
 0x79e   :  { %3494 = vtanh.f32 %v3977_v39 }
 0x7a0   :  { %v3493_v32 = vpop.eup %3492 }
 0x7a1   :  { %602 = vrot.lane.b32.xlu0 %v3493_v32, %s3683_s23 }
 0x7a8   :  { %v3495_v40 = vpop.eup %3494 }
 0x7a9   :  { %719 = vrot.lane.b32.xlu1 %v3495_v40, %s3683_s23 }
 0x813   :  { %v603_v41 = vpop.permute.xlu0 %602 }
 0x814   :  { %v3982_v26 = vmul.f32 %v603_v41, %v588_v16 }
 0x816   :  { %v724_v42 = vpack.c.bf16 %v3982_v26, %v3982_v26 }
 0x818   :  { %726 = vrot.lane.b32.xlu0 %v724_v42, %s3684_s24 }
 0x81b   :  { %v720_v29 = vpop.permute.xlu1 %719 }
 0x81c   :  { %v722_v43 = vmul.f32 %v720_v29, %v705_v19 }
 0x81e   :  { %v723_v44 = vpack.c.bf16 %v722_v43, %v722_v43 }
 0x820   :  { %772 = vrot.lane.b32.xlu1 %v723_v44, %s3684_s24 }
 0x88a   :  { %v727_v45 = vpop.permute.xlu0 %726 }
 0x88b   :  { %3193 = vmatmul.mubr.msk.bf16.vlgmr.msra.gmra.mrb[20].mxu0 %vm96_vm1, %v727_v45 }
 0x88c   :  { %3205 = vmatpush3.bf16.msra.mxu0 %v3784_v1  ;;  %3208 = vmatprep.mubr.msk.bf16.mxu0 %vm3681_vm0, %v3680_v2 }
 0x88d   :  { %3206 = vmatprep.subr.bf16.mxu0 %v3680_v2 }
 0x890   :  { %3207 = vmatpush3.bf16.msra.mxu0 %v3797_v4 }
 0x891   :  { %3220 = vmatprep.subr.bf16.mxu0 %v3680_v2 }
 0x892   :  { %v773_v46 = vpop.permute.xlu1 %772 }
 0x893   :  { %3201 = vmatmul.mubr.msk.bf16.vlgmr.msra.gmra.mrb[20].mxu1 %vm96_vm1, %v773_v46  ;;  %3209 = vmatmul.mubr.msk.bf16.vlgmr.msra.gmra.mrb[24].mxu0 %vm96_vm1, %v773_v46 }
 0x894   :  { %3213 = vmatpush3.bf16.msra.mxu1 %v3791_v3  ;;  %3216 = vmatprep.mubr.msk.bf16.mxu1 %vm3681_vm0, %v3680_v2 }
 0x895   :  { %3214 = vmatprep.subr.bf16.mxu1 %v3680_v2  ;;  %3221 = vmatpush3.bf16.msra.mxu0 %v3844_v33 }
 0x896   :  { %3222 = vmatprep.subr.bf16.mxu0 %v3680_v2  ;;  %3224 = vmatprep.mubr.msk.bf16.mxu0 %vm3681_vm0, %v3680_v2 }
 0x898   :  { %3215 = vmatpush3.bf16.msra.mxu1 %v3806_v5 }
 0x899   :  { %3223 = vmatpush3.bf16.msra.mxu0 %v3855_v35  ;;  %3228 = vmatprep.subr.bf16.mxu1 %v3680_v2 }
 0x89a   :  { %3236 = vmatprep.subr.bf16.mxu0 %v3680_v2 }
 0x89b   :  { %3217 = vmatmul.mubr.msk.bf16.vlgmr.msra.gmra.mrb[24].mxu1 %vm96_vm1, %v2932_v48 }
 0x89c   :  { %3229 = vmatpush3.bf16.msra.mxu1 %v3849_v34  ;;  %3232 = vmatprep.mubr.msk.bf16.mxu1 %vm3681_vm0, %v3680_v2 }
 0x89d   :  { %3230 = vmatprep.subr.bf16.mxu1 %v3680_v2 }
 0x8a0   :  { %3231 = vmatpush3.bf16.msra.mxu1 %v3861_v36 }
 0x8a1   :  { %3244 = vmatprep.subr.bf16.mxu1 %v3680_v2 }
 0x95e   :  { %v765_v49 = vpop.f32.mrb[20].mxu0 }
 0x95f   :  { %v3194_v50 = vpop.f32.mrb[21].mxu0 }
 0x960   :  { %v768_v51 = vpop.f32.mrb[22].mxu0 }
 0x961   :  { %v3195_v52 = vpop.f32.mrb[23].mxu0 }
 0x962   :  { %v2939_v52 = vld [vmem:[%s4693_s20 + $0x10] sm:$0xf] }
 0x966   :  { %v811_v53 = vpop.f32.mrb[20].mxu1  ;;  %v885_v54 = vpop.f32.mrb[24].mxu0 }
 0x967   :  { %v812_v55 = vadd.f32 %v811_v53, %v765_v49  ;;  %v3202_v56 = vpop.f32.mrb[21].mxu1  ;;  %v3210_v57 = vpop.f32.mrb[25].mxu0 }
 0x968   :  { %v814_v58 = vpop.f32.mrb[22].mxu1  ;;  %v888_v59 = vpop.f32.mrb[26].mxu0 }
 0x969   :  { %v817_v60 = vadd.f32 %v3904_v47, %v812_v55  ;;  %v3203_v61 = vpop.f32.mrb[23].mxu1  ;;  %v3211_v62 = vpop.f32.mrb[27].mxu0 }
 0x96b   :  { %v2931_v63 = vmul.f32 -1.442695, %v817_v60 }
 0x96d   :  { %3496 = vpow2.f32 %v2931_v63 }
 0x96e   :  { %v928_v0 = vpop.f32.mrb[24].mxu1 }
 0x96f   :  { %v929_v6 = vadd.f32 %v928_v0, %v885_v54  ;;  %v3218_v7 = vpop.f32.mrb[25].mxu1 }
 0x970   :  { %v931_v8 = vpop.f32.mrb[26].mxu1 }
 0x971   :  { %v934_v10 = vadd.f32 %v3826_v9, %v929_v6  ;;  %v3219_v11 = vpop.f32.mrb[27].mxu1 }
 0x973   :  { %v2935_v12 = vmul.f32 -1.442695, %v934_v10 }
 0x975   :  { %3498 = vpow2.f32 %v2935_v12 }
 0x976   :  { %3500 = vtanh.f32 %v817_v60 }
 0x977   :  { %v3497_v13 = vpop.eup %3496 }
 0x978   :  { %v822_v14 = vadd.f32 1.0, %v3497_v13 }
 0x97a   :  { %3502 = vrcp.f32 %v822_v14 }
 0x97b   :  { %3504 = vtanh.f32 %v934_v10 }
 0x97f   :  { %v3499_v15 = vpop.eup %3498 }
 0x980   :  { %v939_v16 = vadd.f32 1.0, %v3499_v15  ;;  %v3501_v17 = vpop.eup %3500 }
 0x982   :  { %3506 = vrcp.f32 %v939_v16 }
 0x984   :  { %v3503_v18 = vpop.eup %3502 }
 0x985   :  { %v825_v19 = vsel %vm3830_vm4, %v3501_v17, %v3503_v18  ;;  %v3505_v20 = vpop.eup %3504 }
 0x986   :  { %828 = vrot.lane.b32.xlu0 %v825_v19, %s3683_s23  ;;  %v826_v37 = vmul.f32 %v825_v19, %v3973_v30 }
 0x98c   :  { %v3507_v22 = vpop.eup %3506 }
 0x98d   :  { %v942_v23 = vsel %vm3830_vm4, %v3505_v20, %v3507_v22 }
 0x98e   :  { %945 = vrot.lane.b32.xlu1 %v942_v23, %s3683_s23  ;;  %v943_v41 = vmul.f32 %v942_v23, %v3977_v39 }
 0x9f8   :  { %v829_v25 = vpop.permute.xlu0 %828 }
 0x9f9   :  { %v831_v27 = vmul.f32 %v829_v25, %v825_v19 }
 0x9fb   :  { %833 = vrot.lane.b32.xlu0 %v831_v27, %s3684_s24 }
 0xa00   :  { %v946_v28 = vpop.permute.xlu1 %945 }
 0xa01   :  { %v948_v31 = vmul.f32 %v946_v28, %v942_v23 }
 0xa03   :  { %950 = vrot.lane.b32.xlu1 %v948_v31, %s3684_s24 }
 0xa6d   :  { %v834_v32 = vpop.permute.xlu0 %833 }
 0xa6e   :  { %v4030_v40 = vadd.f32 %v834_v32, %v826_v37 }
 0xa70   :  { %3508 = vtanh.f32 %v4030_v40 }
 0xa75   :  { %v951_v42 = vpop.permute.xlu1 %950 }
 0xa76   :  { %v4034_v29 = vadd.f32 %v951_v42, %v943_v41 }
 0xa78   :  { %3510 = vtanh.f32 %v4034_v29 }
 0xa7a   :  { %v3509_v43 = vpop.eup %3508 }
 0xa7b   :  { %839 = vrot.lane.b32.xlu0 %v3509_v43, %s3683_s23 }
 0xa82   :  { %v3511_v44 = vpop.eup %3510 }
 0xa83   :  { %956 = vrot.lane.b32.xlu1 %v3511_v44, %s3683_s23 }
 0xaed   :  { %v840_v45 = vpop.permute.xlu0 %839 }
 0xaee   :  { %v4039_v30 = vmul.f32 %v840_v45, %v825_v19 }
 0xaf0   :  { %v961_v46 = vpack.c.bf16 %v4039_v30, %v4039_v30 }
 0xaf2   :  { %963 = vrot.lane.b32.xlu0 %v961_v46, %s3684_s24 }
 0xaf5   :  { %v957_v39 = vpop.permute.xlu1 %956 }
 0xaf6   :  { %v959_v48 = vmul.f32 %v957_v39, %v942_v23 }
 0xaf8   :  { %v960_v49 = vpack.c.bf16 %v959_v48, %v959_v48 }
 0xafa   :  { %1009 = vrot.lane.b32.xlu1 %v960_v49, %s3684_s24 }
 0xb64   :  { %v964_v50 = vpop.permute.xlu0 %963 }
 0xb65   :  { %3225 = vmatmul.mubr.msk.bf16.vlgmr.msra.gmra.mrb[28].mxu0 %vm96_vm1, %v964_v50 }
 0xb66   :  { %3237 = vmatpush3.bf16.msra.mxu0 %v3784_v1  ;;  %3240 = vmatprep.mubr.msk.bf16.mxu0 %vm3681_vm0, %v3680_v2 }
 0xb67   :  { %3238 = vmatprep.subr.bf16.mxu0 %v3680_v2 }
 0xb6a   :  { %3239 = vmatpush3.bf16.msra.mxu0 %v3797_v4 }
 0xb6b   :  { %3252 = vmatprep.subr.bf16.mxu0 %v3680_v2 }
 0xb6c   :  { %v1010_v51 = vpop.permute.xlu1 %1009 }
 0xb6d   :  { %3233 = vmatmul.mubr.msk.bf16.vlgmr.msra.gmra.mrb[28].mxu1 %vm96_vm1, %v1010_v51  ;;  %3241 = vmatmul.mubr.msk.bf16.vlgmr.msra.gmra.mrb[32].mxu0 %vm96_vm1, %v1010_v51 }
 0xb6e   :  { %3245 = vmatpush3.bf16.msra.mxu1 %v3791_v3  ;;  %3248 = vmatprep.mubr.msk.bf16.mxu1 %vm3681_vm0, %v3680_v2 }
 0xb6f   :  { %3246 = vmatprep.subr.bf16.mxu1 %v3680_v2  ;;  %3253 = vmatpush3.bf16.msra.mxu0 %v3844_v33 }
 0xb70   :  { %3254 = vmatprep.subr.bf16.mxu0 %v3680_v2  ;;  %3256 = vmatprep.mubr.msk.bf16.mxu0 %vm3681_vm0, %v3680_v2 }
 0xb72   :  { %3247 = vmatpush3.bf16.msra.mxu1 %v3806_v5 }
 0xb73   :  { %3255 = vmatpush3.bf16.msra.mxu0 %v3855_v35  ;;  %3260 = vmatprep.subr.bf16.mxu1 %v3680_v2 }
 0xb74   :  { %3268 = vmatprep.subr.bf16.mxu0 %v3680_v2 }
 0xb75   :  { %3249 = vmatmul.mubr.msk.bf16.vlgmr.msra.gmra.mrb[32].mxu1 %vm96_vm1, %v2939_v52 }
 0xb76   :  { %3261 = vmatpush3.bf16.msra.mxu1 %v3849_v34  ;;  %3264 = vmatprep.mubr.msk.bf16.mxu1 %vm3681_vm0, %v3680_v2 }
 0xb77   :  { %3262 = vmatprep.subr.bf16.mxu1 %v3680_v2 }
 0xb7a   :  { %3263 = vmatpush3.bf16.msra.mxu1 %v3861_v36 }
 0xb7b   :  { %3276 = vmatprep.subr.bf16.mxu1 %v3680_v2 }
 0xc38   :  { %v1002_v53 = vpop.f32.mrb[28].mxu0 }
 0xc39   :  { %v3226_v54 = vpop.f32.mrb[29].mxu0 }
 0xc3a   :  { %v1005_v55 = vpop.f32.mrb[30].mxu0 }
 0xc3b   :  { %v3227_v56 = vpop.f32.mrb[31].mxu0 }
 0xc40   :  { %v1048_v57 = vpop.f32.mrb[28].mxu1  ;;  %v1122_v58 = vpop.f32.mrb[32].mxu0 }
 0xc41   :  { %v1049_v59 = vadd.f32 %v1048_v57, %v1002_v53  ;;  %v3234_v60 = vpop.f32.mrb[29].mxu1  ;;  %v3242_v61 = vpop.f32.mrb[33].mxu0 }
 0xc42   :  { %v1051_v62 = vpop.f32.mrb[30].mxu1  ;;  %v1125_v63 = vpop.f32.mrb[34].mxu0 }
 0xc43   :  { %v1054_v0 = vadd.f32 %v3904_v47, %v1049_v59  ;;  %v3235_v6 = vpop.f32.mrb[31].mxu1  ;;  %v3243_v7 = vpop.f32.mrb[35].mxu0 }
 0xc45   :  { %v2938_v8 = vmul.f32 -1.442695, %v1054_v0 }
 0xc47   :  { %3512 = vpow2.f32 %v2938_v8 }
 0xc48   :  { %v1165_v10 = vpop.f32.mrb[32].mxu1 }
 0xc49   :  { %v1166_v11 = vadd.f32 %v1165_v10, %v1122_v58  ;;  %v3250_v12 = vpop.f32.mrb[33].mxu1 }
 0xc4a   :  { %v1168_v13 = vpop.f32.mrb[34].mxu1 }
 0xc4b   :  { %v1171_v14 = vadd.f32 %v3826_v9, %v1166_v11  ;;  %v3251_v15 = vpop.f32.mrb[35].mxu1 }
 0xc4d   :  { %v2942_v16 = vmul.f32 -1.442695, %v1171_v14 }
 0xc4f   :  { %3514 = vpow2.f32 %v2942_v16 }
 0xc50   :  { %3516 = vtanh.f32 %v1054_v0 }
 0xc51   :  { %v3513_v17 = vpop.eup %3512 }
 0xc52   :  { %v1059_v18 = vadd.f32 1.0, %v3513_v17 }
 0xc54   :  { %3518 = vrcp.f32 %v1059_v18 }
 0xc55   :  { %3520 = vtanh.f32 %v1171_v14 }
 0xc59   :  { %v3515_v19 = vpop.eup %3514 }
 0xc5a   :  { %v1176_v20 = vadd.f32 1.0, %v3515_v19  ;;  %v3517_v22 = vpop.eup %3516 }
 0xc5c   :  { %3522 = vrcp.f32 %v1176_v20 }
 0xc5e   :  { %v3519_v23 = vpop.eup %3518 }
 0xc5f   :  { %v1062_v25 = vsel %vm3830_vm4, %v3517_v22, %v3519_v23  ;;  %v3521_v27 = vpop.eup %3520 }
 0xc60   :  { %1065 = vrot.lane.b32.xlu0 %v1062_v25, %s3683_s23  ;;  %v1063_v43 = vmul.f32 %v1062_v25, %v4030_v40 }
 0xc66   :  { %v3523_v28 = vpop.eup %3522 }
 0xc67   :  { %v1179_v31 = vsel %vm3830_vm4, %v3521_v27, %v3523_v28 }
 0xc68   :  { %1182 = vrot.lane.b32.xlu1 %v1179_v31, %s3683_s23  ;;  %v1180_v46 = vmul.f32 %v1179_v31, %v4034_v29 }
 0xcd2   :  { %v1066_v37 = vpop.permute.xlu0 %1065 }
 0xcd3   :  { %v1068_v32 = vmul.f32 %v1066_v37, %v1062_v25 }
 0xcd5   :  { %1070 = vrot.lane.b32.xlu0 %v1068_v32, %s3684_s24 }
 0xcda   :  { %v1183_v41 = vpop.permute.xlu1 %1182 }
 0xcdb   :  { %v1185_v42 = vmul.f32 %v1183_v41, %v1179_v31 }
 0xcdd   :  { %1187 = vrot.lane.b32.xlu1 %v1185_v42, %s3684_s24 }
 0xd47   :  { %v1071_v44 = vpop.permute.xlu0 %1070 }
 0xd48   :  { %v4087_v45 = vadd.f32 %v1071_v44, %v1063_v43 }
 0xd4a   :  { %3524 = vtanh.f32 %v4087_v45 }
 0xd4f   :  { %v1188_v39 = vpop.permute.xlu1 %1187 }
 0xd50   :  { %v4091_v48 = vadd.f32 %v1188_v39, %v1180_v46 }
 0xd52   :  { %3526 = vtanh.f32 %v4091_v48 }
 0xd54   :  { %v3525_v49 = vpop.eup %3524 }
 0xd55   :  { %1076 = vrot.lane.b32.xlu0 %v3525_v49, %s3683_s23 }
 0xd5c   :  { %v3527_v50 = vpop.eup %3526 }
 0xd5d   :  { %1193 = vrot.lane.b32.xlu1 %v3527_v50, %s3683_s23 }
 0xdc7   :  { %v1077_v51 = vpop.permute.xlu0 %1076 }
 0xdc8   :  { %v4096_v40 = vmul.f32 %v1077_v51, %v1062_v25 }
 0xdca   :  { %v1198_v52 = vpack.c.bf16 %v4096_v40, %v4096_v40 }
 0xdcc   :  { %1200 = vrot.lane.b32.xlu0 %v1198_v52, %s3684_s24 }
 0xdcf   :  { %v1194_v29 = vpop.permute.xlu1 %1193 }
 0xdd0   :  { %v1196_v53 = vmul.f32 %v1194_v29, %v1179_v31 }
 0xdd2   :  { %v1197_v54 = vpack.c.bf16 %v1196_v53, %v1196_v53 }
 0xdd4   :  { %1246 = vrot.lane.b32.xlu1 %v1197_v54, %s3684_s24 }
 0xe3e   :  { %v1201_v55 = vpop.permute.xlu0 %1200 }
 0xe3f   :  { %3257 = vmatmul.mubr.msk.bf16.vlgmr.msra.gmra.mrb[36].mxu0 %vm96_vm1, %v1201_v55 }
 0xe40   :  { %3269 = vmatpush3.bf16.msra.mxu0 %v3784_v1  ;;  %3272 = vmatprep.mubr.msk.bf16.mxu0 %vm3681_vm0, %v3680_v2  ;;  %v2946_v1 = vld [vmem:[%s4693_s20 + $0x14] sm:$0xf] }
 0xe41   :  { %3270 = vmatprep.subr.bf16.mxu0 %v3680_v2 }
 0xe44   :  { %3271 = vmatpush3.bf16.msra.mxu0 %v3797_v4 }
 0xe45   :  { %3284 = vmatprep.subr.bf16.mxu0 %v3680_v2 }
 0xe46   :  { %v1247_v56 = vpop.permute.xlu1 %1246 }
 0xe47   :  { %3265 = vmatmul.mubr.msk.bf16.vlgmr.msra.gmra.mrb[36].mxu1 %vm96_vm1, %v1247_v56  ;;  %3273 = vmatmul.mubr.msk.bf16.vlgmr.msra.gmra.mrb[40].mxu0 %vm96_vm1, %v1247_v56 }
 0xe48   :  { %3277 = vmatpush3.bf16.msra.mxu1 %v3791_v3  ;;  %3280 = vmatprep.mubr.msk.bf16.mxu1 %vm3681_vm0, %v3680_v2 }
 0xe49   :  { %3278 = vmatprep.subr.bf16.mxu1 %v3680_v2  ;;  %3285 = vmatpush3.bf16.msra.mxu0 %v3844_v33 }
 0xe4a   :  { %3286 = vmatprep.subr.bf16.mxu0 %v3680_v2  ;;  %3288 = vmatprep.mubr.msk.bf16.mxu0 %vm3681_vm0, %v3680_v2 }
 0xe4c   :  { %3279 = vmatpush3.bf16.msra.mxu1 %v3806_v5 }
 0xe4d   :  { %3287 = vmatpush3.bf16.msra.mxu0 %v3855_v35  ;;  %3292 = vmatprep.subr.bf16.mxu1 %v3680_v2 }
 0xe4e   :  { %3300 = vmatprep.subr.bf16.mxu0 %v3680_v2 }
 0xe4f   :  { %3281 = vmatmul.mubr.msk.bf16.vlgmr.msra.gmra.mrb[40].mxu1 %vm96_vm1, %v2946_v1  ;;  %v4163_v1 = vld [vmem:[%s4677_s6] sm:$0xff]  }
 0xe50   :  { %3293 = vmatpush3.bf16.msra.mxu1 %v3849_v34  ;;  %3296 = vmatprep.mubr.msk.bf16.mxu1 %vm3681_vm0, %v3680_v2 }
 0xe51   :  { %3294 = vmatprep.subr.bf16.mxu1 %v3680_v2 }
 0xe54   :  { %3295 = vmatpush3.bf16.msra.mxu1 %v3861_v36 }
 0xe55   :  { %3308 = vmatprep.subr.bf16.mxu1 %v3680_v2 }
 0xf12   :  { %v1239_v3 = vpop.f32.mrb[36].mxu0 }
 0xf13   :  { %v3258_v4 = vpop.f32.mrb[37].mxu0 }
 0xf14   :  { %v1242_v5 = vpop.f32.mrb[38].mxu0 }
 0xf15   :  { %v3259_v57 = vpop.f32.mrb[39].mxu0  ;;  %v4181_v5 = vld [vmem:[%s4676_s5] sm:$0xff]  }
 0xf16   :  { %v4194_v57 = vld [vmem:[%s4676_s5 + $0x8] sm:$0xff]  }
 0xf1a   :  { %v1285_v58 = vpop.f32.mrb[36].mxu1  ;;  %v1359_v59 = vpop.f32.mrb[40].mxu0 }
 0xf1b   :  { %v1286_v60 = vadd.f32 %v1285_v58, %v1239_v3  ;;  %v3266_v61 = vpop.f32.mrb[37].mxu1  ;;  %v3274_v62 = vpop.f32.mrb[41].mxu0  ;;  %v4172_v3 = vld [vmem:[%s4677_s6 + $0x8] sm:$0xff]   ;;  %v2953_v58 = vld [vmem:[%s4693_s20 + $0x18] sm:$0xf]  ;;  %s3685_s6 = smov 127  }
 0xf1c   :  { %v1288_v63 = vpop.f32.mrb[38].mxu1  ;;  %v1362_v0 = vpop.f32.mrb[42].mxu0 }
 0xf1d   :  { %v1291_v6 = vadd.f32 %v3904_v47, %v1286_v60  ;;  %v3267_v7 = vpop.f32.mrb[39].mxu1  ;;  %v3275_v8 = vpop.f32.mrb[43].mxu0 }
 0xf1f   :  { %v2945_v10 = vmul.f32 -1.442695, %v1291_v6 }
 0xf21   :  { %3528 = vpow2.f32 %v2945_v10 }
 0xf22   :  { %v1402_v11 = vpop.f32.mrb[40].mxu1 }
 0xf23   :  { %v1403_v12 = vadd.f32 %v1402_v11, %v1359_v59  ;;  %v3282_v13 = vpop.f32.mrb[41].mxu1 }
 0xf24   :  { %v1405_v14 = vpop.f32.mrb[42].mxu1 }
 0xf25   :  { %v1408_v15 = vadd.f32 %v3826_v9, %v1403_v12  ;;  %v3283_v16 = vpop.f32.mrb[43].mxu1 }
 0xf26   :  { %v4214_v16 = vld [vmem:[%s4678_s7] ss:$0 sm:$0xff]  ;;  %s3687_s7 = smov [#allocation4]  }
 0xf27   :  { %v2949_v17 = vmul.f32 -1.442695, %v1408_v15  ;;  %s2896_s29 = sshll.u32 %s3687_s7, 4  ;;  %s2897_s29 = int_to_ptr.vmem [resolvable:$true] %s2896_s29 }
 0xf28   :  { %s3656_s18 = scalar_lea.vmem %s2897_s29, 16  ;;  %s3660_s19 = scalar_lea.vmem %s2897_s29, 32 }
 0xf29   :  { %3530 = vpow2.f32 %v2949_v17  ;;  %p3657_p0 = scmp.ne.s32.totalorder %s2897_s29, %s3656_s18  ;;  %p3661_p1 = scmp.lt.s32.totalorder %s2897_s29, %s2897_s29 }
 0xf2a   :  { %3532 = vtanh.f32 %v1291_v6  ;;  %p3662_p2 = scmp.lt.s32.totalorder %s3660_s19, %s3656_s18 }
 0xf2b   :  { %v3529_v18 = vpop.eup %3528 }
 0xf2c   :  { %v1296_v19 = vadd.f32 1.0, %v3529_v18  ;;  %p3663_p3 = por %p3662_p2, %p3661_p1 }
 0xf2e   :  { %3534 = vrcp.f32 %v1296_v19  ;;  %p3664_p4 = pnand %p3663_p3, %p3657_p0 }
 0xf2f   :  { %3536 = vtanh.f32 %v1408_v15 }
 0xf33   :  { %v3531_v20 = vpop.eup %3530 }
 0xf34   :  { %v1413_v22 = vadd.f32 1.0, %v3531_v20  ;;  %v3533_v23 = vpop.eup %3532 }
 0xf36   :  { %3538 = vrcp.f32 %v1413_v22 }
 0xf38   :  { %v3535_v25 = vpop.eup %3534 }
 0xf39   :  { %v1299_v27 = vsel %vm3830_vm4, %v3533_v23, %v3535_v25  ;;  %v3537_v28 = vpop.eup %3536 }
 0xf3a   :  { %1302 = vrot.lane.b32.xlu0 %v1299_v27, %s3683_s23  ;;  %v1300_v43 = vmul.f32 %v1299_v27, %v4087_v45 }
 0xf40   :  { %v3539_v9 = vpop.eup %3538 }
 0xf41   :  { %v1416_v31 = vsel %vm3830_vm4, %v3537_v28, %v3539_v9 }
 0xf42   :  { %1419 = vrot.lane.b32.xlu1 %v1416_v31, %s3683_s23  ;;  %v1417_v39 = vmul.f32 %v1416_v31, %v4091_v48 }
 0xfac   :  { %v1303_v37 = vpop.permute.xlu0 %1302 }
 0xfad   :  { %v1305_v32 = vmul.f32 %v1303_v37, %v1299_v27 }
 0xfaf   :  { %1307 = vrot.lane.b32.xlu0 %v1305_v32, %s3684_s24 }
 0xfb4   :  { %v1420_v41 = vpop.permute.xlu1 %1419 }
 0xfb5   :  { %v1422_v42 = vmul.f32 %v1420_v41, %v1416_v31 }
 0xfb7   :  { %1424 = vrot.lane.b32.xlu1 %v1422_v42, %s3684_s24 }
0x1021   :  { %v1308_v44 = vpop.permute.xlu0 %1307 }
0x1022   :  { %v4144_v46 = vadd.f32 %v1308_v44, %v1300_v43 }
0x1024   :  { %3540 = vtanh.f32 %v4144_v46 }
0x1029   :  { %v1425_v49 = vpop.permute.xlu1 %1424 }
0x102a   :  { %v4148_v50 = vadd.f32 %v1425_v49, %v1417_v39 }
0x102c   :  { %3542 = vtanh.f32 %v4148_v50 }
0x102e   :  { %v3541_v51 = vpop.eup %3540 }
0x102f   :  { %1313 = vrot.lane.b32.xlu0 %v3541_v51, %s3683_s23 }
0x1036   :  { %v3543_v52 = vpop.eup %3542 }
0x1037   :  { %1430 = vrot.lane.b32.xlu1 %v3543_v52, %s3683_s23 }
0x10a1   :  { %v1314_v29 = vpop.permute.xlu0 %1313 }
0x10a2   :  { %v4153_v45 = vmul.f32 %v1314_v29, %v1299_v27 }
0x10a4   :  { %v1435_v53 = vpack.c.bf16 %v4153_v45, %v4153_v45 }
0x10a6   :  { %1437 = vrot.lane.b32.xlu0 %v1435_v53, %s3684_s24 }
0x10a9   :  { %v1431_v48 = vpop.permute.xlu1 %1430 }
0x10aa   :  { %v1433_v54 = vmul.f32 %v1431_v48, %v1416_v31 }
0x10ac   :  { %v1434_v55 = vpack.c.bf16 %v1433_v54, %v1433_v54 }
0x10ae   :  { %1483 = vrot.lane.b32.xlu1 %v1434_v55, %s3684_s24 }
0x1118   :  { %v1438_v56 = vpop.permute.xlu0 %1437 }
0x1119   :  { %3289 = vmatmul.mubr.msk.bf16.vlgmr.msra.gmra.mrb[44].mxu0 %vm96_vm1, %v1438_v56 }
0x111a   :  { %3301 = vmatpush3.bf16.msra.mxu0 %v4163_v1  ;;  %3304 = vmatprep.mubr.msk.bf16.mxu0 %vm3681_vm0, %v3680_v2 }
0x111b   :  { %3302 = vmatprep.subr.bf16.mxu0 %v3680_v2 }
0x111e   :  { %3303 = vmatpush3.bf16.msra.mxu0 %v4172_v3 }
0x111f   :  { %3316 = vmatprep.subr.bf16.mxu0 %v3680_v2 }
0x1120   :  { %v1484_v4 = vpop.permute.xlu1 %1483 }
0x1121   :  { %3297 = vmatmul.mubr.msk.bf16.vlgmr.msra.gmra.mrb[44].mxu1 %vm96_vm1, %v1484_v4  ;;  %3305 = vmatmul.mubr.msk.bf16.vlgmr.msra.gmra.mrb[48].mxu0 %vm96_vm1, %v1484_v4 }
0x1122   :  { %3309 = vmatpush3.bf16.msra.mxu1 %v4181_v5  ;;  %3312 = vmatprep.mubr.msk.bf16.mxu1 %vm3681_vm0, %v3680_v2 }
0x1123   :  { %3310 = vmatprep.subr.bf16.mxu1 %v3680_v2  ;;  %3317 = vmatpush3.bf16.msra.mxu0 %v3844_v33 }
0x1124   :  { %3318 = vmatprep.subr.bf16.mxu0 %v3680_v2  ;;  %3320 = vmatprep.mubr.msk.bf16.mxu0 %vm3681_vm0, %v3680_v2 }
0x1126   :  { %3311 = vmatpush3.bf16.msra.mxu1 %v4194_v57 }
0x1127   :  { %3319 = vmatpush3.bf16.msra.mxu0 %v3855_v35  ;;  %3324 = vmatprep.subr.bf16.mxu1 %v3680_v2 }
0x1128   :  { %3332 = vmatprep.subr.bf16.mxu0 %v3680_v2 }
0x1129   :  { %3313 = vmatmul.mubr.msk.bf16.vlgmr.msra.gmra.mrb[48].mxu1 %vm96_vm1, %v2953_v58 }
0x112a   :  { %3325 = vmatpush3.bf16.msra.mxu1 %v3849_v34  ;;  %3328 = vmatprep.mubr.msk.bf16.mxu1 %vm3681_vm0, %v3680_v2 }
0x112b   :  { %3326 = vmatprep.subr.bf16.mxu1 %v3680_v2 }
0x112e   :  { %3327 = vmatpush3.bf16.msra.mxu1 %v3861_v36 }
0x112f   :  { %3340 = vmatprep.subr.bf16.mxu1 %v3680_v2 }
0x11ec   :  { %v1476_v33 = vpop.f32.mrb[44].mxu0 }
0x11ed   :  { %v3290_v59 = vpop.f32.mrb[45].mxu0 }
0x11ee   :  { %v1479_v35 = vpop.f32.mrb[46].mxu0  ;;  %v3653_v59 = vld [vmem:[%s4679_s8] sm:$0xff]  }
0x11ef   :  { %v3291_v60 = vpop.f32.mrb[47].mxu0 }
0x11f4   :  { %v1522_v61 = vpop.f32.mrb[44].mxu1  ;;  %v1596_v62 = vpop.f32.mrb[48].mxu0 }
0x11f5   :  { %v1523_v63 = vadd.f32 %v1522_v61, %v1476_v33  ;;  %v3298_v0 = vpop.f32.mrb[45].mxu1  ;;  %v3306_v6 = vpop.f32.mrb[49].mxu0 }
0x11f6   :  { %v1525_v7 = vpop.f32.mrb[46].mxu1  ;;  %v1599_v34 = vpop.f32.mrb[50].mxu0 }
0x11f7   :  { %v1528_v8 = vadd.f32 %v3904_v47, %v1523_v63  ;;  %v3299_v10 = vpop.f32.mrb[47].mxu1  ;;  %v3307_v11 = vpop.f32.mrb[51].mxu0 }
0x11f8   :  { %v4281_v11 = vld [vmem:[%s4681_s10] ss:$0 sm:$0xff] }
0x11f9   :  { %v2952_v12 = vmul.f32 -1.442695, %v1528_v8 }
0x11fb   :  { %3544 = vpow2.f32 %v2952_v12 }
0x11fc   :  { %v1639_v36 = vpop.f32.mrb[48].mxu1 }
0x11fd   :  { %v1640_v13 = vadd.f32 %v1639_v36, %v1596_v62  ;;  %v3314_v14 = vpop.f32.mrb[49].mxu1 }
0x11fe   :  { %v1642_v15 = vpop.f32.mrb[50].mxu1 }
0x11ff   :  { %v1645_v17 = vadd.f32 %v4214_v16, %v1640_v13  ;;  %v3315_v18 = vpop.f32.mrb[51].mxu1 }
0x1201   :  { %v2956_v19 = vmul.f32 -1.442695, %v1645_v17 }
0x1203   :  { %3546 = vpow2.f32 %v2956_v19 }
0x1204   :  { %3548 = vtanh.f32 %v1528_v8 }
0x1205   :  { %v3545_v20 = vpop.eup %3544 }
0x1206   :  { %v1533_v47 = vadd.f32 1.0, %v3545_v20 }
0x1208   :  { %3550 = vrcp.f32 %v1533_v47 }
0x1209   :  { %3552 = vtanh.f32 %v1645_v17 }
0x120d   :  { %v3547_v22 = vpop.eup %3546 }
0x120e   :  { %v1650_v23 = vadd.f32 1.0, %v3547_v22  ;;  %v3549_v25 = vpop.eup %3548 }
0x1210   :  { %3554 = vrcp.f32 %v1650_v23 }
0x1212   :  { %v3551_v27 = vpop.eup %3550 }
0x1213   :  { %v1536_v28 = vsel %vm3830_vm4, %v3549_v25, %v3551_v27  ;;  %v3553_v9 = vpop.eup %3552 }
0x1214   :  { %1539 = vrot.lane.b32.xlu0 %v1536_v28, %s3683_s23  ;;  %v1537_v44 = vmul.f32 %v1536_v28, %v4144_v46 }
0x121a   :  { %v3555_v31 = vpop.eup %3554 }
0x121b   :  { %v1653_v37 = vsel %vm3830_vm4, %v3553_v9, %v3555_v31 }
0x121c   :  { %1656 = vrot.lane.b32.xlu1 %v1653_v37, %s3683_s23  ;;  %v1654_v51 = vmul.f32 %v1653_v37, %v4148_v50 }
0x1286   :  { %v1540_v32 = vpop.permute.xlu0 %1539 }
0x1287   :  { %v1542_v41 = vmul.f32 %v1540_v32, %v1536_v28 }
0x1289   :  { %1544 = vrot.lane.b32.xlu0 %v1542_v41, %s3684_s24 }
0x128e   :  { %v1657_v42 = vpop.permute.xlu1 %1656 }
0x128f   :  { %v1659_v43 = vmul.f32 %v1657_v42, %v1653_v37 }
0x1291   :  { %1661 = vrot.lane.b32.xlu1 %v1659_v43, %s3684_s24 }
0x12fb   :  { %v1545_v39 = vpop.permute.xlu0 %1544 }
0x12fc   :  { %v4226_v49 = vadd.f32 %v1545_v39, %v1537_v44 }
0x12fe   :  { %3556 = vtanh.f32 %v4226_v49 }
0x1303   :  { %v1662_v52 = vpop.permute.xlu1 %1661 }
0x1304   :  { %v4230_v29 = vadd.f32 %v1662_v52, %v1654_v51 }
0x1306   :  { %3558 = vtanh.f32 %v4230_v29 }
0x1308   :  { %v3557_v53 = vpop.eup %3556 }
0x1309   :  { %1550 = vrot.lane.b32.xlu0 %v3557_v53, %s3683_s23 }
0x1310   :  { %v3559_v48 = vpop.eup %3558 }
0x1311   :  { %1667 = vrot.lane.b32.xlu1 %v3559_v48, %s3683_s23 }
0x137b   :  { %v1551_v54 = vpop.permute.xlu0 %1550 }
0x137c   :  { %v4235_v46 = vmul.f32 %v1551_v54, %v1536_v28 }
0x137e   :  { %v1672_v55 = vpack.c.bf16 %v4235_v46, %v4235_v46 }
0x1380   :  { %1674 = vrot.lane.b32.xlu0 %v1672_v55, %s3684_s24 }
0x1383   :  { %v1668_v50 = vpop.permute.xlu1 %1667 }
0x1384   :  { %v1670_v56 = vmul.f32 %v1668_v50, %v1653_v37 }
0x1386   :  { %v1671_v4 = vpack.c.bf16 %v1670_v56, %v1670_v56 }
0x1388   :  { %1720 = vrot.lane.b32.xlu1 %v1671_v4, %s3684_s24 }
0x13f2   :  { %v1675_v58 = vpop.permute.xlu0 %1674 }
0x13f3   :  { %3321 = vmatmul.mubr.msk.bf16.vlgmr.msra.gmra.mrb[52].mxu0 %vm96_vm1, %v1675_v58 }
0x13f4   :  { %3333 = vmatpush3.bf16.msra.mxu0 %v4163_v1  ;;  %3336 = vmatprep.mubr.msk.bf16.mxu0 %vm3681_vm0, %v3680_v2  ;;  %v3651_v1 = vld [vmem:[%s4680_s9] sm:$0xff]  }
0x13f5   :  { %3334 = vmatprep.subr.bf16.mxu0 %v3680_v2 }
0x13f8   :  { %3335 = vmatpush3.bf16.msra.mxu0 %v4172_v3  ;;  %v2960_v3 = vld [vmem:[%s4693_s20 + $0x1c] sm:$0xf] }
0x13f9   :  { %3348 = vmatprep.subr.bf16.mxu0 %v3680_v2 }
0x13fa   :  { %v1721_v33 = vpop.permute.xlu1 %1720 }
0x13fb   :  { %3329 = vmatmul.mubr.msk.bf16.vlgmr.msra.gmra.mrb[52].mxu1 %vm96_vm1, %v1721_v33  ;;  %3337 = vmatmul.mubr.msk.bf16.vlgmr.msra.gmra.mrb[56].mxu0 %vm96_vm1, %v1721_v33 }
0x13fc   :  { %3341 = vmatpush3.bf16.msra.mxu1 %v4181_v5  ;;  %3344 = vmatprep.mubr.msk.bf16.mxu1 %vm3681_vm0, %v3680_v2  ;;  %v3652_v5 = vld [vmem:[%s4680_s9 + $0x8] sm:$0xff]  }
0x13fd   :  { %3342 = vmatprep.subr.bf16.mxu1 %v3680_v2  ;;  %3349 = vmatpush3.bf16.msra.mxu0 %v3651_v1 }
0x13fe   :  { %3350 = vmatprep.subr.bf16.mxu0 %v3680_v2  ;;  %3352 = vmatprep.mubr.msk.bf16.mxu0 %vm3681_vm0, %v3680_v2 }
0x1400   :  { %3343 = vmatpush3.bf16.msra.mxu1 %v4194_v57  ;;  %v3654_v57 = vld [vmem:[%s4679_s8 + $0x8] sm:$0xff]  }
0x1401   :  { %3351 = vmatpush3.bf16.msra.mxu0 %v3652_v5  ;;  %3356 = vmatprep.subr.bf16.mxu1 %v3680_v2 }
0x1403   :  { %3345 = vmatmul.mubr.msk.bf16.vlgmr.msra.gmra.mrb[56].mxu1 %vm96_vm1, %v2960_v3 }
0x1404   :  { %3357 = vmatpush3.bf16.msra.mxu1 %v3653_v59  ;;  %3360 = vmatprep.mubr.msk.bf16.mxu1 %vm3681_vm0, %v3680_v2 }
0x1405   :  { %3358 = vmatprep.subr.bf16.mxu1 %v3680_v2 }
0x1408   :  { %3359 = vmatpush3.bf16.msra.mxu1 %v3654_v57 }
0x14c6   :  { %v1713_v35 = vpop.f32.mrb[52].mxu0 }
0x14c7   :  { %v3322_v60 = vpop.f32.mrb[53].mxu0 }
0x14c8   :  { %v1716_v61 = vpop.f32.mrb[54].mxu0 }
0x14c9   :  { %v3323_v62 = vpop.f32.mrb[55].mxu0 }
0x14ce   :  { %v1759_v63 = vpop.f32.mrb[52].mxu1  ;;  %v1833_v0 = vpop.f32.mrb[56].mxu0 }
0x14cf   :  { %v1760_v6 = vadd.f32 %v1759_v63, %v1713_v35  ;;  %v3330_v7 = vpop.f32.mrb[53].mxu1  ;;  %v3338_v34 = vpop.f32.mrb[57].mxu0 }
0x14d0   :  { %v1762_v8 = vpop.f32.mrb[54].mxu1  ;;  %v1836_v10 = vpop.f32.mrb[58].mxu0 }
0x14d1   :  { %v1765_v12 = vadd.f32 %v4281_v11, %v1760_v6  ;;  %v3331_v36 = vpop.f32.mrb[55].mxu1  ;;  %v3339_v13 = vpop.f32.mrb[59].mxu0 }
0x14d3   :  { %v2959_v14 = vmul.f32 -1.442695, %v1765_v12 }
0x14d5   :  { %3560 = vpow2.f32 %v2959_v14 }
0x14d6   :  { %v1876_v15 = vpop.f32.mrb[56].mxu1 }
0x14d7   :  { %v1877_v17 = vadd.f32 %v1876_v15, %v1833_v0  ;;  %v3346_v18 = vpop.f32.mrb[57].mxu1 }
0x14d8   :  { %v1879_v19 = vpop.f32.mrb[58].mxu1 }
0x14d9   :  { %v1882_v20 = vadd.f32 %v4214_v16, %v1877_v17  ;;  %v3347_v47 = vpop.f32.mrb[59].mxu1 }
0x14db   :  { %v2963_v22 = vmul.f32 -1.442695, %v1882_v20 }
0x14dd   :  { %3562 = vpow2.f32 %v2963_v22 }
0x14de   :  { %3564 = vtanh.f32 %v1765_v12 }
0x14df   :  { %v3561_v23 = vpop.eup %3560 }
0x14e0   :  { %v1770_v25 = vadd.f32 1.0, %v3561_v23 }
0x14e2   :  { %3566 = vrcp.f32 %v1770_v25 }
0x14e3   :  { %3568 = vtanh.f32 %v1882_v20 }
0x14e7   :  { %v3563_v27 = vpop.eup %3562 }
0x14e8   :  { %v1887_v28 = vadd.f32 1.0, %v3563_v27  ;;  %v3565_v9 = vpop.eup %3564 }
0x14ea   :  { %3570 = vrcp.f32 %v1887_v28 }
0x14ec   :  { %v3567_v31 = vpop.eup %3566 }
0x14ed   :  { %v1773_v37 = vsel %vm3830_vm4, %v3565_v9, %v3567_v31  ;;  %v3569_v32 = vpop.eup %3568 }
0x14ee   :  { %1776 = vrot.lane.b32.xlu0 %v1773_v37, %s3683_s23  ;;  %v1774_v51 = vmul.f32 %v1773_v37, %v4226_v49 }
0x14f4   :  { %v3571_v16 = vpop.eup %3570 }
0x14f5   :  { %v1890_v41 = vsel %vm3830_vm4, %v3569_v32, %v3571_v16 }
0x14f6   :  { %1893 = vrot.lane.b32.xlu1 %v1890_v41, %s3683_s23  ;;  %v1891_v48 = vmul.f32 %v1890_v41, %v4230_v29 }
0x1560   :  { %v1777_v42 = vpop.permute.xlu0 %1776 }
0x1561   :  { %v1779_v43 = vmul.f32 %v1777_v42, %v1773_v37 }
0x1563   :  { %1781 = vrot.lane.b32.xlu0 %v1779_v43, %s3684_s24 }
0x1568   :  { %v1894_v44 = vpop.permute.xlu1 %1893 }
0x1569   :  { %v1896_v39 = vmul.f32 %v1894_v44, %v1890_v41 }
0x156b   :  { %1898 = vrot.lane.b32.xlu1 %v1896_v39, %s3684_s24 }
0x15d5   :  { %v1782_v52 = vpop.permute.xlu0 %1781 }
0x15d6   :  { %v1784_v53 = vadd.f32 %v1782_v52, %v1774_v51 }
0x15d8   :  { %3572 = vtanh.f32 %v1784_v53 }
0x15dd   :  { %v1899_v54 = vpop.permute.xlu1 %1898 }
0x15de   :  { %v1901_v55 = vadd.f32 %v1899_v54, %v1891_v48 }
0x15e0   :  { %3574 = vtanh.f32 %v1901_v55 }
0x15e2   :  { %v3573_v50 = vpop.eup %3572 }
0x15e3   :  { %1787 = vrot.lane.b32.xlu0 %v3573_v50, %s3683_s23 }
0x15ea   :  { %v3575_v56 = vpop.eup %3574 }
0x15eb   :  { %1904 = vrot.lane.b32.xlu1 %v3575_v56, %s3683_s23 }
0x1655   :  { %v1788_v4 = vpop.permute.xlu0 %1787 }
0x1656   :  { %v1790_v58 = vmul.f32 %v1788_v4, %v1773_v37 }
0x1658   :  { %v1909_v33 = vpack.c.bf16 %v1790_v58, %v1790_v58 }
0x165a   :  { %1911 = vrot.lane.b32.xlu0 %v1909_v33, %s3684_s24 }
0x165d   :  { %v1905_v49 = vpop.permute.xlu1 %1904 }
0x165e   :  { %v1907_v1 = vmul.f32 %v1905_v49, %v1890_v41 }
0x1660   :  { %v1908_v3 = vpack.c.bf16 %v1907_v1, %v1907_v1 }
0x1662   :  { %1957 = vrot.lane.b32.xlu1 %v1908_v3, %s3684_s24 }
0x16cc   :  { %v1912_v29 = vpop.permute.xlu0 %1911 }
0x16cd   :  { %3353 = vmatmul.mubr.msk.bf16.vlgmr.msra.gmra.mrb[60].mxu0 %vm96_vm1, %v1912_v29 }
0x16ce   :  { %3372 = vmatprep.mubr.msk.f32.mxu0 %vm3681_vm0, %v3680_v2 }
0x16d4   :  { %v1958_v5 = vpop.permute.xlu1 %1957 }
0x16d5   :  { %3361 = vmatmul.mubr.msk.bf16.vlgmr.msra.gmra.mrb[60].mxu1 %vm96_vm1, %v1958_v5 }
0x16d6   :  { %3383 = vmatprep.mubr.msk.f32.mxu1 %vm3681_vm0, %v3680_v2 }
0x17a0   :  { %v1950_v59 = vpop.f32.mrb[60].mxu0 }
0x17a1   :  { %v3354_v57 = vpop.f32.mrb[61].mxu0 }
0x17a2   :  { %v1953_v35 = vpop.f32.mrb[62].mxu0 }
0x17a3   :  { %v3355_v60 = vpop.f32.mrb[63].mxu0  ;;  %v4406_v35 = vld [vmem:[#allocation3] ss:$0 sm:$0xff] }
0x17a8   :  { %v1996_v61 = vpop.f32.mrb[60].mxu1 }
0x17a9   :  { %v1997_v62 = vadd.f32 %v1996_v61, %v1950_v59  ;;  %v3362_v63 = vpop.f32.mrb[61].mxu1 }
0x17aa   :  { %v1999_v0 = vpop.f32.mrb[62].mxu1 }
0x17ab   :  { %v2002_v6 = vadd.f32 %v4281_v11, %v1997_v62  ;;  %v3363_v7 = vpop.f32.mrb[63].mxu1 }
0x17ad   :  { %v2966_v34 = vmul.f32 -1.442695, %v2002_v6 }
0x17af   :  { %3576 = vpow2.f32 %v2966_v34 }
0x17b0   :  { %3578 = vtanh.f32 %v2002_v6 }
0x17b9   :  { %v3577_v8 = vpop.eup %3576 }
0x17ba   :  { %v2007_v10 = vadd.f32 1.0, %v3577_v8  ;;  %v3579_v12 = vpop.eup %3578 }
0x17bc   :  { %3580 = vrcp.f32 %v2007_v10 }
0x17c6   :  { %v3581_v36 = vpop.eup %3580 }
0x17c7   :  { %v2010_v13 = vsel %vm3830_vm4, %v3579_v12, %v3581_v36 }
0x17c8   :  { %2013 = vrot.lane.b32.xlu0 %v2010_v13, %s3683_s23  ;;  %v2011_v11 = vmul.f32 %v2010_v13, %v1784_v53 }
0x183a   :  { %v2014_v14 = vpop.permute.xlu0 %2013 }
0x183b   :  { %v2016_v15 = vmul.f32 %v2014_v14, %v2010_v13 }
0x183d   :  { %2018 = vrot.lane.b32.xlu1 %v2016_v15, %s3684_s24 }
0x1841   :  { %371 = vrot.lane.b32.xlu1 %v3925_v38, %s3684_s24  ;;  %v2967_v38 = vld [vmem:[%s4682_s11] ss:$0 sm:$0xff] }
0x1845   :  { %844 = vrot.lane.b32.xlu1 %v4039_v30, %s3684_s24 }
0x1849   :  { %1318 = vrot.lane.b32.xlu1 %v4153_v45, %s3684_s24 }
0x184d   :  { %1792 = vrot.lane.b32.xlu1 %v1790_v58, %s3684_s24 }
0x18af   :  { %v2019_v24 = vpop.permute.xlu1 %2018 }
0x18b0   :  { %v2021_v17 = vadd.f32 %v2019_v24, %v2011_v11 }
0x18b2   :  { %3582 = vtanh.f32 %v2021_v17 }
0x18b3   :  { %v372_v18 = vpop.permute.xlu1 %371 }
0x18b4   :  { %374 = vst.msk [vmem:[#allocation2] sm:$0xff] %vm96_vm1, %v372_v18 }
0x18b7   :  { %v845_v19 = vpop.permute.xlu1 %844 }
0x18b8   :  { %848 = vst.msk [vmem:[#allocation2 + $0x10] sm:$0xff] %vm96_vm1, %v845_v19 }
0x18bb   :  { %v1319_v30 = vpop.permute.xlu1 %1318  ;;  %v4322_v20 = vld [vmem:[#allocation2] sm:$0xff] }
0x18bc   :  { %v3583_v45 = vpop.eup %3582  ;;  %1322 = vst.msk [vmem:[#allocation2 + $0x20] sm:$0xff] %vm96_vm1, %v1319_v30  ;;  %v2049_v47 = vmul.f32 %v2967_v38, %v4322_v20 }
0x18bd   :  { %2024 = vrot.lane.b32.xlu0 %v3583_v45, %s3683_s23 }
0x18be   :  { %v2057_v22 = vsel %vm96_vm1, %v2049_v47, 0.0 }
0x18bf   :  { %2058 = vadd.xlane.f32.xlu1 %v2057_v22  ;;  %v1793_v23 = vpop.permute.xlu1 %1792  ;;  %v4350_v43 = vld [vmem:[#allocation2 + $0x10] sm:$0xff] }
0x18c0   :  { %1796 = vst.msk [vmem:[#allocation2 + $0x30] sm:$0xff] %vm96_vm1, %v1793_v23  ;;  %v2051_v39 = vmul.f32 %v2967_v38, %v4350_v43 }
0x18c1   :  { %607 = vrot.lane.b32.xlu0 %v3982_v26, %s3684_s24 }
0x18c2   :  { %v2063_v52 = vsel %vm96_vm1, %v2051_v39, 0.0 }
0x18c3   :  { %v4354_v51 = vld [vmem:[#allocation2 + $0x20] sm:$0xff] }
0x18c4   :  { %v2053_v53 = vmul.f32 %v2967_v38, %v4354_v51 }
0x18c5   :  { %1081 = vrot.lane.b32.xlu0 %v4096_v40, %s3684_s24 }
0x18c6   :  { %v2069_v55 = vsel %vm96_vm1, %v2053_v53, 0.0 }
0x18c7   :  { %v4358_v48 = vld [vmem:[#allocation2 + $0x30] sm:$0xff] }
0x18c8   :  { %v2055_v50 = vmul.f32 %v2967_v38, %v4358_v48 }
0x18c9   :  { %1555 = vrot.lane.b32.xlu0 %v4235_v46, %s3684_s24 }
0x18ca   :  { %v2075_v56 = vsel %vm96_vm1, %v2055_v50, 0.0 }
0x192f   :  { %v2025_v25 = vpop.permute.xlu0 %2024 }
0x1930   :  { %v2027_v27 = vmul.f32 %v2025_v25, %v2010_v13 }
0x1932   :  { %2029 = vrot.lane.b32.xlu0 %v2027_v27, %s3684_s24  ;;  %s4696_s24 = sld [smem:[#allocation8_spill]] }
0x1933   :  { %v608_v28 = vpop.permute.xlu0 %607 }
0x1934   :  { %611 = vst.msk [vmem:[#allocation2 + $0x8] sm:$0xff] %vm96_vm1, %v608_v28 }
0x1937   :  { %v1082_v9 = vpop.permute.xlu0 %1081 }
0x1938   :  { %1085 = vst.msk [vmem:[#allocation2 + $0x18] sm:$0xff] %vm96_vm1, %v1082_v9  ;;  %v4363_v54 = vld [vmem:[%s4696_s24 + $0x8] sm:$0xff]  ;;  %v2152_v4 = vld [vmem:[%s4696_s24] sm:$0xff]  ;;  %v4375_v58 = vld [vmem:[%s4696_s24 + $0x18] sm:$0xff] }
0x1939   :  { %v4381_v33 = vld [vmem:[%s4696_s24 + $0x28] sm:$0xff]  ;;  %v4387_v49 = vld [vmem:[%s4696_s24 + $0x38] sm:$0xff]  ;;  %v4398_v59 = vld [vmem:[%s4696_s24 + $0x10] sm:$0xff] }
0x193a   :  { %v4404_v57 = vld [vmem:[%s4696_s24 + $0x20] sm:$0xff]  ;;  %v4412_v61 = vld [vmem:[%s4696_s24 + $0x30] sm:$0xff] }
0x193b   :  { %v1556_v31 = vpop.permute.xlu0 %1555  ;;  %v4347_v41 = vld [vmem:[#allocation2 + $0x8] sm:$0xff] }
0x193c   :  { %1559 = vst.msk [vmem:[#allocation2 + $0x28] sm:$0xff] %vm96_vm1, %v1556_v31  ;;  %v2050_v42 = vmul.f32 %v2967_v38, %v4347_v41 }
0x193e   :  { %v2060_v44 = vsel %vm96_vm1, %v2050_v42, 0.0  ;;  %v2232_v42 = vld [vmem:[%s4673_s2] sm:$0xff] }
0x193f   :  { %v4339_v26 = vld [vmem:[#allocation2 + $0x18] sm:$0xff] }
0x1940   :  { %v2052_v40 = vmul.f32 %v2967_v38, %v4339_v26 }
0x1942   :  { %v2066_v37 = vsel %vm96_vm1, %v2052_v40, 0.0 }
0x1943   :  { %2067 = vadd.xlane.f32.xlu1 %v2066_v37  ;;  %v4343_v46 = vld [vmem:[#allocation2 + $0x28] sm:$0xff] }
0x1944   :  { %v2054_v32 = vmul.f32 %v2967_v38, %v4343_v46 }
0x1946   :  { %v2072_v16 = vsel %vm96_vm1, %v2054_v32, 0.0 }
0x1947   :  { %2073 = vadd.xlane.f32.xlu1 %v2072_v16 }
0x194c   :  { %v2059_v60 = vpop.xlane.xlu1 %2058 }
0x194d   :  { %v2088_v62 = vadd.f32 %v4406_v35, %v2059_v60 }
0x194f   :  { %v2969_v63 = vmul.f32 -1.442695, %v2088_v62 }
0x1951   :  { %2061 = vadd.xlane.f32.xlu0 %v2060_v44  ;;  %3584 = vpow2.f32 %v2969_v63 }
0x1955   :  { %2064 = vadd.xlane.f32.xlu0 %v2063_v52 }
0x1958   :  { %2170 = vrot.lane.b32.xlu1 %v4363_v54, %s3685_s6 }
0x1959   :  { %2070 = vadd.xlane.f32.xlu0 %v2069_v55 }
0x195b   :  { %v3585_v10 = vpop.eup %3584 }
0x195c   :  { %v2120_v36 = vadd.f32 1.0, %v3585_v10 }
0x195d   :  { %2076 = vadd.xlane.f32.xlu0 %v2075_v56 }
0x1973   :  { %2168 = vrot.lane.b32.xlu0 %v2152_v4, %s3685_s6 }
0x1977   :  { %2174 = vrot.lane.b32.xlu0 %v4375_v58, %s3685_s6 }
0x197b   :  { %2178 = vrot.lane.b32.xlu0 %v4381_v33, %s3685_s6 }
0x197f   :  { %2182 = vrot.lane.b32.xlu0 %v4387_v49, %s3685_s6 }
0x19a4   :  { %v2030_v1 = vpop.permute.xlu0 %2029 }
0x19a5   :  { %2033 = vst.msk [vmem:[#allocation2 + $0x38] sm:$0xff] %vm96_vm1, %v2030_v1 }
0x19ac   :  { %v4391_v3 = vld [vmem:[#allocation2 + $0x38] sm:$0xff] }
0x19ad   :  { %v2056_v29 = vmul.f32 %v2967_v38, %v4391_v3 }
0x19af   :  { %v2078_v5 = vsel %vm96_vm1, %v2056_v29, 0.0 }
0x19b0   :  { %2079 = vadd.xlane.f32.xlu1 %v2078_v5 }
0x19c1   :  { %2172 = vrot.lane.b32.xlu1 %v4398_v59, %s3685_s6 }
0x19c5   :  { %2176 = vrot.lane.b32.xlu1 %v4404_v57, %s3685_s6 }
0x19c9   :  { %2180 = vrot.lane.b32.xlu1 %v4412_v61, %s3685_s6 }
0x19d0   :  { %v2068_v0 = vpop.xlane.xlu1 %2067 }
0x19d1   :  { %v2091_v6 = vadd.f32 %v4406_v35, %v2068_v0 }
0x19d3   :  { %v2972_v34 = vmul.f32 -1.442695, %v2091_v6 }
0x19d4   :  { %v2074_v7 = vpop.xlane.xlu1 %2073 }
0x19d5   :  { %v2093_v8 = vadd.f32 %v4406_v35, %v2074_v7  ;;  %3586 = vpow2.f32 %v2972_v34 }
0x19d7   :  { %v2974_v12 = vmul.f32 -1.442695, %v2093_v8 }
0x19d8   :  { %v2171_v6 = vpop.permute.xlu1 %2170 }
0x19d9   :  { %3588 = vpow2.f32 %v2974_v12 }
0x19da   :  { %3590 = vrcp.f32 %v2120_v36 }
0x19de   :  { %v2062_v13 = vpop.xlane.xlu0 %2061 }
0x19df   :  { %v2089_v14 = vadd.f32 %v4406_v35, %v2062_v13  ;;  %v3587_v24 = vpop.eup %3586  ;;  %v2233_v13 = vld [vmem:[%s4673_s2 + $0x8] sm:$0xff] }
0x19e0   :  { %v2123_v19 = vadd.f32 1.0, %v3587_v24 }
0x19e1   :  { %v2970_v15 = vmul.f32 -1.442695, %v2089_v14 }
0x19e2   :  { %v2065_v11 = vpop.xlane.xlu0 %2064 }
0x19e3   :  { %3592 = vpow2.f32 %v2970_v15  ;;  %v2090_v17 = vadd.f32 %v4406_v35, %v2065_v11  ;;  %v3589_v30 = vpop.eup %3588 }
0x19e4   :  { %v3591_v22 = vpop.eup %3590  ;;  %v2125_v23 = vadd.f32 1.0, %v3589_v30 }
0x19e5   :  { %v2971_v18 = vmul.f32 -1.442695, %v2090_v17  ;;  %v2144_v31 = vsub.f32 1.0, %v3591_v22  ;;  %v2200_v32 = vadd.f32 %v3591_v22, %v2152_v4  ;;  %v2802_v39 = vadd.f32 1e-06, %v3591_v22 }
0x19e6   :  { %v2071_v38 = vpop.xlane.xlu0 %2070 }
0x19e7   :  { %3594 = vpow2.f32 %v2971_v18  ;;  %v2092_v45 = vadd.f32 %v4406_v35, %v2071_v38 }
0x19e8   :  { %3596 = vrcp.f32 %v2123_v19 }
0x19e9   :  { %v2973_v47 = vmul.f32 -1.442695, %v2092_v45 }
0x19ea   :  { %v2077_v25 = vpop.xlane.xlu0 %2076 }
0x19eb   :  { %3598 = vpow2.f32 %v2973_v47  ;;  %v2094_v27 = vadd.f32 %v4406_v35, %v2077_v25 }
0x19ec   :  { %3600 = vrcp.f32 %v2125_v23 }
0x19ed   :  { %v3593_v28 = vpop.eup %3592  ;;  %v2975_v9 = vmul.f32 -1.442695, %v2094_v27 }
0x19ee   :  { %v2121_v40 = vadd.f32 1.0, %v3593_v28  ;;  %v2169_v37 = vpop.permute.xlu0 %2168 }
0x19ef   :  { %3602 = vpow2.f32 %v2975_v9  ;;  %v2192_v16 = vadd.f32 %v2169_v37, %v2144_v31 }
0x19f0   :  { %3604 = vrcp.f32 %v2121_v40 }
0x19f1   :  { %v3595_v44 = vpop.eup %3594  ;;  %vm2208_vm5 = vcmp.gt.f32.partialorder %v2192_v16, %v2200_v32  ;;  %v4475_v32 = vld [vmem:[%s4674_s3] sm:$0xff] }
0x19f2   :  { %v2122_v52 = vadd.f32 1.0, %v3595_v44  ;;  %v2977_v53 = vsel %vm2208_vm5, 1.0, %v3680_v2  ;;  %v4426_v56 = vpop.eup %3596 }
0x19f3   :  { %v2248_v55 = vsub.f32 1.0, %v2977_v53  ;;  %v2240_v50 = vmul.f32 %v2977_v53, %v2232_v42  ;;  %v2805_v5 = vadd.f32 1e-06, %v4426_v56 }
0x19f4   :  { %3606 = vrcp.f32 %v2122_v52 }
0x19f5   :  { %v3599_v1 = vpop.eup %3598  ;;  %2266 = vperm.xlu1 %3446, %v2240_v50   ;;  %v4428_v4 = vmul.f32 %v2248_v55, %v2232_v42  ;;  %3608 = vlog2.f32 %v2802_v39  ;;  %v2391_v38 = vsel %vm2390_vm7, %v2240_v50, 0.0 }
0x19f6   :  { %v2124_v29 = vadd.f32 1.0, %v3599_v1  ;;  %v4431_v60 = vpop.eup %3600 }
0x19f7   :  { %v2807_v8 = vadd.f32 1e-06, %v4431_v60  ;;  %v2406_v27 = vsel %vm2390_vm7, %v4428_v4, 0.0 }
0x19f8   :  { %3610 = vrcp.f32 %v2124_v29 }
0x19f9   :  { %v3603_v62 = vpop.eup %3602  ;;  %3612 = vlog2.f32 %v2805_v5 }
0x19fa   :  { %v3605_v63 = vpop.eup %3604  ;;  %v2126_v0 = vadd.f32 1.0, %v3603_v62 }
0x19fb   :  { %v2145_v7 = vsub.f32 1.0, %v3605_v63  ;;  %v2803_v34 = vadd.f32 1e-06, %v3605_v63  ;;  %v2201_v12 = vadd.f32 %v3605_v63, %v4363_v54 }
0x19fc   :  { %3614 = vrcp.f32 %v2126_v0 }
0x19fd   :  { %v2193_v10 = vadd.f32 %v2171_v6, %v2145_v7  ;;  %3616 = vlog2.f32 %v2803_v34 }
0x19fe   :  { %v4435_v36 = vpop.eup %3606  ;;  %3618 = vlog2.f32 %v2807_v8 }
0x19ff   :  { %v3609_v14 = vpop.eup %3608  ;;  %vm2209_vm6 = vcmp.gt.f32.partialorder %v2193_v10, %v2201_v12  ;;  %v4442_v15 = vadd.f32 %v4435_v36, %v4398_v59  ;;  %v2804_v24 = vadd.f32 1e-06, %v4435_v36 }
0x1a00   :  { %v2978_v11 = vsel %vm2209_vm6, 1.0, %v3680_v2  ;;  %v2811_v19 = vmul.f32 0.6931472, %v3609_v14 }
0x1a01   :  { %v2249_v17 = vsub.f32 1.0, %v2978_v11  ;;  %v2241_v54 = vmul.f32 %v2978_v11, %v2233_v13  ;;  %3620 = vlog2.f32 %v2804_v24 }
0x1a02   :  { %v4446_v18 = vpop.eup %3610  ;;  %v2826_v40 = vsub.f32 0.0, %v2811_v19 }
0x1a03   :  { %2271 = vperm.xlu0 %3447, %v2241_v54   ;;  %v2392_v30 = vsel %vm2390_vm7, %v2241_v54, 0.0  ;;  %v4452_v59 = vadd.f32 %v4446_v18, %v4404_v57  ;;  %v4454_v45 = vmul.f32 %v2249_v17, %v2233_v13  ;;  %v2806_v22 = vadd.f32 1e-06, %v4446_v18  ;;  %v3613_v23 = vpop.eup %3612 }
0x1a04   :  { %v4456_v47 = vadd.f32 %v2392_v30, %v2391_v38  ;;  %v2817_v42 = vmul.f32 0.6931472, %v3613_v23  ;;  %v2834_v52 = vmul.f32 %v2826_v40, %v4475_v32 }
0x1a05   :  { %v2407_v25 = vsel %vm2390_vm7, %v4454_v45, 0.0  ;;  %3622 = vlog2.f32 %v2806_v22 }
0x1a06   :  { %v4463_v28 = vpop.eup %3614  ;;  %v4465_v9 = vadd.f32 %v2407_v25, %v2406_v27  ;;  %v2829_v50 = vsub.f32 0.0, %v2817_v42  ;;  %v2842_v5 = vsel %vm2390_vm7, %v2834_v52, 0.0  ;;  %v2149_v52 = vsub.f32 1.0, %v4431_v60 }
0x1a07   :  { %v4469_v57 = vadd.f32 %v4463_v28, %v4412_v61  ;;  %v2808_v31 = vadd.f32 1e-06, %v4463_v28  ;;  %v3617_v37 = vpop.eup %3616 }
0x1a08   :  { %v2813_v16 = vmul.f32 0.6931472, %v3617_v37  ;;  %v3619_v44 = vpop.eup %3618  ;;  %v2837_v8 = vmul.f32 %v2829_v50, %v4475_v32  ;;  %v2175_v37 = vpop.permute.xlu0 %2174  ;;  %v2205_v50 = vadd.f32 %v4431_v60, %v4381_v33  ;;  %v2148_v60 = vsub.f32 1.0, %v4446_v18 }
0x1a09   :  { %3624 = vlog2.f32 %v2808_v31  ;;  %v2821_v61 = vmul.f32 0.6931472, %v3619_v44  ;;  %v2150_v18 = vsub.f32 1.0, %v4463_v28  ;;  %v2238_v28 = vld [vmem:[%s4673_s2 + $0x30] sm:$0xff] }
0x1a0a   :  { %v2827_v39 = vsub.f32 0.0, %v2813_v16  ;;  %v2847_v54 = vsel %vm2390_vm7, %v2837_v8, 0.0  ;;  %v2147_v16 = vsub.f32 1.0, %v4426_v56 }
0x1a0b   :  { %v3621_v53 = vpop.eup %3620  ;;  %v2831_v7 = vsub.f32 0.0, %v2821_v61 }
0x1a0c   :  { %v2815_v55 = vmul.f32 0.6931472, %v3621_v53  ;;  %v2835_v1 = vmul.f32 %v2827_v39, %v4475_v32  ;;  %v2195_v42 = vadd.f32 %v2175_v37, %v2147_v16  ;;  %v2179_v44 = vpop.permute.xlu0 %2178  ;;  %v2203_v39 = vadd.f32 %v4426_v56, %v4375_v58  ;;  %v2235_v58 = vld [vmem:[%s4673_s2 + $0x18] sm:$0xff] }
0x1a0d   :  { %v2839_v17 = vmul.f32 %v2831_v7, %v4475_v32  ;;  %v2197_v53 = vadd.f32 %v2179_v44, %v2149_v52 }
0x1a0e   :  { %v2828_v29 = vsub.f32 0.0, %v2815_v55  ;;  %v2843_v62 = vsel %vm2390_vm7, %v2835_v1, 0.0  ;;  %vm2211_vm8 = vcmp.gt.f32.partialorder %v2195_v42, %v2203_v39 }
0x1a0f   :  { %v3623_v63 = vpop.eup %3622  ;;  %v2844_v0 = vadd.f32 %v2843_v62, %v2842_v5  ;;  %v2851_v25 = vsel %vm2390_vm7, %v2839_v17, 0.0  ;;  %v2980_v1 = vsel %vm2211_vm8, 1.0, %v3680_v2  ;;  %v2146_v5 = vsub.f32 1.0, %v4435_v36 }
0x1a10   :  { %v2819_v6 = vmul.f32 0.6931472, %v3623_v63  ;;  %v2836_v34 = vmul.f32 %v2828_v29, %v4475_v32  ;;  %vm2213_vm9 = vcmp.gt.f32.partialorder %v2197_v53, %v2205_v50  ;;  %v2251_v56 = vsub.f32 1.0, %v2980_v1 }
0x1a11   :  { %v2982_v33 = vsel %vm2213_vm9, 1.0, %v3680_v2 }
0x1a12   :  { %v2830_v12 = vsub.f32 0.0, %v2819_v6  ;;  %v2845_v13 = vsel %vm2390_vm7, %v2836_v34, 0.0  ;;  %v2243_v6 = vmul.f32 %v2980_v1, %v2235_v58 }
0x1a13   :  { %v3625_v10 = vpop.eup %3624  ;;  %v2846_v11 = vadd.f32 %v2845_v13, %v2844_v0  ;;  %v2236_v13 = vld [vmem:[%s4673_s2 + $0x20] sm:$0xff] }
0x1a14   :  { %v2823_v14 = vmul.f32 0.6931472, %v3625_v10  ;;  %v2838_v24 = vmul.f32 %v2830_v12, %v4475_v32  ;;  %v2237_v10 = vld [vmem:[%s4673_s2 + $0x28] sm:$0xff]  ;;  %v2253_v12 = vsub.f32 1.0, %v2982_v33 }
0x1a15   :  { %v2848_v38 = vadd.f32 %v2847_v54, %v2846_v11 }
0x1a16   :  { %v2832_v19 = vsub.f32 0.0, %v2823_v14  ;;  %v2849_v30 = vsel %vm2390_vm7, %v2838_v24, 0.0  ;;  %v2259_v14 = vmul.f32 %v2251_v56, %v2235_v58  ;;  %v2261_v42 = vmul.f32 %v2253_v12, %v2237_v10 }
0x1a17   :  { %v2850_v23 = vadd.f32 %v2849_v30, %v2848_v38  ;;  %v2245_v38 = vmul.f32 %v2982_v33, %v2237_v10 }
0x1a18   :  { %v2840_v22 = vmul.f32 %v2832_v19, %v4475_v32  ;;  %v2396_v19 = vsel %vm2390_vm7, %v2243_v6, 0.0 }
0x1a19   :  { %v2852_v27 = vadd.f32 %v2851_v25, %v2850_v23 }
0x1a1a   :  { %v2853_v31 = vsel %vm2390_vm7, %v2840_v22, 0.0 }
0x1a1b   :  { %v4491_v40 = vadd.f32 %v2853_v31, %v2852_v27  ;;  %v2411_v31 = vsel %vm2390_vm7, %v2259_v14, 0.0 }
0x1a3d   :  { %v2080_v55 = vpop.xlane.xlu1 %2079 }
0x1a3e   :  { %v2095_v61 = vadd.f32 %v4406_v35, %v2080_v55  ;;  %v2234_v35 = vld [vmem:[%s4673_s2 + $0x10] sm:$0xff] }
0x1a40   :  { %v2976_v29 = vmul.f32 -1.442695, %v2095_v61  ;;  %v2400_v61 = vsel %vm2390_vm7, %v2245_v38, 0.0 }
0x1a41   :  { %v2173_v62 = vpop.permute.xlu1 %2172 }
0x1a42   :  { %3626 = vpow2.f32 %v2976_v29  ;;  %v2194_v63 = vadd.f32 %v2173_v62, %v2146_v5  ;;  %v2415_v29 = vsel %vm2390_vm7, %v2261_v42, 0.0 }
0x1a44   :  { %vm2210_vm10 = vcmp.gt.f32.partialorder %v2194_v63, %v4442_v15 }
0x1a45   :  { %v2979_v36 = vsel %vm2210_vm10, 1.0, %v3680_v2  ;;  %v2177_v0 = vpop.permute.xlu1 %2176 }
0x1a46   :  { %v2250_v7 = vsub.f32 1.0, %v2979_v36  ;;  %v2196_v34 = vadd.f32 %v2177_v0, %v2148_v60  ;;  %v2242_v8 = vmul.f32 %v2979_v36, %v2234_v35  ;;  %v2183_v60 = vpop.permute.xlu0 %2182 }
0x1a48   :  { %vm2212_vm11 = vcmp.gt.f32.partialorder %v2196_v34, %v4452_v59  ;;  %v2394_v15 = vsel %vm2390_vm7, %v2242_v8, 0.0  ;;  %2276 = vperm.xlu1 %3446, %v2242_v8   ;;  %v2258_v11 = vmul.f32 %v2250_v7, %v2234_v35  ;;  %v2423_v7 = vld [vmem:[%s4684_s13] sm:$0xff]  ;;  %v2424_v34 = vld [vmem:[%s4684_s13 + $0x8] sm:$0xff] }
0x1a49   :  { %v2981_v24 = vsel %vm2212_vm11, 1.0, %v3680_v2  ;;  %v2395_v17 = vadd.f32 %v2394_v15, %v4456_v47  ;;  %v2181_v54 = vpop.permute.xlu1 %2180  ;;  %v4551_v10 = vpack.c.bf16 %v2424_v34, %v2423_v7 }
0x1a4a   :  { %v2252_v30 = vsub.f32 1.0, %v2981_v24  ;;  %v2198_v22 = vadd.f32 %v2181_v54, %v2150_v18  ;;  %v2244_v23 = vmul.f32 %v2981_v24, %v2236_v13  ;;  %v2409_v25 = vsel %vm2390_vm7, %v2258_v11, 0.0  ;;  %v2425_v18 = vld [vmem:[%s4684_s13 + $0x10] sm:$0xff] }
0x1a4b   :  { %v2397_v59 = vadd.f32 %v2396_v19, %v2395_v17  ;;  %v2410_v27 = vadd.f32 %v2409_v25, %v4465_v9 }
0x1a4c   :  { %v3627_v37 = vpop.eup %3626  ;;  %vm2214_vm12 = vcmp.gt.f32.partialorder %v2198_v22, %v4469_v57  ;;  %v2260_v47 = vmul.f32 %v2252_v30, %v2236_v13  ;;  %2286 = vperm.xlu0 %3447, %v2244_v23   ;;  %v2398_v16 = vsel %vm2390_vm7, %v2244_v23, 0.0  ;;  %2281 = vperm.xlu1 %3446, %v2243_v6   ;;  %v2239_v6 = vld [vmem:[%s4673_s2 + $0x38] sm:$0xff]  ;;  %v3686_v13 = vmov 0.0|0.0  }
0x1a4d   :  { %v2127_v44 = vadd.f32 1.0, %v3627_v37  ;;  %v2983_v39 = vsel %vm2214_vm12, 1.0, %v3680_v2  ;;  %v2399_v52 = vadd.f32 %v2398_v16, %v2397_v59  ;;  %v2412_v9 = vadd.f32 %v2411_v31, %v2410_v27  ;;  %3408 = vmatprep.subr.bf16.mxu0 %v3686_v13  ;;  %3414 = vmatprep.subr.bf16.mxu1 %v3686_v13  ;;  %v2429_v16 = vld [vmem:[%s4686_s15 + $0x8] sm:$0xff] }
0x1a4e   :  { %v2254_v53 = vsub.f32 1.0, %v2983_v39  ;;  %v2413_v55 = vsel %vm2390_vm7, %v2260_v47, 0.0  ;;  %v2246_v50 = vmul.f32 %v2983_v39, %v2238_v28  ;;  %3410 = vmatpush3.bf16.msra.mxu0 %v4551_v10 }
0x1a4f   :  { %3628 = vrcp.f32 %v2127_v44  ;;  %v2401_v1 = vadd.f32 %v2400_v61, %v2399_v52  ;;  %v2414_v57 = vadd.f32 %v2413_v55, %v2412_v9  ;;  %3411 = vmatprep.subr.bf16.mxu0 %v3686_v13 }
0x1a50   :  { %2334 = vperm.xlu0 %3447, %v4454_v45   ;;  %2329 = vperm.xlu1 %3446, %v4428_v4   ;;  %v2262_v5 = vmul.f32 %v2254_v53, %v2238_v28  ;;  %v2402_v62 = vsel %vm2390_vm7, %v2246_v50, 0.0 }
0x1a51   :  { %v2416_v63 = vadd.f32 %v2415_v29, %v2414_v57  ;;  %v2403_v58 = vadd.f32 %v2402_v62, %v2401_v1 }
0x1a52   :  { %v2417_v56 = vsel %vm2390_vm7, %v2262_v5, 0.0 }
0x1a53   :  { %v2418_v35 = vadd.f32 %v2417_v56, %v2416_v63 }
0x1a54   :  { %2339 = vperm.xlu0 %3447, %v2258_v11   ;;  %2291 = vperm.xlu1 %3446, %v2245_v38   ;;  %v2426_v11 = vld [vmem:[%s4684_s13 + $0x18] sm:$0xff] }
0x1a55   :  { %v4564_v17 = vpack.c.bf16 %v2426_v11, %v2425_v18 }
0x1a57   :  { %3413 = vmatpush3.bf16.msra.mxu0 %v4564_v17 }
0x1a58   :  { %2344 = vperm.xlu0 %3447, %v2259_v14   ;;  %2296 = vperm.xlu1 %3446, %v2246_v50  }
0x1a59   :  { %v3629_v33 = vpop.eup %3628  ;;  %3420 = vmatprep.subr.bf16.mxu0 %v3686_v13 }
0x1a5a   :  { %v2151_v36 = vsub.f32 1.0, %v3629_v33  ;;  %v2809_v45 = vadd.f32 1e-06, %v3629_v33  ;;  %v2207_v4 = vadd.f32 %v3629_v33, %v4387_v49 }
0x1a5c   :  { %v2199_v0 = vadd.f32 %v2183_v60, %v2151_v36  ;;  %2349 = vperm.xlu0 %3447, %v2260_v47   ;;  %3630 = vlog2.f32 %v2809_v45  ;;  %v2428_v47 = vld [vmem:[%s4686_s15] sm:$0xff] }
0x1a5e   :  { %vm2215_vm13 = vcmp.gt.f32.partialorder %v2199_v0, %v2207_v4 }
0x1a5f   :  { %v2984_v8 = vsel %vm2215_vm13, 1.0, %v3680_v2 }
0x1a60   :  { %v2247_v49 = vmul.f32 %v2984_v8, %v2239_v6  ;;  %v2255_v12 = vsub.f32 1.0, %v2984_v8  ;;  %2359 = vperm.xlu0 %3447, %v2262_v5  }
0x1a62   :  { %v2263_v14 = vmul.f32 %v2255_v12, %v2239_v6  ;;  %v2404_v15 = vsel %vm2390_vm7, %v2247_v49, 0.0  ;;  %2301 = vperm.xlu1 %3446, %v2247_v49  }
0x1a63   :  { %v2405_v24 = vadd.f32 %v2404_v15, %v2403_v58 }
0x1a64   :  { %v2419_v54 = vsel %vm2390_vm7, %v2263_v14, 0.0 }
0x1a65   :  { %vm2433_vm14 = vcmp.eq.f32.partialorder %v2405_v24, 0.0  ;;  %v2420_v19 = vadd.f32 %v2419_v54, %v2418_v35 }
0x1a66   :  { %v3631_v38 = vpop.eup %3630  ;;  %2354 = vperm.xlu1 %3446, %v2261_v42   ;;  %v2985_v30 = vsel %vm2433_vm14, 1.0, %v3680_v2  ;;  %v4582_v42 = vpack.c.bf16 %v2429_v16, %v2428_v47 }
0x1a67   :  { %v2436_v22 = vadd.f32 %v2985_v30, %v2405_v24  ;;  %vm2616_vm15 = vcmp.eq.f32.partialorder %v2420_v19, 0.0  ;;  %v2825_v23 = vmul.f32 0.6931472, %v3631_v38 }
0x1a68   :  { %v2989_v25 = vsel %vm2616_vm15, 1.0, %v3680_v2  ;;  %3416 = vmatpush3.bf16.msra.mxu1 %v4582_v42 }
0x1a69   :  { %2519 = vperm.xlu0 %3447, %v2436_v22   ;;  %v2833_v59 = vsub.f32 0.0, %v2825_v23  ;;  %v2619_v31 = vadd.f32 %v2989_v25, %v2420_v19  ;;  %3417 = vmatprep.subr.bf16.mxu1 %v3686_v13 }
0x1a6a   :  { %2364 = vperm.xlu1 %3446, %v2263_v14  }
0x1a6b   :  { %v2841_v27 = vmul.f32 %v2833_v59, %v4475_v32 }
0x1a6d   :  { %v2855_v28 = vsel %vm2390_vm7, %v2841_v27, 0.0 }
0x1a6e   :  { %2695 = vperm.xlu1 %3446, %v2619_v31   ;;  %v4574_v37 = vadd.f32 %v2855_v28, %v4491_v40 }
0x1a74   :  { %v2267_v44 = vpop.permute.xlu1 %2266 }
0x1a75   :  { %v2304_v50 = vmul.f32 %v2267_v44, %v4322_v20 }
0x1a77   :  { %v2312_v63 = vsel %vm96_vm1, %v2304_v50, 0.0 }
0x1a82   :  { %v2272_v39 = vpop.permute.xlu0 %2271 }
0x1a83   :  { %v2305_v61 = vmul.f32 %v2272_v39, %v4347_v41 }
0x1a85   :  { %v2313_v5 = vsel %vm96_vm1, %v2305_v61, 0.0  ;;  %v2431_v61 = vld [vmem:[%s4686_s15 + $0x18] sm:$0xff] }
0x1a86   :  { %v2314_v56 = vadd.f32 %v2313_v5, %v2312_v63 }
0x1ac7   :  { %v2277_v52 = vpop.permute.xlu1 %2276 }
0x1ac8   :  { %v2306_v1 = vmul.f32 %v2277_v52, %v4350_v43 }
0x1aca   :  { %v2315_v58 = vsel %vm96_vm1, %v2306_v1, 0.0  ;;  %v2440_v1 = vshrl.u32 %v78_v21, 7 }
0x1acb   :  { %v2282_v9 = vpop.permute.xlu1 %2281  ;;  %v2287_v40 = vpop.permute.xlu0 %2286  ;;  %v2316_v60 = vadd.f32 %v2315_v58, %v2314_v56 }
0x1acc   :  { %v2307_v62 = vmul.f32 %v2282_v9, %v4339_v26  ;;  %v2308_v36 = vmul.f32 %v2287_v40, %v4354_v51 }
0x1ace   :  { %v2317_v33 = vsel %vm96_vm1, %v2307_v62, 0.0  ;;  %v2319_v49 = vsel %vm96_vm1, %v2308_v36, 0.0 }
0x1acf   :  { %v2330_v53 = vpop.permute.xlu1 %2329  ;;  %v2335_v55 = vpop.permute.xlu0 %2334  ;;  %v2318_v7 = vadd.f32 %v2317_v33, %v2316_v60 }
0x1ad0   :  { %v2367_v4 = vmul.f32 %v2330_v53, %v4322_v20  ;;  %v2368_v0 = vmul.f32 %v2335_v55, %v4347_v41 }
0x1ad1   :  { %v2320_v11 = vadd.f32 %v2319_v49, %v2318_v7 }
0x1ad2   :  { %v2375_v14 = vsel %vm96_vm1, %v2367_v4, 0.0  ;;  %v2376_v15 = vsel %vm96_vm1, %v2368_v0, 0.0  ;;  %v2987_v0 = vld [vmem:[%s4687_s16] ss:$0 sm:$0xff] }
0x1ad3   :  { %v2292_v57 = vpop.permute.xlu1 %2291  ;;  %v2340_v29 = vpop.permute.xlu0 %2339  ;;  %v2377_v54 = vadd.f32 %v2376_v15, %v2375_v14 }
0x1ad4   :  { %v2309_v6 = vmul.f32 %v2292_v57, %v4343_v46  ;;  %v2369_v34 = vmul.f32 %v2340_v29, %v4350_v43  ;;  %v2441_v29 = vsub.s32 0, %v2440_v1 }
0x1ad6   :  { %v2321_v18 = vsel %vm96_vm1, %v2309_v6, 0.0  ;;  %v2378_v41 = vsel %vm96_vm1, %v2369_v34, 0.0 }
0x1ad7   :  { %v2345_v35 = vpop.permute.xlu0 %2344  ;;  %v2297_v45 = vpop.permute.xlu1 %2296  ;;  %v2322_v19 = vadd.f32 %v2321_v18, %v2320_v11  ;;  %v2379_v23 = vadd.f32 %v2378_v41, %v2377_v54 }
0x1ad8   :  { %v2310_v8 = vmul.f32 %v2297_v45, %v4358_v48  ;;  %v2370_v20 = vmul.f32 %v2345_v35, %v4339_v26 }
0x1ada   :  { %v2323_v24 = vsel %vm96_vm1, %v2310_v8, 0.0  ;;  %v2380_v30 = vsel %vm96_vm1, %v2370_v20, 0.0 }
0x1adb   :  { %v2350_v12 = vpop.permute.xlu0 %2349  ;;  %v2324_v25 = vadd.f32 %v2323_v24, %v2322_v19  ;;  %v2381_v31 = vadd.f32 %v2380_v30, %v2379_v23 }
0x1adc   :  { %v2371_v43 = vmul.f32 %v2350_v12, %v4354_v51 }
0x1ade   :  { %v2382_v27 = vsel %vm96_vm1, %v2371_v43, 0.0 }
0x1adf   :  { %v2360_v59 = vpop.permute.xlu0 %2359  ;;  %v2383_v44 = vadd.f32 %v2382_v27, %v2381_v31 }
0x1ae0   :  { %v2373_v16 = vmul.f32 %v2360_v59, %v4358_v48 }
0x1ae1   :  { %v2302_v38 = vpop.permute.xlu1 %2301 }
0x1ae2   :  { %v2311_v22 = vmul.f32 %v2302_v38, %v4391_v3  ;;  %v2386_v40 = vsel %vm96_vm1, %v2373_v16, 0.0 }
0x1ae4   :  { %v2325_v26 = vsel %vm96_vm1, %v2311_v22, 0.0 }
0x1ae5   :  { %v2326_v28 = vadd.f32 %v2325_v26, %v2324_v25  ;;  %v2355_v47 = vpop.permute.xlu1 %2354  ;;  %v2422_v26 = vld [vmem:[%s4675_s4] sm:$0xff] }
0x1ae6   :  { %v2372_v51 = vmul.f32 %v2355_v47, %v4343_v46 }
0x1ae7   :  { %3373 = vmatmul.mubr.msk.f32.vlgmr.msra.gmra.mrb[64].mxu0 %vm96_vm1, %v2326_v28 }
0x1ae8   :  { %v2384_v39 = vsel %vm96_vm1, %v2372_v51, 0.0  ;;  %3422 = vmatpush3.bf16.msra.mxu0 %v4551_v10  ;;  %3394 = vmatprep.mubr.msk.f32.mxu0 %vm3681_vm0, %v3680_v2  ;;  %v2430_v10 = vld [vmem:[%s4686_s15 + $0x10] sm:$0xff] }
0x1ae9   :  { %v2385_v52 = vadd.f32 %v2384_v39, %v2383_v44  ;;  %v2365_v9 = vpop.permute.xlu1 %2364  ;;  %3423 = vmatprep.subr.bf16.mxu0 %v3686_v13  ;;  %v3418_v50 = vpack.c.bf16 %v2431_v61, %v2430_v10 }
0x1aea   :  { %v2374_v48 = vmul.f32 %v2365_v9, %v4391_v3  ;;  %v2520_v3 = vpop.permute.xlu0 %2519 }
0x1aeb   :  { %v2387_v53 = vadd.f32 %v2386_v40, %v2385_v52  ;;  %3419 = vmatpush3.bf16.msra.mxu1 %v3418_v50  ;;  %3632 = vrcp.f32 %v2520_v3 }
0x1aec   :  { %v2388_v46 = vsel %vm96_vm1, %v2374_v48, 0.0  ;;  %3425 = vmatpush3.bf16.msra.mxu0 %v4564_v17  ;;  %3426 = vmatprep.subr.bf16.mxu1 %v3686_v13  ;;  %v2427_v17 = vld [vmem:[%s4685_s14] sm:$0x1] }
0x1aed   :  { %v2389_v55 = vadd.f32 %v2388_v46, %v2387_v53  ;;  %v2437_v57 = vmul.f32 8.0, %v2427_v17  ;;  %v2696_v5 = vpop.permute.xlu1 %2695 }
0x1aee   :  { %3634 = vrcp.f32 %v2696_v5 }
0x1aef   :  { %3395 = vmatmul.mubr.msk.f32.vlgmr.msra.gmra.mrb[66].mxu0 %vm96_vm1, %v2389_v55  ;;  %v2442_v62 = vrot.slane %v2437_v57, %v2441_v29 }
0x1af5   :  { %v3633_v35 = vpop.eup %3632 }
0x1af8   :  { %v3635_v45 = vpop.eup %3634 }
0x1bba   :  { %v2513_v63 = vpop.f32.mrb[64].mxu0 }
0x1bbb   :  { %v2514_v58 = vadd.f32 %v2513_v63, %v2442_v62  ;;  %v3374_v56 = vpop.f32.mrb[65].mxu0 }
0x1bbd   :  { %v2523_v33 = vmul.f32 %v3633_v35, %v2514_v58 }
0x1bbf   :  { %3384 = vmatmul.mubr.msk.f32.vlgmr.msra.gmra.mrb[64].mxu1 %vm96_vm1, %v2523_v33 }
0x1bc0   :  { %3428 = vmatpush3.bf16.msra.mxu1 %v4582_v42  ;;  %3405 = vmatprep.mubr.msk.f32.mxu1 %vm3681_vm0, %v3680_v2  ;;  %vm2888_vm0 = vcmask 0  }
0x1bc1   :  { %3429 = vmatprep.subr.bf16.mxu1 %v3686_v13 }
0x1bc2   :  { %v2689_v21 = vpop.f32.mrb[66].mxu0 }
0x1bc3   :  { %v2690_v60 = vadd.f32 %v2689_v21, %v2442_v62  ;;  %v3396_v36 = vpop.f32.mrb[67].mxu0 }
0x1bc4   :  { %3431 = vmatpush3.bf16.msra.mxu1 %v3418_v50 }
0x1bc5   :  { %v2699_v4 = vmul.f32 %v3635_v45, %v2690_v60 }
0x1bc7   :  { %3406 = vmatmul.mubr.msk.f32.vlgmr.msra.gmra.mrb[66].mxu1 %vm96_vm1, %v2699_v4 }
0x1c92   :  { %v2599_v6 = vpop.f32.mrb[64].mxu1 }
0x1c93   :  { %v2600_v42 = vadd.f32 %v2987_v0, %v2599_v6  ;;  %v3385_v7 = vpop.f32.mrb[65].mxu1 }
0x1c95   :  { %v2604_v2 = vsel %vm2603_vm2, %v2600_v42, -inf }
0x1c96   :  { %2605 = vmax.xlane.f32.xlu1 %v2604_v2 }
0x1c9a   :  { %v2769_v13 = vpop.f32.mrb[66].mxu1 }
0x1c9b   :  { %v2770_v34 = vadd.f32 %v2987_v0, %v2769_v13  ;;  %v3407_v8 = vpop.f32.mrb[67].mxu1 }
0x1c9d   :  { %v2773_v49 = vsel %vm2603_vm2, %v2770_v34, -inf }
0x1c9e   :  { %2774 = vmax.xlane.f32.xlu0 %v2773_v49 }
0x1d23   :  { %v2606_v12 = vpop.xlane.xlu1 %2605 }
0x1d24   :  { %v2607_v14 = vsub.f32 %v2600_v42, %v2606_v12 }
0x1d26   :  { %v2608_v20 = vmul.f32 1.442695, %v2607_v14 }
0x1d2b   :  { %v2775_v15 = vpop.xlane.xlu0 %2774 }
0x1d2c   :  { %v2776_v18 = vsub.f32 %v2770_v34, %v2775_v15 }
0x1d2e   :  { %v2777_v11 = vmul.f32 1.442695, %v2776_v18 }
0x1d30   :  { %3636 = vpow2.f32 %v2777_v11 }
0x1d31   :  { %3638 = vpow2.f32 %v2608_v20 }
0x1d3a   :  { %v3637_v41 = vpop.eup %3636 }
0x1d3b   :  { %v2779_v24 = vsel %vm2603_vm2, %v3637_v41, 0.0  ;;  %v3639_v43 = vpop.eup %3638 }
0x1d3c   :  { %2780 = vadd.xlane.f32.xlu0 %v2779_v24  ;;  %v2610_v54 = vsel %vm2603_vm2, %v3639_v43, 0.0 }
0x1d40   :  { %2611 = vadd.xlane.f32.xlu0 %v2610_v54 }
0x1dc9   :  { %v2781_v19 = vpop.xlane.xlu0 %2780 }
0x1dca   :  { %3640 = vlog2.f32 %v2781_v19 }
0x1dcd   :  { %v2612_v38 = vpop.xlane.xlu0 %2611 }
0x1dce   :  { %3642 = vlog2.f32 %v2612_v38 }
0x1dd4   :  { %v3641_v30 = vpop.eup %3640 }
0x1dd5   :  { %v2783_v22 = vmul.f32 0.6931472, %v3641_v30 }
0x1dd7   :  { %v2784_v23 = vsub.f32 %v2776_v18, %v2783_v22 }
0x1dd8   :  { %v3643_v25 = vpop.eup %3642 }
0x1dd9   :  { %v2867_v59 = vmul.f32 1.442695, %v2784_v23  ;;  %v2614_v27 = vmul.f32 0.6931472, %v3643_v25 }
0x1ddb   :  { %3644 = vpow2.f32 %v2867_v59  ;;  %v2615_v31 = vsub.f32 %v2607_v14, %v2614_v27 }
0x1ddd   :  { %v2785_v28 = vmul.f32 %v2615_v31, %v2422_v26 }
0x1ddf   :  { %v2786_v47 = vsel %vm2603_vm2, %v2785_v28, 0.0 }
0x1de0   :  { %2787 = vadd.xlane.f32.xlu1 %v2786_v47 }
0x1de5   :  { %v3645_v16 = vpop.eup %3644 }
0x1de6   :  { %v2869_v51 = vmul.f32 %v3645_v16, %v2784_v23 }
0x1de8   :  { %v2870_v44 = vsel %vm2603_vm2, %v2869_v51, 0.0 }
0x1de9   :  { %2871 = vadd.xlane.f32.xlu0 %v2870_v44 }
0x1ded   :  { %2857 = vadd.xlane.f32.xlu0 %v4574_v37 }
0x1e6d   :  { %v2788_v39 = vpop.xlane.xlu1 %2787 }
0x1e6e   :  { %v2789_v52 = vsub.f32 0.0, %v2788_v39 }
0x1e70   :  { %v2790_v9 = vmul.f32 %v2789_v52, %v4475_v32 }
0x1e72   :  { %v2791_v40 = vsel %vm2390_vm7, %v2790_v9, 0.0 }
0x1e73   :  { %2792 = vadd.xlane.f32.xlu1 %v2791_v40 }
0x1e76   :  { %v2872_v48 = vpop.xlane.xlu0 %2871 }
0x1e77   :  { %v2873_v53 = vmul.f32 %v2872_v48, %v4475_v32 }
0x1e79   :  { %v2874_v46 = vsel %vm2390_vm7, %v2873_v53, 0.0 }
0x1e7a   :  { %2875 = vadd.xlane.f32.xlu1 %v2874_v46  ;;  %v2858_v55 = vpop.xlane.xlu0 %2857 }
0x1e7b   :  { %v2859_v10 = vrot.slane %v2858_v55, 4 }
0x1e7d   :  { %v2860_v61 = vadd.f32 %v2859_v10, %v2858_v55 }
0x1e7f   :  { %v2861_v50 = vrot.slane %v2860_v61, 2 }
0x1e81   :  { %v2862_v17 = vadd.f32 %v2861_v50, %v2860_v61 }
0x1e83   :  { %v2863_v63 = vrot.slane %v2862_v17, 1 }
0x1e85   :  { %v2864_v33 = vadd.f32 %v2863_v63, %v2862_v17 }
0x1f00   :  { %v2793_v3 = vpop.xlane.xlu1 %2792 }
0x1f01   :  { %v2794_v1 = vrot.slane %v2793_v3, 4 }
0x1f03   :  { %v2795_v37 = vadd.f32 %v2794_v1, %v2793_v3 }
0x1f05   :  { %v2796_v57 = vrot.slane %v2795_v37, 2 }
0x1f07   :  { %v2876_v29 = vpop.xlane.xlu1 %2875  ;;  %v2797_v5 = vadd.f32 %v2796_v57, %v2795_v37 }
0x1f08   :  { %v2877_v62 = vrot.slane %v2876_v29, 4 }
0x1f09   :  { %v2798_v58 = vrot.slane %v2797_v5, 1 }
0x1f0a   :  { %v2878_v56 = vadd.f32 %v2877_v62, %v2876_v29 }
0x1f0b   :  { %v2799_v35 = vadd.f32 %v2798_v58, %v2797_v5 }
0x1f0c   :  { %v2879_v32 = vrot.slane %v2878_v56, 2 }
0x1f0d   :  { %3432 = vpush %v2799_v35 }
0x1f0e   :  { %v2880_v21 = vadd.f32 %v2879_v32, %v2878_v56  ;;  %3434 = vpush %v2864_v33 }
0x1f10   :  { %v2881_v60 = vrot.slane %v2880_v21, 1 }
0x1f12   :  { %v2882_v36 = vadd.f32 %v2881_v60, %v2880_v21 }
0x1f14   :  { %3436 = vpush %v2882_v36 }
0x1f3e   :  { %s3433_s4 = spop %3432 }
0x1f3f   :  { %s3435_s26 = spop %3434  ;;  %s2801_s27 = smul.f32 0.5, %s3433_s4 }
0x1f40   :  { %s2866_s5 = smul.f32 0.0625, %s3435_s26 }
0x1f42   :  { %s2885_s0 = sadd.f32 %s2866_s5, %s2801_s27 }
0x1f45   :  { %s3437_s28 = spop %3436 }
0x1f46   :  { %s2884_s12 = smul.f32 0.5, %s3437_s28 }
0x1f48   :  { %s2886_s30 = sadd.f32 %s2885_s0, %s2884_s12 }
0x1f4a   :  { %v2887_v45 = vstv %s2886_s30 }
0x1f4b   :  { %2889 = vst.msk [vmem:[#allocation4] sm:$0x1] %vm2888_vm0, %v2887_v45 }
0x1f4c   :  { %3667 = shalt.err (!%p3664_p4)
}
0x1f4d   :  { %s3668_s20 = scalar_lea.hbm %s4688_s17, 16 }
0x1f4e   :  { %p3669_p5 = scmp.ne.s32.totalorder %s4688_s17, %s3668_s20  ;;  %p3672_p6 = scmp.lt.u32.totalorder %s3668_s20, %s4688_s17 }
0x1f50   :  { %p3674_p7 = pnand %p3672_p6, %p3669_p5 }
0x1f52   :  { %3677 = shalt.err (!%p3674_p7)
}
0x1f53   :  { %2899 = dma.vmem_to_hbm [thread:$0]  %s2897_s29, 16, %s4688_s17, [#allocation5]  }
0x1f54   :  { %3678 = dma.done.wait [#allocation5], 16  }
0x1f55   :  { %3679 = vsyncadd [#allocation5], 4294967280 }
0x1f56   :  { %2903 = vsyncpa [#allocation5], 1 }

</bundles_post_ra>
